<compile_context>
chip_gen: v5e
topology: v5e:2x2
jax: 0.10.0
libtpu: 0.0.40
codegen_flags: <defaults>
</compile_context>

<pallas_src>
import functools

import jax
import jax.numpy as jnp
from jax import lax
from jax.experimental import pallas as pl
from jax.experimental.pallas import tpu as pltpu


# ---------------------------------------------------------------------------
# Fused kernel: conv3x3+ReLU -> conv3x3+ReLU -> gram(input), gram(target) -> MSE
# ---------------------------------------------------------------------------
def _style_loss_kernel(x_ref, m_ref, w1_ref, b1_ref, w2_ref, b2_ref, o_ref,
                       *, width, n_batch, c_out):
    """Layouts (all lane-dense, last dim = H*W):

      x_ref  : (2N*Cin, HW)        input & target stacked; row = sample*Cin + ch
      m_ref  : (9, 1, HW)          0/1 validity mask per 3x3 tap (conv zero-pad)
      w*_ref : (9, 2N*Co, 2N*Ci)   per-tap weights, block-diagonal over samples
      b*_ref : (2N*Co, 1)
      o_ref  : (1, 1)              scalar loss
    """
    hw = x_ref.shape[-1]
    taps = [m_ref[t] for t in range(9)]          # hoist mask loads (shared by both layers)

    def conv3x3_relu(feat, w_ref, b_ref):
        # 3x3 "same" conv as 9 shifted dot-accumulates; no im2col patch matrix.
        rows_out = w_ref.shape[1]
        acc = jnp.zeros((rows_out, hw), jnp.float32)
        t = 0
        for dy in (-1, 0, 1):
            for dx in (-1, 0, 1):
                shift = dy * width + dx
                if shift == 0:
                    src = feat                                   # center tap: no shift/mask
                else:
                    src = pltpu.roll(feat, shift=(-shift) % hw, axis=1)
                    src = src * taps[t]                          # zero out-of-border pixels
                acc = acc + jnp.dot(w_ref[t], src,
                                    preferred_element_type=jnp.float32)
                t += 1
        return jnp.maximum(acc + b_ref[...], 0.0)

    h = conv3x3_relu(x_ref[...], w1_ref, b1_ref)     # (2N*c_mid, HW)
    h = conv3x3_relu(h, w2_ref, b2_ref)              # (2N*c_out, HW)

    f_in = h[: n_batch * c_out]                      # input-stream features  (N*C, HW)
    f_tg = h[n_batch * c_out:]                       # target-stream features (N*C, HW)

    # torch: M = features.view(C, -1) on contiguous NCHW, G = M @ M.T.
    # Row r of M concatenates the N flat (n, c)-blocks with n*C + c == r*N + k,
    # so G == sum_k Mk @ Mk.T with Mk = rows (r*N + k) of the (N*C, HW) matrix.
    # The row pick is a tiny one-hot matmul (no strided slice / relayout), and
    # the gram contracts the lane axis of both operands (no explicit .T).
    r_idx = lax.broadcasted_iota(jnp.int32, (c_out, n_batch * c_out), 0)
    b_idx = lax.broadcasted_iota(jnp.int32, (c_out, n_batch * c_out), 1)
    dn_pick = (((1,), (0,)), ((), ()))     # ordinary matmul
    dn_gram = (((1,), (1,)), ((), ()))     # A @ B.T without materializing B.T

    g_in = jnp.zeros((c_out, c_out), jnp.float32)
    g_tg = jnp.zeros((c_out, c_out), jnp.float32)
    for k in range(n_batch):
        sel = (b_idx == r_idx * n_batch + k).astype(jnp.float32)     # (C, N*C) one-hot
        m_in = lax.dot_general(sel, f_in, dn_pick, preferred_element_type=jnp.float32)
        m_tg = lax.dot_general(sel, f_tg, dn_pick, preferred_element_type=jnp.float32)
        g_in = g_in + lax.dot_general(m_in, m_in, dn_gram, preferred_element_type=jnp.float32)
        g_tg = g_tg + lax.dot_general(m_tg, m_tg, dn_gram, preferred_element_type=jnp.float32)

    d = g_in - g_tg
    o_ref[...] = (jnp.sum(d * d) / float(c_out * c_out)).reshape(1, 1)


# ---------------------------------------------------------------------------
# Wrapper-side (pure layout plumbing, traced under jit)
# ---------------------------------------------------------------------------
def _block_diag_taps(w, n_copies):
    """(Co, Ci, 3, 3) -> (9, n*Co, n*Ci): per-tap weights replicated block-
    diagonally over the stacked samples so one MXU dot convolves all of them."""
    co, ci = w.shape[0], w.shape[1]
    taps = jnp.transpose(w, (2, 3, 0, 1)).reshape(9, co, ci)
    eye = jnp.eye(n_copies, dtype=w.dtype)
    return jnp.einsum('ab,kij->kaibj', eye, taps).reshape(9, n_copies * co, n_copies * ci)


def _tap_masks(h, w):
    """(9, 1, H*W) 0/1 masks: tap (dy, dx) is valid where the shifted source
    pixel stays inside the image (implements the conv's zero padding)."""
    y = jnp.arange(h, dtype=jnp.int32).reshape(h, 1)
    x = jnp.arange(w, dtype=jnp.int32).reshape(1, w)
    masks = []
    for dy in (-1, 0, 1):
        for dx in (-1, 0, 1):
            ok = (y + dy >= 0) & (y + dy < h) & (x + dx >= 0) & (x + dx < w)
            masks.append(jnp.broadcast_to(ok, (h, w)).reshape(1, h * w))
    return jnp.stack(masks, axis=0).astype(jnp.float32)


class StyleLossPallas:
    """Pallas port of the PyTorch StyleLoss module (synthetic feature extractor)."""

    def __init__(self, key, c_in=3, c_mid=8, c_out=16):
        # Small synthetic channel counts keep the test fast; the kernel is
        # launch/DMA-bound at these sizes (MXU fill is inherently low).
        k1, k2, k3, k4 = jax.random.split(key, 4)
        self.w1 = jax.random.normal(k1, (c_mid, c_in, 3, 3), jnp.float32) * 0.1
        self.b1 = jax.random.normal(k2, (c_mid,), jnp.float32) * 0.1
        self.w2 = jax.random.normal(k3, (c_out, c_mid, 3, 3), jnp.float32) * 0.1
        self.b2 = jax.random.normal(k4, (c_out,), jnp.float32) * 0.1
        self.c_out = c_out

    def __call__(self, inp, target):
        n, c_in, h, w = inp.shape
        s = 2 * n                      # input + target go through the extractor together
        hw = h * w

        # Stack input & target along the batch axis -> one fused kernel does both
        # feature extractions, both grams and the MSE.
        x = jnp.concatenate([inp, target], axis=0).astype(jnp.float32).reshape(s * c_in, hw)

        masks = _tap_masks(h, w)
        w1 = _block_diag_taps(self.w1, s)
        w2 = _block_diag_taps(self.w2, s)
        b1 = jnp.tile(self.b1, s).reshape(-1, 1)
        b2 = jnp.tile(self.b2, s).reshape(-1, 1)

        kernel = functools.partial(_style_loss_kernel, width=w,
                                   n_batch=n, c_out=self.c_out)

        # All activations (~120 KiB here) live in VMEM for the whole kernel.
        # TODO(synk): for real VGG shapes (C<=512, H=W>=224) the gram must be
        # tiled over the pixel axis (grid + (C,C) VMEM accumulator, per-gen
        # tile sizes for v7x's 64 MiB vs 128 MiB VMEM, deeper buffering on v7x).
        loss = pl.pallas_call(
            kernel,
            out_shape=jax.ShapeDtypeStruct((1, 1), jnp.float32),
            in_specs=[
                pl.BlockSpec(x.shape, lambda: (0, 0)),
                pl.BlockSpec(masks.shape, lambda: (0, 0, 0)),
                pl.BlockSpec(w1.shape, lambda: (0, 0, 0)),
                pl.BlockSpec(b1.shape, lambda: (0, 0)),
                pl.BlockSpec(w2.shape, lambda: (0, 0, 0)),
                pl.BlockSpec(b2.shape, lambda: (0, 0)),
            ],
            out_specs=pl.BlockSpec((1, 1), lambda: (0, 0)),
        )(x, masks, w1, b1, w2, b2)
        return loss[0, 0]


# ---------------------------------------------------------------------------
# Pure-JAX reference (mirrors the PyTorch forward exactly) for validation
# ---------------------------------------------------------------------------
def _reference_style_loss(module, inp, target):
    def conv(x, w, b):
        y = lax.conv_general_dilated(x, w, window_strides=(1, 1), padding='SAME',
                                     dimension_numbers=('NCHW', 'OIHW', 'NCHW'))
        return jnp.maximum(y + b[None, :, None, None], 0.0)

    def features(x):
        return conv(conv(x, module.w1, module.b1), module.w2, module.b2)

    f_in, f_tg = features(inp), features(target)
    c = f_in.shape[1]
    m_in = f_in.reshape(c, -1)        # == torch .view(C, -1) on contiguous NCHW
    m_tg = f_tg.reshape(c, -1)
    g_in = m_in @ m_in.T
    g_tg = m_tg @ m_tg.T
    return jnp.mean((g_in - g_tg) ** 2)


# ---------------------------------------------------------------------------
if __name__ == "__main__":
    key = jax.random.PRNGKey(0)
    k_mod, k_x, k_t = jax.random.split(key, 3)

    # batch=2, RGB (VGG expects 3 channels), 16x16 spatial -> H*W = 256 lanes.
    x = jax.random.normal(k_x, (2, 3, 16, 16), jnp.float32)
    target = jax.random.normal(k_t, (2, 3, 16, 16), jnp.float32)

    style_loss = StyleLossPallas(k_mod)
    loss = jax.block_until_ready(jax.jit(style_loss)(x, target))

    assert loss.shape == () and bool(jnp.isfinite(loss))

    ref = jax.block_until_ready(_reference_style_loss(style_loss, x, target))
    assert jnp.allclose(loss, ref, rtol=1e-1, atol=1e-3), (loss, ref)

    print("KERNEL_OK")
</pallas_src>

<mosaic_0001>
module attributes {stable_mosaic.version = 11 : i64} {
  func.func @_style_loss_kernel(%arg0: memref<12x256xf32, #tpu.memory_space<vmem>>, %arg1: memref<9x1x256xf32, #tpu.memory_space<vmem>>, %arg2: memref<9x32x12xf32, #tpu.memory_space<vmem>>, %arg3: memref<32x1xf32, #tpu.memory_space<vmem>>, %arg4: memref<9x64x32xf32, #tpu.memory_space<vmem>>, %arg5: memref<64x1xf32, #tpu.memory_space<vmem>>, %arg6: memref<1x1xf32, #tpu.memory_space<vmem>>) attributes {dimension_semantics = [], scalar_prefetch = 0 : i64, scratch_operands = 0 : i64, tpu.core_type = #tpu.core_type<tc>} {
    %c0 = arith.constant 0 : index
    %c0_0 = arith.constant 0 : index
    %c0_1 = arith.constant 0 : index
    %0 = vector.load %arg1[%c0, %c0_0, %c0_1] : memref<9x1x256xf32, #tpu.memory_space<vmem>>, vector<1x1x256xf32>
    %1 = vector.shape_cast %0 : vector<1x1x256xf32> to vector<1x256xf32>
    %c1 = arith.constant 1 : index
    %c0_2 = arith.constant 0 : index
    %c0_3 = arith.constant 0 : index
    %2 = vector.load %arg1[%c1, %c0_2, %c0_3] : memref<9x1x256xf32, #tpu.memory_space<vmem>>, vector<1x1x256xf32>
    %3 = vector.shape_cast %2 : vector<1x1x256xf32> to vector<1x256xf32>
    %c2 = arith.constant 2 : index
    %c0_4 = arith.constant 0 : index
    %c0_5 = arith.constant 0 : index
    %4 = vector.load %arg1[%c2, %c0_4, %c0_5] : memref<9x1x256xf32, #tpu.memory_space<vmem>>, vector<1x1x256xf32>
    %5 = vector.shape_cast %4 : vector<1x1x256xf32> to vector<1x256xf32>
    %c3 = arith.constant 3 : index
    %c0_6 = arith.constant 0 : index
    %c0_7 = arith.constant 0 : index
    %6 = vector.load %arg1[%c3, %c0_6, %c0_7] : memref<9x1x256xf32, #tpu.memory_space<vmem>>, vector<1x1x256xf32>
    %7 = vector.shape_cast %6 : vector<1x1x256xf32> to vector<1x256xf32>
    %c5 = arith.constant 5 : index
    %c0_8 = arith.constant 0 : index
    %c0_9 = arith.constant 0 : index
    %8 = vector.load %arg1[%c5, %c0_8, %c0_9] : memref<9x1x256xf32, #tpu.memory_space<vmem>>, vector<1x1x256xf32>
    %9 = vector.shape_cast %8 : vector<1x1x256xf32> to vector<1x256xf32>
    %c6 = arith.constant 6 : index
    %c0_10 = arith.constant 0 : index
    %c0_11 = arith.constant 0 : index
    %10 = vector.load %arg1[%c6, %c0_10, %c0_11] : memref<9x1x256xf32, #tpu.memory_space<vmem>>, vector<1x1x256xf32>
    %11 = vector.shape_cast %10 : vector<1x1x256xf32> to vector<1x256xf32>
    %c7 = arith.constant 7 : index
    %c0_12 = arith.constant 0 : index
    %c0_13 = arith.constant 0 : index
    %12 = vector.load %arg1[%c7, %c0_12, %c0_13] : memref<9x1x256xf32, #tpu.memory_space<vmem>>, vector<1x1x256xf32>
    %13 = vector.shape_cast %12 : vector<1x1x256xf32> to vector<1x256xf32>
    %c8 = arith.constant 8 : index
    %c0_14 = arith.constant 0 : index
    %c0_15 = arith.constant 0 : index
    %14 = vector.load %arg1[%c8, %c0_14, %c0_15] : memref<9x1x256xf32, #tpu.memory_space<vmem>>, vector<1x1x256xf32>
    %15 = vector.shape_cast %14 : vector<1x1x256xf32> to vector<1x256xf32>
    %c0_16 = arith.constant 0 : index
    %c0_17 = arith.constant 0 : index
    %16 = vector.load %arg0[%c0_16, %c0_17] : memref<12x256xf32, #tpu.memory_space<vmem>>, vector<12x256xf32>
    %cst = arith.constant 0.000000e+00 : f32
    %17 = vector.broadcast %cst : f32 to vector<32x256xf32>
    %c17_i32 = arith.constant 17 : i32
    %18 = tpu.dynamic_rotate %16 by %c17_i32 dim 1 : vector<12x256xf32>, i32 -> vector<12x256xf32>
    %19 = vector.broadcast %1 : vector<1x256xf32> to vector<12x256xf32>
    %20 = arith.mulf %18, %19 : vector<12x256xf32>
    %c0_18 = arith.constant 0 : index
    %c0_19 = arith.constant 0 : index
    %c0_20 = arith.constant 0 : index
    %21 = vector.load %arg2[%c0_18, %c0_19, %c0_20] : memref<9x32x12xf32, #tpu.memory_space<vmem>>, vector<1x32x12xf32>
    %22 = vector.shape_cast %21 : vector<1x32x12xf32> to vector<32x12xf32>
    %cst_21 = arith.constant dense<0.000000e+00> : vector<32x256xf32>
    %23 = tpu.matmul %22, %20, %cst_21 {dimension_numbers = #tpu.dot_dimension_numbers<[1], [0], [0], [1], [0, 0, 1, 1], [], []>} : vector<32x12xf32>, vector<12x256xf32>, vector<32x256xf32> -> vector<32x256xf32>
    %24 = arith.addf %17, %23 : vector<32x256xf32>
    %c16_i32 = arith.constant 16 : i32
    %25 = tpu.dynamic_rotate %16 by %c16_i32 dim 1 : vector<12x256xf32>, i32 -> vector<12x256xf32>
    %26 = vector.broadcast %3 : vector<1x256xf32> to vector<12x256xf32>
    %27 = arith.mulf %25, %26 : vector<12x256xf32>
    %c1_22 = arith.constant 1 : index
    %c0_23 = arith.constant 0 : index
    %c0_24 = arith.constant 0 : index
    %28 = vector.load %arg2[%c1_22, %c0_23, %c0_24] : memref<9x32x12xf32, #tpu.memory_space<vmem>>, vector<1x32x12xf32>
    %29 = vector.shape_cast %28 : vector<1x32x12xf32> to vector<32x12xf32>
    %cst_25 = arith.constant dense<0.000000e+00> : vector<32x256xf32>
    %30 = tpu.matmul %29, %27, %cst_25 {dimension_numbers = #tpu.dot_dimension_numbers<[1], [0], [0], [1], [0, 0, 1, 1], [], []>} : vector<32x12xf32>, vector<12x256xf32>, vector<32x256xf32> -> vector<32x256xf32>
    %31 = arith.addf %24, %30 : vector<32x256xf32>
    %c15_i32 = arith.constant 15 : i32
    %32 = tpu.dynamic_rotate %16 by %c15_i32 dim 1 : vector<12x256xf32>, i32 -> vector<12x256xf32>
    %33 = vector.broadcast %5 : vector<1x256xf32> to vector<12x256xf32>
    %34 = arith.mulf %32, %33 : vector<12x256xf32>
    %c2_26 = arith.constant 2 : index
    %c0_27 = arith.constant 0 : index
    %c0_28 = arith.constant 0 : index
    %35 = vector.load %arg2[%c2_26, %c0_27, %c0_28] : memref<9x32x12xf32, #tpu.memory_space<vmem>>, vector<1x32x12xf32>
    %36 = vector.shape_cast %35 : vector<1x32x12xf32> to vector<32x12xf32>
    %cst_29 = arith.constant dense<0.000000e+00> : vector<32x256xf32>
    %37 = tpu.matmul %36, %34, %cst_29 {dimension_numbers = #tpu.dot_dimension_numbers<[1], [0], [0], [1], [0, 0, 1, 1], [], []>} : vector<32x12xf32>, vector<12x256xf32>, vector<32x256xf32> -> vector<32x256xf32>
    %38 = arith.addf %31, %37 : vector<32x256xf32>
    %c1_i32 = arith.constant 1 : i32
    %39 = tpu.dynamic_rotate %16 by %c1_i32 dim 1 : vector<12x256xf32>, i32 -> vector<12x256xf32>
    %40 = vector.broadcast %7 : vector<1x256xf32> to vector<12x256xf32>
    %41 = arith.mulf %39, %40 : vector<12x256xf32>
    %c3_30 = arith.constant 3 : index
    %c0_31 = arith.constant 0 : index
    %c0_32 = arith.constant 0 : index
    %42 = vector.load %arg2[%c3_30, %c0_31, %c0_32] : memref<9x32x12xf32, #tpu.memory_space<vmem>>, vector<1x32x12xf32>
    %43 = vector.shape_cast %42 : vector<1x32x12xf32> to vector<32x12xf32>
    %cst_33 = arith.constant dense<0.000000e+00> : vector<32x256xf32>
    %44 = tpu.matmul %43, %41, %cst_33 {dimension_numbers = #tpu.dot_dimension_numbers<[1], [0], [0], [1], [0, 0, 1, 1], [], []>} : vector<32x12xf32>, vector<12x256xf32>, vector<32x256xf32> -> vector<32x256xf32>
    %45 = arith.addf %38, %44 : vector<32x256xf32>
    %c4 = arith.constant 4 : index
    %c0_34 = arith.constant 0 : index
    %c0_35 = arith.constant 0 : index
    %46 = vector.load %arg2[%c4, %c0_34, %c0_35] : memref<9x32x12xf32, #tpu.memory_space<vmem>>, vector<1x32x12xf32>
    %47 = vector.shape_cast %46 : vector<1x32x12xf32> to vector<32x12xf32>
    %cst_36 = arith.constant dense<0.000000e+00> : vector<32x256xf32>
    %48 = tpu.matmul %47, %16, %cst_36 {dimension_numbers = #tpu.dot_dimension_numbers<[1], [0], [0], [1], [0, 0, 1, 1], [], []>} : vector<32x12xf32>, vector<12x256xf32>, vector<32x256xf32> -> vector<32x256xf32>
    %49 = arith.addf %45, %48 : vector<32x256xf32>
    %c255_i32 = arith.constant 255 : i32
    %50 = tpu.dynamic_rotate %16 by %c255_i32 dim 1 : vector<12x256xf32>, i32 -> vector<12x256xf32>
    %51 = vector.broadcast %9 : vector<1x256xf32> to vector<12x256xf32>
    %52 = arith.mulf %50, %51 : vector<12x256xf32>
    %c5_37 = arith.constant 5 : index
    %c0_38 = arith.constant 0 : index
    %c0_39 = arith.constant 0 : index
    %53 = vector.load %arg2[%c5_37, %c0_38, %c0_39] : memref<9x32x12xf32, #tpu.memory_space<vmem>>, vector<1x32x12xf32>
    %54 = vector.shape_cast %53 : vector<1x32x12xf32> to vector<32x12xf32>
    %cst_40 = arith.constant dense<0.000000e+00> : vector<32x256xf32>
    %55 = tpu.matmul %54, %52, %cst_40 {dimension_numbers = #tpu.dot_dimension_numbers<[1], [0], [0], [1], [0, 0, 1, 1], [], []>} : vector<32x12xf32>, vector<12x256xf32>, vector<32x256xf32> -> vector<32x256xf32>
    %56 = arith.addf %49, %55 : vector<32x256xf32>
    %c241_i32 = arith.constant 241 : i32
    %57 = tpu.dynamic_rotate %16 by %c241_i32 dim 1 : vector<12x256xf32>, i32 -> vector<12x256xf32>
    %58 = vector.broadcast %11 : vector<1x256xf32> to vector<12x256xf32>
    %59 = arith.mulf %57, %58 : vector<12x256xf32>
    %c6_41 = arith.constant 6 : index
    %c0_42 = arith.constant 0 : index
    %c0_43 = arith.constant 0 : index
    %60 = vector.load %arg2[%c6_41, %c0_42, %c0_43] : memref<9x32x12xf32, #tpu.memory_space<vmem>>, vector<1x32x12xf32>
    %61 = vector.shape_cast %60 : vector<1x32x12xf32> to vector<32x12xf32>
    %cst_44 = arith.constant dense<0.000000e+00> : vector<32x256xf32>
    %62 = tpu.matmul %61, %59, %cst_44 {dimension_numbers = #tpu.dot_dimension_numbers<[1], [0], [0], [1], [0, 0, 1, 1], [], []>} : vector<32x12xf32>, vector<12x256xf32>, vector<32x256xf32> -> vector<32x256xf32>
    %63 = arith.addf %56, %62 : vector<32x256xf32>
    %c240_i32 = arith.constant 240 : i32
    %64 = tpu.dynamic_rotate %16 by %c240_i32 dim 1 : vector<12x256xf32>, i32 -> vector<12x256xf32>
    %65 = vector.broadcast %13 : vector<1x256xf32> to vector<12x256xf32>
    %66 = arith.mulf %64, %65 : vector<12x256xf32>
    %c7_45 = arith.constant 7 : index
    %c0_46 = arith.constant 0 : index
    %c0_47 = arith.constant 0 : index
    %67 = vector.load %arg2[%c7_45, %c0_46, %c0_47] : memref<9x32x12xf32, #tpu.memory_space<vmem>>, vector<1x32x12xf32>
    %68 = vector.shape_cast %67 : vector<1x32x12xf32> to vector<32x12xf32>
    %cst_48 = arith.constant dense<0.000000e+00> : vector<32x256xf32>
    %69 = tpu.matmul %68, %66, %cst_48 {dimension_numbers = #tpu.dot_dimension_numbers<[1], [0], [0], [1], [0, 0, 1, 1], [], []>} : vector<32x12xf32>, vector<12x256xf32>, vector<32x256xf32> -> vector<32x256xf32>
    %70 = arith.addf %63, %69 : vector<32x256xf32>
    %c239_i32 = arith.constant 239 : i32
    %71 = tpu.dynamic_rotate %16 by %c239_i32 dim 1 : vector<12x256xf32>, i32 -> vector<12x256xf32>
    %72 = vector.broadcast %15 : vector<1x256xf32> to vector<12x256xf32>
    %73 = arith.mulf %71, %72 : vector<12x256xf32>
    %c8_49 = arith.constant 8 : index
    %c0_50 = arith.constant 0 : index
    %c0_51 = arith.constant 0 : index
    %74 = vector.load %arg2[%c8_49, %c0_50, %c0_51] : memref<9x32x12xf32, #tpu.memory_space<vmem>>, vector<1x32x12xf32>
    %75 = vector.shape_cast %74 : vector<1x32x12xf32> to vector<32x12xf32>
    %cst_52 = arith.constant dense<0.000000e+00> : vector<32x256xf32>
    %76 = tpu.matmul %75, %73, %cst_52 {dimension_numbers = #tpu.dot_dimension_numbers<[1], [0], [0], [1], [0, 0, 1, 1], [], []>} : vector<32x12xf32>, vector<12x256xf32>, vector<32x256xf32> -> vector<32x256xf32>
    %77 = arith.addf %70, %76 : vector<32x256xf32>
    %c0_53 = arith.constant 0 : index
    %c0_54 = arith.constant 0 : index
    %78 = vector.load %arg3[%c0_53, %c0_54] : memref<32x1xf32, #tpu.memory_space<vmem>>, vector<32x1xf32>
    %79 = vector.broadcast %78 : vector<32x1xf32> to vector<32x256xf32>
    %80 = arith.addf %77, %79 : vector<32x256xf32>
    %cst_55 = arith.constant 0.000000e+00 : f32
    %81 = vector.broadcast %cst_55 : f32 to vector<32x256xf32>
    %82 = arith.maximumf %80, %81 : vector<32x256xf32>
    %cst_56 = arith.constant 0.000000e+00 : f32
    %83 = vector.broadcast %cst_56 : f32 to vector<64x256xf32>
    %c17_i32_57 = arith.constant 17 : i32
    %84 = tpu.dynamic_rotate %82 by %c17_i32_57 dim 1 : vector<32x256xf32>, i32 -> vector<32x256xf32>
    %85 = vector.broadcast %1 : vector<1x256xf32> to vector<32x256xf32>
    %86 = arith.mulf %84, %85 : vector<32x256xf32>
    %c0_58 = arith.constant 0 : index
    %c0_59 = arith.constant 0 : index
    %c0_60 = arith.constant 0 : index
    %87 = vector.load %arg4[%c0_58, %c0_59, %c0_60] : memref<9x64x32xf32, #tpu.memory_space<vmem>>, vector<1x64x32xf32>
    %88 = vector.shape_cast %87 : vector<1x64x32xf32> to vector<64x32xf32>
    %cst_61 = arith.constant dense<0.000000e+00> : vector<64x256xf32>
    %89 = tpu.matmul %88, %86, %cst_61 {dimension_numbers = #tpu.dot_dimension_numbers<[1], [0], [0], [1], [0, 0, 1, 1], [], []>} : vector<64x32xf32>, vector<32x256xf32>, vector<64x256xf32> -> vector<64x256xf32>
    %90 = arith.addf %83, %89 : vector<64x256xf32>
    %c16_i32_62 = arith.constant 16 : i32
    %91 = tpu.dynamic_rotate %82 by %c16_i32_62 dim 1 : vector<32x256xf32>, i32 -> vector<32x256xf32>
    %92 = vector.broadcast %3 : vector<1x256xf32> to vector<32x256xf32>
    %93 = arith.mulf %91, %92 : vector<32x256xf32>
    %c1_63 = arith.constant 1 : index
    %c0_64 = arith.constant 0 : index
    %c0_65 = arith.constant 0 : index
    %94 = vector.load %arg4[%c1_63, %c0_64, %c0_65] : memref<9x64x32xf32, #tpu.memory_space<vmem>>, vector<1x64x32xf32>
    %95 = vector.shape_cast %94 : vector<1x64x32xf32> to vector<64x32xf32>
    %cst_66 = arith.constant dense<0.000000e+00> : vector<64x256xf32>
    %96 = tpu.matmul %95, %93, %cst_66 {dimension_numbers = #tpu.dot_dimension_numbers<[1], [0], [0], [1], [0, 0, 1, 1], [], []>} : vector<64x32xf32>, vector<32x256xf32>, vector<64x256xf32> -> vector<64x256xf32>
    %97 = arith.addf %90, %96 : vector<64x256xf32>
    %c15_i32_67 = arith.constant 15 : i32
    %98 = tpu.dynamic_rotate %82 by %c15_i32_67 dim 1 : vector<32x256xf32>, i32 -> vector<32x256xf32>
    %99 = vector.broadcast %5 : vector<1x256xf32> to vector<32x256xf32>
    %100 = arith.mulf %98, %99 : vector<32x256xf32>
    %c2_68 = arith.constant 2 : index
    %c0_69 = arith.constant 0 : index
    %c0_70 = arith.constant 0 : index
    %101 = vector.load %arg4[%c2_68, %c0_69, %c0_70] : memref<9x64x32xf32, #tpu.memory_space<vmem>>, vector<1x64x32xf32>
    %102 = vector.shape_cast %101 : vector<1x64x32xf32> to vector<64x32xf32>
    %cst_71 = arith.constant dense<0.000000e+00> : vector<64x256xf32>
    %103 = tpu.matmul %102, %100, %cst_71 {dimension_numbers = #tpu.dot_dimension_numbers<[1], [0], [0], [1], [0, 0, 1, 1], [], []>} : vector<64x32xf32>, vector<32x256xf32>, vector<64x256xf32> -> vector<64x256xf32>
    %104 = arith.addf %97, %103 : vector<64x256xf32>
    %c1_i32_72 = arith.constant 1 : i32
    %105 = tpu.dynamic_rotate %82 by %c1_i32_72 dim 1 : vector<32x256xf32>, i32 -> vector<32x256xf32>
    %106 = vector.broadcast %7 : vector<1x256xf32> to vector<32x256xf32>
    %107 = arith.mulf %105, %106 : vector<32x256xf32>
    %c3_73 = arith.constant 3 : index
    %c0_74 = arith.constant 0 : index
    %c0_75 = arith.constant 0 : index
    %108 = vector.load %arg4[%c3_73, %c0_74, %c0_75] : memref<9x64x32xf32, #tpu.memory_space<vmem>>, vector<1x64x32xf32>
    %109 = vector.shape_cast %108 : vector<1x64x32xf32> to vector<64x32xf32>
    %cst_76 = arith.constant dense<0.000000e+00> : vector<64x256xf32>
    %110 = tpu.matmul %109, %107, %cst_76 {dimension_numbers = #tpu.dot_dimension_numbers<[1], [0], [0], [1], [0, 0, 1, 1], [], []>} : vector<64x32xf32>, vector<32x256xf32>, vector<64x256xf32> -> vector<64x256xf32>
    %111 = arith.addf %104, %110 : vector<64x256xf32>
    %c4_77 = arith.constant 4 : index
    %c0_78 = arith.constant 0 : index
    %c0_79 = arith.constant 0 : index
    %112 = vector.load %arg4[%c4_77, %c0_78, %c0_79] : memref<9x64x32xf32, #tpu.memory_space<vmem>>, vector<1x64x32xf32>
    %113 = vector.shape_cast %112 : vector<1x64x32xf32> to vector<64x32xf32>
    %cst_80 = arith.constant dense<0.000000e+00> : vector<64x256xf32>
    %114 = tpu.matmul %113, %82, %cst_80 {dimension_numbers = #tpu.dot_dimension_numbers<[1], [0], [0], [1], [0, 0, 1, 1], [], []>} : vector<64x32xf32>, vector<32x256xf32>, vector<64x256xf32> -> vector<64x256xf32>
    %115 = arith.addf %111, %114 : vector<64x256xf32>
    %c255_i32_81 = arith.constant 255 : i32
    %116 = tpu.dynamic_rotate %82 by %c255_i32_81 dim 1 : vector<32x256xf32>, i32 -> vector<32x256xf32>
    %117 = vector.broadcast %9 : vector<1x256xf32> to vector<32x256xf32>
    %118 = arith.mulf %116, %117 : vector<32x256xf32>
    %c5_82 = arith.constant 5 : index
    %c0_83 = arith.constant 0 : index
    %c0_84 = arith.constant 0 : index
    %119 = vector.load %arg4[%c5_82, %c0_83, %c0_84] : memref<9x64x32xf32, #tpu.memory_space<vmem>>, vector<1x64x32xf32>
    %120 = vector.shape_cast %119 : vector<1x64x32xf32> to vector<64x32xf32>
    %cst_85 = arith.constant dense<0.000000e+00> : vector<64x256xf32>
    %121 = tpu.matmul %120, %118, %cst_85 {dimension_numbers = #tpu.dot_dimension_numbers<[1], [0], [0], [1], [0, 0, 1, 1], [], []>} : vector<64x32xf32>, vector<32x256xf32>, vector<64x256xf32> -> vector<64x256xf32>
    %122 = arith.addf %115, %121 : vector<64x256xf32>
    %c241_i32_86 = arith.constant 241 : i32
    %123 = tpu.dynamic_rotate %82 by %c241_i32_86 dim 1 : vector<32x256xf32>, i32 -> vector<32x256xf32>
    %124 = vector.broadcast %11 : vector<1x256xf32> to vector<32x256xf32>
    %125 = arith.mulf %123, %124 : vector<32x256xf32>
    %c6_87 = arith.constant 6 : index
    %c0_88 = arith.constant 0 : index
    %c0_89 = arith.constant 0 : index
    %126 = vector.load %arg4[%c6_87, %c0_88, %c0_89] : memref<9x64x32xf32, #tpu.memory_space<vmem>>, vector<1x64x32xf32>
    %127 = vector.shape_cast %126 : vector<1x64x32xf32> to vector<64x32xf32>
    %cst_90 = arith.constant dense<0.000000e+00> : vector<64x256xf32>
    %128 = tpu.matmul %127, %125, %cst_90 {dimension_numbers = #tpu.dot_dimension_numbers<[1], [0], [0], [1], [0, 0, 1, 1], [], []>} : vector<64x32xf32>, vector<32x256xf32>, vector<64x256xf32> -> vector<64x256xf32>
    %129 = arith.addf %122, %128 : vector<64x256xf32>
    %c240_i32_91 = arith.constant 240 : i32
    %130 = tpu.dynamic_rotate %82 by %c240_i32_91 dim 1 : vector<32x256xf32>, i32 -> vector<32x256xf32>
    %131 = vector.broadcast %13 : vector<1x256xf32> to vector<32x256xf32>
    %132 = arith.mulf %130, %131 : vector<32x256xf32>
    %c7_92 = arith.constant 7 : index
    %c0_93 = arith.constant 0 : index
    %c0_94 = arith.constant 0 : index
    %133 = vector.load %arg4[%c7_92, %c0_93, %c0_94] : memref<9x64x32xf32, #tpu.memory_space<vmem>>, vector<1x64x32xf32>
    %134 = vector.shape_cast %133 : vector<1x64x32xf32> to vector<64x32xf32>
    %cst_95 = arith.constant dense<0.000000e+00> : vector<64x256xf32>
    %135 = tpu.matmul %134, %132, %cst_95 {dimension_numbers = #tpu.dot_dimension_numbers<[1], [0], [0], [1], [0, 0, 1, 1], [], []>} : vector<64x32xf32>, vector<32x256xf32>, vector<64x256xf32> -> vector<64x256xf32>
    %136 = arith.addf %129, %135 : vector<64x256xf32>
    %c239_i32_96 = arith.constant 239 : i32
    %137 = tpu.dynamic_rotate %82 by %c239_i32_96 dim 1 : vector<32x256xf32>, i32 -> vector<32x256xf32>
    %138 = vector.broadcast %15 : vector<1x256xf32> to vector<32x256xf32>
    %139 = arith.mulf %137, %138 : vector<32x256xf32>
    %c8_97 = arith.constant 8 : index
    %c0_98 = arith.constant 0 : index
    %c0_99 = arith.constant 0 : index
    %140 = vector.load %arg4[%c8_97, %c0_98, %c0_99] : memref<9x64x32xf32, #tpu.memory_space<vmem>>, vector<1x64x32xf32>
    %141 = vector.shape_cast %140 : vector<1x64x32xf32> to vector<64x32xf32>
    %cst_100 = arith.constant dense<0.000000e+00> : vector<64x256xf32>
    %142 = tpu.matmul %141, %139, %cst_100 {dimension_numbers = #tpu.dot_dimension_numbers<[1], [0], [0], [1], [0, 0, 1, 1], [], []>} : vector<64x32xf32>, vector<32x256xf32>, vector<64x256xf32> -> vector<64x256xf32>
    %143 = arith.addf %136, %142 : vector<64x256xf32>
    %c0_101 = arith.constant 0 : index
    %c0_102 = arith.constant 0 : index
    %144 = vector.load %arg5[%c0_101, %c0_102] : memref<64x1xf32, #tpu.memory_space<vmem>>, vector<64x1xf32>
    %145 = vector.broadcast %144 : vector<64x1xf32> to vector<64x256xf32>
    %146 = arith.addf %143, %145 : vector<64x256xf32>
    %cst_103 = arith.constant 0.000000e+00 : f32
    %147 = vector.broadcast %cst_103 : f32 to vector<64x256xf32>
    %148 = arith.maximumf %146, %147 : vector<64x256xf32>
    %149 = vector.extract_strided_slice %148 {offsets = [0, 0], sizes = [32, 256], strides = [1, 1]} : vector<64x256xf32> to vector<32x256xf32>
    %150 = vector.extract_strided_slice %148 {offsets = [32, 0], sizes = [32, 256], strides = [1, 1]} : vector<64x256xf32> to vector<32x256xf32>
    %151 = tpu.iota {dimensions = array<i32: 0>} : vector<16x32xi32>
    %152 = tpu.iota {dimensions = array<i32: 1>} : vector<16x32xi32>
    %cst_104 = arith.constant 0.000000e+00 : f32
    %153 = vector.broadcast %cst_104 : f32 to vector<16x16xf32>
    %cst_105 = arith.constant 0.000000e+00 : f32
    %154 = vector.broadcast %cst_105 : f32 to vector<16x16xf32>
    %c2_i32 = arith.constant 2 : i32
    %155 = vector.broadcast %c2_i32 : i32 to vector<16x32xi32>
    %156 = arith.muli %151, %155 : vector<16x32xi32>
    %c0_i32 = arith.constant 0 : i32
    %157 = vector.broadcast %c0_i32 : i32 to vector<16x32xi32>
    %158 = arith.addi %156, %157 : vector<16x32xi32>
    %159 = arith.cmpi eq, %152, %158 : vector<16x32xi32>
    %160 = arith.extui %159 : vector<16x32xi1> to vector<16x32xi32>
    %161 = arith.sitofp %160 : vector<16x32xi32> to vector<16x32xf32>
    %cst_106 = arith.constant dense<0.000000e+00> : vector<16x256xf32>
    %162 = tpu.matmul %161, %149, %cst_106 {dimension_numbers = #tpu.dot_dimension_numbers<[1], [0], [0], [1], [0, 0, 1, 1], [], []>} : vector<16x32xf32>, vector<32x256xf32>, vector<16x256xf32> -> vector<16x256xf32>
    %cst_107 = arith.constant dense<0.000000e+00> : vector<16x256xf32>
    %163 = tpu.matmul %161, %150, %cst_107 {dimension_numbers = #tpu.dot_dimension_numbers<[1], [0], [0], [1], [0, 0, 1, 1], [], []>} : vector<16x32xf32>, vector<32x256xf32>, vector<16x256xf32> -> vector<16x256xf32>
    %cst_108 = arith.constant dense<0.000000e+00> : vector<16x16xf32>
    %164 = tpu.matmul %162, %162, %cst_108 {dimension_numbers = #tpu.dot_dimension_numbers<[1], [1], [0], [0], [0, 0, 1, 0], [], []>} : vector<16x256xf32>, vector<16x256xf32>, vector<16x16xf32> -> vector<16x16xf32>
    %165 = arith.addf %153, %164 : vector<16x16xf32>
    %cst_109 = arith.constant dense<0.000000e+00> : vector<16x16xf32>
    %166 = tpu.matmul %163, %163, %cst_109 {dimension_numbers = #tpu.dot_dimension_numbers<[1], [1], [0], [0], [0, 0, 1, 0], [], []>} : vector<16x256xf32>, vector<16x256xf32>, vector<16x16xf32> -> vector<16x16xf32>
    %167 = arith.addf %154, %166 : vector<16x16xf32>
    %c2_i32_110 = arith.constant 2 : i32
    %168 = vector.broadcast %c2_i32_110 : i32 to vector<16x32xi32>
    %169 = arith.muli %151, %168 : vector<16x32xi32>
    %c1_i32_111 = arith.constant 1 : i32
    %170 = vector.broadcast %c1_i32_111 : i32 to vector<16x32xi32>
    %171 = arith.addi %169, %170 : vector<16x32xi32>
    %172 = arith.cmpi eq, %152, %171 : vector<16x32xi32>
    %173 = arith.extui %172 : vector<16x32xi1> to vector<16x32xi32>
    %174 = arith.sitofp %173 : vector<16x32xi32> to vector<16x32xf32>
    %cst_112 = arith.constant dense<0.000000e+00> : vector<16x256xf32>
    %175 = tpu.matmul %174, %149, %cst_112 {dimension_numbers = #tpu.dot_dimension_numbers<[1], [0], [0], [1], [0, 0, 1, 1], [], []>} : vector<16x32xf32>, vector<32x256xf32>, vector<16x256xf32> -> vector<16x256xf32>
    %cst_113 = arith.constant dense<0.000000e+00> : vector<16x256xf32>
    %176 = tpu.matmul %174, %150, %cst_113 {dimension_numbers = #tpu.dot_dimension_numbers<[1], [0], [0], [1], [0, 0, 1, 1], [], []>} : vector<16x32xf32>, vector<32x256xf32>, vector<16x256xf32> -> vector<16x256xf32>
    %cst_114 = arith.constant dense<0.000000e+00> : vector<16x16xf32>
    %177 = tpu.matmul %175, %175, %cst_114 {dimension_numbers = #tpu.dot_dimension_numbers<[1], [1], [0], [0], [0, 0, 1, 0], [], []>} : vector<16x256xf32>, vector<16x256xf32>, vector<16x16xf32> -> vector<16x16xf32>
    %178 = arith.addf %165, %177 : vector<16x16xf32>
    %cst_115 = arith.constant dense<0.000000e+00> : vector<16x16xf32>
    %179 = tpu.matmul %176, %176, %cst_115 {dimension_numbers = #tpu.dot_dimension_numbers<[1], [1], [0], [0], [0, 0, 1, 0], [], []>} : vector<16x256xf32>, vector<16x256xf32>, vector<16x16xf32> -> vector<16x16xf32>
    %180 = arith.addf %167, %179 : vector<16x16xf32>
    %181 = arith.subf %178, %180 : vector<16x16xf32>
    %182 = arith.mulf %181, %181 : vector<16x16xf32>
    %183 = vector.shape_cast %182 : vector<16x16xf32> to vector<1x16x16xf32>
    %cst_116 = arith.constant dense<0.000000e+00> : vector<1xf32>
    %184 = vector.multi_reduction <add>, %183, %cst_116 [1, 2] : vector<1x16x16xf32> to vector<1xf32>
    %185 = vector.shape_cast %184 : vector<1xf32> to vector<1x1x1xf32>
    %186 = vector.extract %185[0, 0, 0] : f32 from vector<1x1x1xf32>
    %cst_117 = arith.constant 2.560000e+02 : f32
    %187 = arith.divf %186, %cst_117 : f32
    %188 = vector.broadcast %187 : f32 to vector<1x1xf32>
    %c0_118 = arith.constant 0 : index
    %c0_119 = arith.constant 0 : index
    %189 = vector.load %arg6[%c0_118, %c0_119] : memref<1x1xf32, #tpu.memory_space<vmem>>, vector<1x1xf32>
    tpu.vector_store %arg6[%c0_118, %c0_119], %188 {strides = array<i32>} : memref<1x1xf32, #tpu.memory_space<vmem>>, vector<1x1xf32>,
    return
  }
}

</mosaic_0001>

<bundles_post_ra>
// kernel: tile.14
= control target key start
LH: loop header
LB: loop body
LE: loop exit
PB: predicated region body
PF: predicated region fallthrough
CT: control target
= control target key end

     0   :  { %s22_s0 = inlined_call_operand.vmem [shape: f32[16], index: 0, kind: input, shape index: {}]   ;;  %s23_s1 = inlined_call_operand.vmem [shape: f32[4,16], index: 1, kind: output, shape index: {}]  }
   0x1   :  { %v4_v0 = vld [vmem:[%s22_s0] ss:$0 sm:$0xff] }
   0x2   :  { %5 = vst [vmem:[%s23_s1] sm:$0xf] %v4_v0 }

// kernel: tile.1
= control target key start
LH: loop header
LB: loop body
LE: loop exit
PB: predicated region body
PF: predicated region fallthrough
CT: control target
= control target key end

     0   :  { %s176_s8 = smov 127   ;;  %s177_s9 = smov 123   ;;  %vm7_vm0 = vcmask 7168   ;;  %s331_s0 = inlined_call_operand.vmem [shape: f32[4,16], index: 0, kind: input, shape index: {}]   ;;  %s332_s1 = inlined_call_operand.vmem [shape: f32[64,1], index: 1, kind: output, shape index: {}]  }
   0x1   :  { %v4_v0 = vld [vmem:[%s331_s0] sm:$0xf]  ;;  %s175_s0 = smov 125   ;;  %s178_s10 = smov 124  }
   0x2   :  { %5 = vst [vmem:[#allocation0] sm:$0xf] %v4_v0  ;;  %s179_s11 = smov 126   ;;  %s180_s12 = smov 122  }
   0x3   :  { %s181_s13 = smov 120   ;;  %s182_s14 = smov 121  }
   0x4   :  { %s183_s15 = smov 119   ;;  %s184_s16 = smov 117  }
   0x5   :  { %s185_s17 = smov 118   ;;  %s186_s18 = smov 116  }
   0x6   :  { %s187_s19 = smov 114   ;;  %s188_s20 = smov 115  }
   0x7   :  { %s189_s21 = smov 113  }
   0x9   :  { %v26_v1 = vld [vmem:[#allocation0] sm:$0xf]  }
   0xa   :  { %v10_v2 = vld [vmem:[#allocation0] sm:$0xf]   ;;  %27 = vrot.lane.b32.xlu1 %v26_v1, %s175_s0 }
   0xb   :  { %11 = vrot.lane.b32.xlu0 %v10_v2, %s176_s8  ;;  %v42_v3 = vld [vmem:[#allocation0] sm:$0xf]  }
   0xc   :  { %43 = vrot.lane.b32.xlu2 %v42_v3, %s177_s9  ;;  %v34_v4 = vld [vmem:[#allocation0] sm:$0xf]  }
   0xd   :  { %v18_v5 = vld [vmem:[#allocation0] sm:$0xf]  }
   0xe   :  { %v50_v6 = vld [vmem:[#allocation0] sm:$0xf]  }
   0xf   :  { %v66_v7 = vld [vmem:[#allocation0] sm:$0xf]  }
  0x10   :  { %v58_v8 = vld [vmem:[#allocation0] sm:$0xf]  }
  0x11   :  { %v74_v9 = vld [vmem:[#allocation0] sm:$0xf]  }
  0x12   :  { %35 = vrot.lane.b32.xlu1 %v34_v4, %s178_s10  ;;  %v90_v10 = vld [vmem:[#allocation0] sm:$0xf]  }
  0x13   :  { %19 = vrot.lane.b32.xlu0 %v18_v5, %s179_s11  ;;  %v82_v11 = vld [vmem:[#allocation0] sm:$0xf]  }
  0x14   :  { %51 = vrot.lane.b32.xlu2 %v50_v6, %s180_s12  ;;  %v98_v12 = vld [vmem:[#allocation0] sm:$0xf]  }
  0x15   :  { %v114_v13 = vld [vmem:[#allocation0] sm:$0xf]  }
  0x16   :  { %v106_v14 = vld [vmem:[#allocation0] sm:$0xf]  }
  0x17   :  { %v122_v15 = vld [vmem:[#allocation0] sm:$0xf]  }
  0x18   :  { %v6_v22 = vld [vmem:[#allocation0] sm:$0xf]  }
  0x19   :  { %8 = vst.msk [vmem:[%s332_s1] ss:$16 sm:$0x3] %vm7_vm0, %v6_v22  }
  0x1a   :  { %67 = vrot.lane.b32.xlu1 %v66_v7, %s181_s13  ;;  %9 = vst.msk [vmem:[%s332_s1] ss:$16 sm:$0xc] %vm7_vm0, %v6_v22  }
  0x1b   :  { %59 = vrot.lane.b32.xlu0 %v58_v8, %s182_s14 }
  0x1c   :  { %75 = vrot.lane.b32.xlu2 %v74_v9, %s183_s15 }
  0x22   :  { %91 = vrot.lane.b32.xlu1 %v90_v10, %s184_s16 }
  0x23   :  { %83 = vrot.lane.b32.xlu0 %v82_v11, %s185_s17 }
  0x24   :  { %99 = vrot.lane.b32.xlu2 %v98_v12, %s186_s18 }
  0x2a   :  { %115 = vrot.lane.b32.xlu1 %v114_v13, %s187_s19 }
  0x2b   :  { %107 = vrot.lane.b32.xlu0 %v106_v14, %s188_s20 }
  0x2c   :  { %123 = vrot.lane.b32.xlu2 %v122_v15, %s189_s21 }
  0x66   :  { %v44_v16 = vpop.permute.xlu2 %43  }
  0x67   :  { %138 = vst.msk [vmem:[%s332_s1 + $0x5] ss:$16 sm:$0x3] %vm7_vm0, %v44_v16  }
  0x68   :  { %139 = vst.msk [vmem:[%s332_s1 + $0x5] ss:$16 sm:$0xc] %vm7_vm0, %v44_v16  }
  0x6e   :  { %v52_v17 = vpop.permute.xlu2 %51  }
  0x6f   :  { %140 = vst.msk [vmem:[%s332_s1 + $0x6] ss:$16 sm:$0x3] %vm7_vm0, %v52_v17  }
  0x70   :  { %141 = vst.msk [vmem:[%s332_s1 + $0x6] ss:$16 sm:$0xc] %vm7_vm0, %v52_v17  }
  0x76   :  { %v76_v18 = vpop.permute.xlu2 %75  }
  0x77   :  { %146 = vst.msk [vmem:[%s332_s1 + $0x9] ss:$16 sm:$0x3] %vm7_vm0, %v76_v18  }
  0x78   :  { %147 = vst.msk [vmem:[%s332_s1 + $0x9] ss:$16 sm:$0xc] %vm7_vm0, %v76_v18  }
  0x7c   :  { %v28_v19 = vpop.permute.xlu1 %27  }
  0x7d   :  { %v12_v20 = vpop.permute.xlu0 %11   ;;  %134 = vst.msk [vmem:[%s332_s1 + $0x3] ss:$16 sm:$0x3] %vm7_vm0, %v28_v19  }
  0x7e   :  { %135 = vst.msk [vmem:[%s332_s1 + $0x3] ss:$16 sm:$0xc] %vm7_vm0, %v28_v19   ;;  %v100_v21 = vpop.permute.xlu2 %99  }
  0x7f   :  { %130 = vst.msk [vmem:[%s332_s1 + $0x1] ss:$16 sm:$0x3] %vm7_vm0, %v12_v20  }
  0x80   :  { %131 = vst.msk [vmem:[%s332_s1 + $0x1] ss:$16 sm:$0xc] %vm7_vm0, %v12_v20  }
  0x81   :  { %152 = vst.msk [vmem:[%s332_s1 + $0xc] ss:$16 sm:$0x3] %vm7_vm0, %v100_v21  }
  0x82   :  { %153 = vst.msk [vmem:[%s332_s1 + $0xc] ss:$16 sm:$0xc] %vm7_vm0, %v100_v21  }
  0x84   :  { %v36_v23 = vpop.permute.xlu1 %35  }
  0x85   :  { %v20_v24 = vpop.permute.xlu0 %19   ;;  %136 = vst.msk [vmem:[%s332_s1 + $0x4] ss:$16 sm:$0x3] %vm7_vm0, %v36_v23  }
  0x86   :  { %137 = vst.msk [vmem:[%s332_s1 + $0x4] ss:$16 sm:$0xc] %vm7_vm0, %v36_v23   ;;  %v124_v25 = vpop.permute.xlu2 %123  }
  0x87   :  { %132 = vst.msk [vmem:[%s332_s1 + $0x2] ss:$16 sm:$0x3] %vm7_vm0, %v20_v24  }
  0x88   :  { %133 = vst.msk [vmem:[%s332_s1 + $0x2] ss:$16 sm:$0xc] %vm7_vm0, %v20_v24  }
  0x89   :  { %158 = vst.msk [vmem:[%s332_s1 + $0xf] ss:$16 sm:$0x3] %vm7_vm0, %v124_v25  }
  0x8a   :  { %159 = vst.msk [vmem:[%s332_s1 + $0xf] ss:$16 sm:$0xc] %vm7_vm0, %v124_v25  }
  0x8c   :  { %v68_v26 = vpop.permute.xlu1 %67  }
  0x8d   :  { %v60_v27 = vpop.permute.xlu0 %59   ;;  %144 = vst.msk [vmem:[%s332_s1 + $0x8] ss:$16 sm:$0x3] %vm7_vm0, %v68_v26  }
  0x8e   :  { %145 = vst.msk [vmem:[%s332_s1 + $0x8] ss:$16 sm:$0xc] %vm7_vm0, %v68_v26  }
  0x8f   :  { %142 = vst.msk [vmem:[%s332_s1 + $0x7] ss:$16 sm:$0x3] %vm7_vm0, %v60_v27  }
  0x90   :  { %143 = vst.msk [vmem:[%s332_s1 + $0x7] ss:$16 sm:$0xc] %vm7_vm0, %v60_v27  }
  0x94   :  { %v92_v28 = vpop.permute.xlu1 %91  }
  0x95   :  { %v84_v29 = vpop.permute.xlu0 %83   ;;  %150 = vst.msk [vmem:[%s332_s1 + $0xb] ss:$16 sm:$0x3] %vm7_vm0, %v92_v28  }
  0x96   :  { %151 = vst.msk [vmem:[%s332_s1 + $0xb] ss:$16 sm:$0xc] %vm7_vm0, %v92_v28  }
  0x97   :  { %148 = vst.msk [vmem:[%s332_s1 + $0xa] ss:$16 sm:$0x3] %vm7_vm0, %v84_v29  }
  0x98   :  { %149 = vst.msk [vmem:[%s332_s1 + $0xa] ss:$16 sm:$0xc] %vm7_vm0, %v84_v29  }
  0x9c   :  { %v116_v30 = vpop.permute.xlu1 %115  }
  0x9d   :  { %v108_v31 = vpop.permute.xlu0 %107   ;;  %156 = vst.msk [vmem:[%s332_s1 + $0xe] ss:$16 sm:$0x3] %vm7_vm0, %v116_v30  }
  0x9e   :  { %157 = vst.msk [vmem:[%s332_s1 + $0xe] ss:$16 sm:$0xc] %vm7_vm0, %v116_v30  }
  0x9f   :  { %154 = vst.msk [vmem:[%s332_s1 + $0xd] ss:$16 sm:$0x3] %vm7_vm0, %v108_v31  }
  0xa0   :  { %155 = vst.msk [vmem:[%s332_s1 + $0xd] ss:$16 sm:$0xc] %vm7_vm0, %v108_v31  }

// kernel: tile.10
= control target key start
LH: loop header
LB: loop body
LE: loop exit
PB: predicated region body
PF: predicated region fallthrough
CT: control target
= control target key end

     0   :  { %s22_s0 = inlined_call_operand.vmem [shape: f32[8], index: 0, kind: input, shape index: {}]   ;;  %s23_s1 = inlined_call_operand.vmem [shape: f32[4,8], index: 1, kind: output, shape index: {}]  }
   0x1   :  { %v4_v0 = vld [vmem:[%s22_s0] ss:$0 sm:$0xff] }
   0x2   :  { %5 = vst [vmem:[%s23_s1] sm:$0xf] %v4_v0 }

// kernel: tile.0
= control target key start
LH: loop header
LB: loop body
LE: loop exit
PB: predicated region body
PF: predicated region fallthrough
CT: control target
= control target key end

     0   :  { %s66_s8 = smov 125   ;;  %s67_s9 = smov 123   ;;  %vm7_vm0 = vcmask 7168   ;;  %s117_s0 = inlined_call_operand.vmem [shape: f32[4,8], index: 0, kind: input, shape index: {}]   ;;  %s118_s1 = inlined_call_operand.vmem [shape: f32[32,1], index: 1, kind: output, shape index: {}]  }
   0x1   :  { %v4_v0 = vld [vmem:[%s117_s0] sm:$0xf]  ;;  %s65_s0 = smov 127   ;;  %s68_s10 = smov 126  }
   0x2   :  { %5 = vst [vmem:[#allocation0] sm:$0xf] %v4_v0  ;;  %s69_s11 = smov 124   ;;  %s70_s12 = smov 122  }
   0x3   :  { %s71_s13 = smov 121  }
   0x9   :  { %v9_v1 = vld [vmem:[#allocation0] sm:$0xf]  }
   0xa   :  { %v21_v2 = vld [vmem:[#allocation0] sm:$0xf]   ;;  %10 = vrot.lane.b32.xlu0 %v9_v1, %s65_s0 }
   0xb   :  { %22 = vrot.lane.b32.xlu1 %v21_v2, %s66_s8  ;;  %v33_v3 = vld [vmem:[#allocation0] sm:$0xf]  }
   0xc   :  { %34 = vrot.lane.b32.xlu2 %v33_v3, %s67_s9  ;;  %v15_v4 = vld [vmem:[#allocation0] sm:$0xf]  }
   0xd   :  { %v27_v5 = vld [vmem:[#allocation0] sm:$0xf]  }
   0xe   :  { %v39_v6 = vld [vmem:[#allocation0] sm:$0xf]  }
   0xf   :  { %v45_v7 = vld [vmem:[#allocation0] sm:$0xf]  }
  0x10   :  { %v6_v8 = vld [vmem:[#allocation0] sm:$0xf]  }
  0x11   :  { %8 = vst.msk [vmem:[%s118_s1] ss:$8 sm:$0xf] %vm7_vm0, %v6_v8  }
  0x12   :  { %16 = vrot.lane.b32.xlu0 %v15_v4, %s68_s10 }
  0x13   :  { %28 = vrot.lane.b32.xlu1 %v27_v5, %s69_s11 }
  0x14   :  { %40 = vrot.lane.b32.xlu2 %v39_v6, %s70_s12 }
  0x1a   :  { %46 = vrot.lane.b32.xlu0 %v45_v7, %s71_s13 }
  0x66   :  { %v35_v9 = vpop.permute.xlu2 %34  }
  0x67   :  { %55 = vst.msk [vmem:[%s118_s1 + $0x5] ss:$8 sm:$0xf] %vm7_vm0, %v35_v9  }
  0x6e   :  { %v41_v10 = vpop.permute.xlu2 %40  }
  0x6f   :  { %56 = vst.msk [vmem:[%s118_s1 + $0x6] ss:$8 sm:$0xf] %vm7_vm0, %v41_v10  }
  0x7c   :  { %v11_v11 = vpop.permute.xlu0 %10  }
  0x7d   :  { %v23_v12 = vpop.permute.xlu1 %22   ;;  %51 = vst.msk [vmem:[%s118_s1 + $0x1] ss:$8 sm:$0xf] %vm7_vm0, %v11_v11  }
  0x7e   :  { %53 = vst.msk [vmem:[%s118_s1 + $0x3] ss:$8 sm:$0xf] %vm7_vm0, %v23_v12  }
  0x84   :  { %v17_v13 = vpop.permute.xlu0 %16  }
  0x85   :  { %v29_v14 = vpop.permute.xlu1 %28   ;;  %52 = vst.msk [vmem:[%s118_s1 + $0x2] ss:$8 sm:$0xf] %vm7_vm0, %v17_v13  }
  0x86   :  { %54 = vst.msk [vmem:[%s118_s1 + $0x4] ss:$8 sm:$0xf] %vm7_vm0, %v29_v14  }
  0x8c   :  { %v47_v15 = vpop.permute.xlu0 %46  }
  0x8d   :  { %57 = vst.msk [vmem:[%s118_s1 + $0x7] ss:$8 sm:$0xf] %vm7_vm0, %v47_v15  }

// kernel: _unnamed_function_.1
= control target key start
LH: loop header
LB: loop body
LE: loop exit
PB: predicated region body
PF: predicated region fallthrough
CT: control target
= control target key end

     0   :  { %s3378_s25 = smov 16   ;;  %s5084_s0 = inlined_call_operand.vmem [shape: f32[12,256], index: 0, kind: input, shape index: {}]   ;;  %s5085_s1 = inlined_call_operand.vmem [shape: f32[9,1,256], index: 1, kind: input, shape index: {}]   ;;  %s5086_s2 = inlined_call_operand.vmem [shape: f32[9,32,12], index: 2, kind: input, shape index: {}]   ;;  %s5087_s3 = inlined_call_operand.vmem [shape: f32[32,1], index: 3, kind: input, shape index: {}]   ;;  %s5088_s4 = inlined_call_operand.vmem [shape: f32[9,64,32], index: 4, kind: input, shape index: {}]   ;;  %s5089_s5 = inlined_call_operand.vmem [shape: f32[64,1], index: 5, kind: input, shape index: {}]   ;;  %s5090_s6 = inlined_call_operand.hbm [shape: f32[1,1], index: 6, kind: output, shape index: {}]  }
   0x1   :  { %v3428_v0 = vld [vmem:[%s5084_s0 + $0x10] sm:$0xf]  ;;  %v3433_v1 = vld [vmem:[%s5084_s0] sm:$0xff] }
   0x2   :  { %73 = vrot.lane.b32.xlu0 %v3428_v0, %s3378_s25  ;;  %71 = vrot.lane.b32.xlu1 %v3433_v1, %s3378_s25 }
   0x3   :  { %11 = vsyncpa [#allocation3], 0  ;;  %s3379_s26 = smov 17   ;;  %v3444_v2 = vld [vmem:[%s5084_s0 + $0x18] sm:$0xf]  ;;  %v3449_v3 = vld [vmem:[%s5084_s0 + $0x8] sm:$0xff]  ;;  %v5091_v5 = vlaneseq }
   0x4   :  { %45 = vrot.lane.b32.xlu2 %v3428_v0, %s3379_s26  ;;  %s3380_s7 = smov 15   ;;  %s3381_s0 = smov 1   ;;  %v24_v7 = vld [vmem:[%s5085_s1] sm:$0x3]  ;;  %vm111_vm1 = vcmask 1043456   ;;  %vm98_vm3 = vcmask 97280  }
   0x5   :  { %s3382_s8 = smov 127   ;;  %s3383_s9 = smov 113   ;;  %v3510_v6 = vand.u32 127, %v5091_v5  ;;  %v3516_v8 = vperm.slane %v24_v7, 0  ;;  %v3518_v9 = vperm.slane %v24_v7, 1  ;;  %v2981_v30 = vld [vmem:[%s5086_s2 + $0x20] sm:$0xff] }
   0x6   :  { %s3384_s10 = smov 112   ;;  %s3385_s11 = smov 111   ;;  %v2974_v17 = vld [vmem:[%s5085_s1 + $0x2] sm:$0x3]  ;;  %v2975_v39 = vld [vmem:[%s5085_s1 + $0x4] sm:$0x3] }
   0x7   :  { %5126 = vst [vmem:[#allocation5_spill] sm:$0xff] %v3510_v6  ;;  %vm53_vm0 = vcmp.lt.s32.totalorder %v3510_v6, 17  ;;  %vm79_vm2 = vcmp.lt.s32.totalorder %v3510_v6, 16  ;;  %v3532_v18 = vperm.slane %v2974_v17, 0  ;;  %v3534_v19 = vperm.slane %v2974_v17, 1  ;;  %v67_v38 = vld [vmem:[%s5086_s2] sm:$0xff] }
   0x8   :  { %5127 = vst [vmem:[#allocation6_spill] sm:$0xff] %v3516_v8  ;;  %v2982_v40 = vld [vmem:[%s5086_s2 + $0x28] sm:$0xff]  ;;  %vm260_vm4 = vcmp.lt.s32.totalorder %v3510_v6, 15  ;;  %v3573_v41 = vperm.slane %v2975_v39, 0  ;;  %v3575_v42 = vperm.slane %v2975_v39, 1  ;;  %v2983_v56 = vld [vmem:[%s5086_s2 + $0x30] sm:$0xff] }
   0x9   :  { %5128 = vst [vmem:[#allocation7_spill] sm:$0xff] %v3518_v9  ;;  %v68_v50 = vld [vmem:[%s5086_s2 + $0x8] sm:$0xff]  ;;  %v2976_v55 = vld [vmem:[%s5085_s1 + $0x6] sm:$0x3]  ;;  %vm371_vm5 = vcmp.lt.s32.totalorder %v3510_v6, 1  ;;  %v69_v63 = vld [vmem:[%s5086_s2 + $0x10] sm:$0xff] }
   0xa   :  { %77 = vrot.lane.b32.xlu0 %v3444_v2, %s3378_s25  ;;  %75 = vrot.lane.b32.xlu1 %v3449_v3, %s3378_s25  ;;  %5129 = vst [vmem:[#allocation8_spill] sm:$0xff] %v3532_v18  ;;  %v3605_v57 = vperm.slane %v2976_v55, 0  ;;  %v3607_v58 = vperm.slane %v2976_v55, 1  ;;  %vm571_vm6 = vcmp.lt.s32.totalorder %v3510_v6, 127  ;;  %v2977_v17 = vld [vmem:[%s5085_s1 + $0xa] sm:$0x3] }
   0xb   :  { %5130 = vst [vmem:[#allocation9_spill] sm:$0xff] %v3534_v19  ;;  %vm682_vm7 = vcmp.lt.s32.totalorder %v3510_v6, 113  ;;  %vm793_vm8 = vcmp.lt.s32.totalorder %v3510_v6, 112  ;;  %vm904_vm9 = vcmp.lt.s32.totalorder %v3510_v6, 111  ;;  %vm1128_vm10 = vcmask 261120   ;;  %s2965_s12 = sshll.u32 %s5090_s6, 4  ;;  %s2966_s12 = int_to_ptr.hbm [resolvable:$true] %s2965_s12 }
   0xc   :  { %49 = vrot.lane.b32.xlu2 %v3444_v2, %s3379_s26  ;;  %5131 = vst [vmem:[#allocation10_spill] sm:$0xff] %v3573_v41  ;;  %vm2933_vm15 = vcmask 130048  }
   0xd   :  { %5132 = vst [vmem:[#allocation11_spill] sm:$0xff] %v3575_v42 }
   0xe   :  { %5133 = vst [vmem:[#allocation12_spill] sm:$0xff] %v3605_v57 }
   0xf   :  { %5134 = vst [vmem:[#allocation13_spill] sm:$0xff] %v3607_v58 }
  0x12   :  { %43 = vrot.lane.b32.xlu0 %v3433_v1, %s3379_s26  ;;  %47 = vrot.lane.b32.xlu1 %v3449_v3, %s3379_s26 }
  0x14   :  { %254 = vrot.lane.b32.xlu2 %v3428_v0, %s3380_s7 }
  0x1a   :  { %258 = vrot.lane.b32.xlu0 %v3444_v2, %s3380_s7  ;;  %252 = vrot.lane.b32.xlu1 %v3433_v1, %s3380_s7 }
  0x1c   :  { %256 = vrot.lane.b32.xlu2 %v3449_v3, %s3380_s7 }
  0x22   :  { %365 = vrot.lane.b32.xlu0 %v3428_v0, %s3381_s0  ;;  %369 = vrot.lane.b32.xlu1 %v3444_v2, %s3381_s0 }
  0x24   :  { %363 = vrot.lane.b32.xlu2 %v3433_v1, %s3381_s0 }
  0x2a   :  { %367 = vrot.lane.b32.xlu0 %v3449_v3, %s3381_s0  ;;  %565 = vrot.lane.b32.xlu1 %v3428_v0, %s3382_s8 }
  0x2c   :  { %569 = vrot.lane.b32.xlu2 %v3444_v2, %s3382_s8 }
  0x32   :  { %563 = vrot.lane.b32.xlu0 %v3433_v1, %s3382_s8  ;;  %567 = vrot.lane.b32.xlu1 %v3449_v3, %s3382_s8 }
  0x34   :  { %676 = vrot.lane.b32.xlu2 %v3428_v0, %s3383_s9 }
  0x3a   :  { %680 = vrot.lane.b32.xlu0 %v3444_v2, %s3383_s9  ;;  %674 = vrot.lane.b32.xlu1 %v3433_v1, %s3383_s9 }
  0x3c   :  { %678 = vrot.lane.b32.xlu2 %v3449_v3, %s3383_s9 }
  0x42   :  { %787 = vrot.lane.b32.xlu0 %v3428_v0, %s3384_s10  ;;  %791 = vrot.lane.b32.xlu1 %v3444_v2, %s3384_s10 }
  0x44   :  { %785 = vrot.lane.b32.xlu2 %v3433_v1, %s3384_s10 }
  0x4a   :  { %789 = vrot.lane.b32.xlu0 %v3449_v3, %s3384_s10  ;;  %898 = vrot.lane.b32.xlu1 %v3428_v0, %s3385_s11 }
  0x4c   :  { %902 = vrot.lane.b32.xlu2 %v3444_v2, %s3385_s11 }
  0x52   :  { %896 = vrot.lane.b32.xlu0 %v3433_v1, %s3385_s11  ;;  %900 = vrot.lane.b32.xlu1 %v3449_v3, %s3385_s11 }
  0x5e   :  { %v46_v4 = vpop.permute.xlu2 %45 }
  0x66   :  { %v50_v10 = vpop.permute.xlu2 %49 }
  0x67   :  { %v55_v11 = vsel %vm53_vm0, %v46_v4, %v50_v10  ;;  %v57_v12 = vsel %vm53_vm0, %v50_v10, %v46_v4 }
  0x68   :  { %v65_v13 = vmul.f32 %v3516_v8, %v57_v12  ;;  %v66_v14 = vmul.f32 %v3518_v9, %v55_v11  ;;  %v70_v12 = vld [vmem:[%s5086_s2 + $0x18] sm:$0xff] }
  0x6a   :  { %2995 = vmatpush.msk.msra.mxu2 %vm111_vm1, %v65_v13  ;;  %3000 = vmatpush.msk.msra.mxu3 %vm111_vm1, %v66_v14 }
  0x6e   :  { %v255_v31 = vpop.permute.xlu2 %254 }
  0x74   :  { %v74_v15 = vpop.permute.xlu0 %73  ;;  %v72_v16 = vpop.permute.xlu1 %71 }
  0x76   :  { %v257_v43 = vpop.permute.xlu2 %256 }
  0x7c   :  { %v78_v20 = vpop.permute.xlu0 %77  ;;  %v76_v21 = vpop.permute.xlu1 %75 }
  0x7d   :  { %v81_v22 = vsel %vm79_vm2, %v74_v15, %v78_v20  ;;  %v83_v23 = vsel %vm79_vm2, %v78_v20, %v74_v15  ;;  %v80_v24 = vsel %vm79_vm2, %v72_v16, %v76_v21  ;;  %v82_v25 = vsel %vm79_vm2, %v76_v21, %v72_v16  ;;  %v3005_v15 = vld [vmem:[%s5086_s2 + $0x40] sm:$0xff] }
  0x7e   :  { %v91_v26 = vmul.f32 %v3532_v18, %v83_v23  ;;  %v92_v27 = vmul.f32 %v3534_v19, %v81_v22  ;;  %v89_v28 = vmul.f32 %v3532_v18, %v82_v25  ;;  %v90_v29 = vmul.f32 %v3534_v19, %v80_v24 }
  0x7f   :  { %v3657_v22 = vperm.slane %v2977_v17, 0  ;;  %v3659_v23 = vperm.slane %v2977_v17, 1  ;;  %v3035_v17 = vld [vmem:[%s5086_s2 + $0x90] sm:$0xff] }
  0x80   :  { %2985 = vmatpush.msk.msra.mxu0 %vm111_vm1, %v91_v26  ;;  %2990 = vmatpush.msk.msra.mxu1 %vm111_vm1, %v92_v27 }
  0x81   :  { %5135 = vst [vmem:[#allocation14_spill] sm:$0xff] %v3657_v22 }
  0x82   :  { %133 = vmatpush.msra.mxu0 %v89_v28  ;;  %162 = vmatpush.msra.mxu1 %v90_v29  ;;  %5136 = vst [vmem:[#allocation15_spill] sm:$0xff] %v3659_v23 }
  0x83   :  { %2986 = vmatmul.msk.f32.vlgmr.msra.gmra.mxu0 %vm98_vm3, %v2981_v30  ;;  %2991 = vmatmul.msk.f32.vlgmr.msra.gmra.mxu1 %vm98_vm3, %v2981_v30  ;;  %v3019_v30 = vld [vmem:[%s5086_s2 + $0x60] sm:$0xff] }
  0x84   :  { %v44_v32 = vpop.permute.xlu0 %43  ;;  %v48_v33 = vpop.permute.xlu1 %47 }
  0x85   :  { %v54_v34 = vsel %vm53_vm0, %v44_v32, %v48_v33  ;;  %v56_v35 = vsel %vm53_vm0, %v48_v33, %v44_v32  ;;  %v3006_v33 = vld [vmem:[%s5086_s2 + $0x48] sm:$0xff] }
  0x86   :  { %v63_v36 = vmul.f32 %v3516_v8, %v56_v35  ;;  %v64_v37 = vmul.f32 %v3518_v9, %v54_v34  ;;  %v3020_v34 = vld [vmem:[%s5086_s2 + $0x68] sm:$0xff]  ;;  %v3007_v35 = vld [vmem:[%s5086_s2 + $0x50] sm:$0xff] }
  0x88   :  { %209 = vmatpush.msra.mxu2 %v63_v36  ;;  %238 = vmatpush.msra.mxu3 %v64_v37 }
  0x89   :  { %2996 = vmatmul.msk.f32.vlgmr.msra.gmra.mxu2 %vm98_vm3, %v67_v38  ;;  %3001 = vmatmul.msk.f32.vlgmr.msra.gmra.mxu3 %vm98_vm3, %v67_v38  ;;  %v2978_v38 = vld [vmem:[%s5085_s1 + $0xc] sm:$0x3] }
  0x8b   :  { %2987 = vmatmul.msk.f32.gmra.mxu0 %vm98_vm3, %v2982_v40  ;;  %2992 = vmatmul.msk.f32.gmra.mxu1 %vm98_vm3, %v2982_v40 }
  0x8c   :  { %v259_v44 = vpop.permute.xlu0 %258  ;;  %v253_v45 = vpop.permute.xlu1 %252 }
  0x8d   :  { %v262_v46 = vsel %vm260_vm4, %v255_v31, %v259_v44  ;;  %v264_v47 = vsel %vm260_vm4, %v259_v44, %v255_v31  ;;  %v261_v48 = vsel %vm260_vm4, %v253_v45, %v257_v43  ;;  %v263_v49 = vsel %vm260_vm4, %v257_v43, %v253_v45  ;;  %v3021_v45 = vld [vmem:[%s5086_s2 + $0x70] sm:$0xff] }
  0x8e   :  { %v272_v51 = vmul.f32 %v3573_v41, %v264_v47  ;;  %v273_v52 = vmul.f32 %v3575_v42, %v262_v46  ;;  %v270_v53 = vmul.f32 %v3573_v41, %v263_v49  ;;  %v271_v54 = vmul.f32 %v3575_v42, %v261_v48  ;;  %v3008_v48 = vld [vmem:[%s5086_s2 + $0x58] sm:$0xff] }
  0x8f   :  { %v3701_v43 = vperm.slane %v2978_v38, 0  ;;  %v3703_v44 = vperm.slane %v2978_v38, 1 }
  0x90   :  { %3009 = vmatpush.msk.msrb.mxu0 %vm111_vm1, %v272_v51  ;;  %3014 = vmatpush.msk.msrb.mxu1 %vm111_vm1, %v273_v52 }
  0x91   :  { %2997 = vmatmul.msk.f32.gmra.mxu2 %vm98_vm3, %v68_v50  ;;  %3002 = vmatmul.msk.f32.gmra.mxu3 %vm98_vm3, %v68_v50  ;;  %5137 = vst [vmem:[#allocation16_spill] sm:$0xff] %v3701_v43 }
  0x92   :  { %312 = vmatpush.msrb.mxu0 %v270_v53  ;;  %341 = vmatpush.msrb.mxu1 %v271_v54  ;;  %5138 = vst [vmem:[#allocation17_spill] sm:$0xff] %v3703_v44 }
  0x93   :  { %2988 = vmatmul.msk.f32.gmra.mxu0 %vm98_vm3, %v2983_v56  ;;  %2993 = vmatmul.msk.f32.gmra.mxu1 %vm98_vm3, %v2983_v56  ;;  %v3022_v56 = vld [vmem:[%s5086_s2 + $0x78] sm:$0xff] }
  0x94   :  { %v366_v59 = vpop.permute.xlu0 %365  ;;  %v370_v60 = vpop.permute.xlu1 %369  ;;  %3037 = vmatpush.msk.msra.mxu0 %vm111_vm1, %v3428_v0  ;;  %3042 = vmatpush.msk.msra.mxu1 %vm111_vm1, %v3444_v2  ;;  %v2984_v0 = vld [vmem:[%s5086_s2 + $0x38] sm:$0xff] }
  0x95   :  { %v373_v61 = vsel %vm371_vm5, %v366_v59, %v370_v60  ;;  %v375_v62 = vsel %vm371_vm5, %v370_v60, %v366_v59  ;;  %v364_v2 = vpop.permute.xlu2 %363  ;;  %v3033_v59 = vld [vmem:[%s5086_s2 + $0x80] sm:$0xff] }
  0x96   :  { %v383_v4 = vmul.f32 %v3605_v57, %v375_v62  ;;  %v384_v7 = vmul.f32 %v3607_v58, %v373_v61  ;;  %512 = vmatpush.msra.mxu0 %v3433_v1  ;;  %541 = vmatpush.msra.mxu1 %v3449_v3  ;;  %v2979_v61 = vld [vmem:[%s5085_s1 + $0xe] sm:$0x3] }
  0x98   :  { %3023 = vmatpush.msk.msrb.mxu2 %vm111_vm1, %v383_v4  ;;  %3028 = vmatpush.msk.msrb.mxu3 %vm111_vm1, %v384_v7  ;;  %v3741_v4 = vperm.slane %v2979_v61, 0  ;;  %v3743_v7 = vperm.slane %v2979_v61, 1  ;;  %v1007_v61 = vld [vmem:[%s5087_s3] sm:$0xff] }
  0x99   :  { %2998 = vmatmul.msk.f32.gmra.mxu2 %vm98_vm3, %v69_v63  ;;  %3003 = vmatmul.msk.f32.gmra.mxu3 %vm98_vm3, %v69_v63 }
  0x9a   :  { %5139 = vst [vmem:[#allocation18_spill] sm:$0xff] %v3741_v4 }
  0x9b   :  { %2989 = vmatmul.msk.f32.gmra.mxu0 %vm98_vm3, %v2984_v0  ;;  %2994 = vmatmul.msk.f32.gmra.mxu1 %vm98_vm3, %v2984_v0  ;;  %5140 = vst [vmem:[#allocation19_spill] sm:$0xff] %v3743_v7 }
  0x9c   :  { %v368_v1 = vpop.permute.xlu0 %367  ;;  %v566_v10 = vpop.permute.xlu1 %565 }
  0x9d   :  { %v372_v3 = vsel %vm371_vm5, %v364_v2, %v368_v1  ;;  %v374_v11 = vsel %vm371_vm5, %v368_v1, %v364_v2  ;;  %v570_v16 = vpop.permute.xlu2 %569 }
  0x9e   :  { %v381_v13 = vmul.f32 %v3605_v57, %v374_v11  ;;  %v382_v14 = vmul.f32 %v3607_v58, %v372_v3  ;;  %v573_v20 = vsel %vm571_vm6, %v566_v10, %v570_v16  ;;  %v575_v21 = vsel %vm571_vm6, %v570_v16, %v566_v10  ;;  %v3048_v16 = vld [vmem:[%s5086_s2 + $0xa8] sm:$0xff] }
  0x9f   :  { %v583_v24 = vmul.f32 %v3657_v22, %v573_v20  ;;  %v584_v25 = vmul.f32 %v3659_v23, %v575_v21 }
  0xa0   :  { %423 = vmatpush.msrb.mxu2 %v381_v13  ;;  %452 = vmatpush.msrb.mxu3 %v382_v14  ;;  %v3047_v14 = vld [vmem:[%s5086_s2 + $0xa0] sm:$0xff] }
  0xa1   :  { %2999 = vmatmul.msk.f32.gmra.mxu2 %vm98_vm3, %v70_v12  ;;  %3004 = vmatmul.msk.f32.gmra.mxu3 %vm98_vm3, %v70_v12 }
  0xa2   :  { %3051 = vmatpush.msk.msra.mxu2 %vm111_vm1, %v583_v24  ;;  %3056 = vmatpush.msk.msra.mxu3 %vm111_vm1, %v584_v25  ;;  %v2980_v24 = vld [vmem:[%s5085_s1 + $0x10] sm:$0x3] }
  0xa3   :  { %3010 = vmatmul.msk.f32.vlgmr.msrb.gmra.mxu0 %vm98_vm3, %v3005_v15  ;;  %3015 = vmatmul.msk.f32.vlgmr.msrb.gmra.mxu1 %vm98_vm3, %v3005_v15  ;;  %v3034_v15 = vld [vmem:[%s5086_s2 + $0x88] sm:$0xff] }
  0xa4   :  { %v564_v26 = vpop.permute.xlu0 %563  ;;  %v568_v27 = vpop.permute.xlu1 %567 }
  0xa5   :  { %v572_v28 = vsel %vm571_vm6, %v564_v26, %v568_v27  ;;  %v574_v29 = vsel %vm571_vm6, %v568_v27, %v564_v26  ;;  %v677_v36 = vpop.permute.xlu2 %676  ;;  %v3785_v27 = vperm.slane %v2980_v24, 0 }
  0xa6   :  { %v581_v31 = vmul.f32 %v3657_v22, %v572_v28  ;;  %v582_v32 = vmul.f32 %v3659_v23, %v574_v29  ;;  %v3787_v28 = vperm.slane %v2980_v24, 1  ;;  %v3049_v29 = vld [vmem:[%s5086_s2 + $0xb0] sm:$0xff] }
  0xa7   :  { %5141 = vst [vmem:[#allocation20_spill] sm:$0xff] %v3785_v27 }
  0xa8   :  { %623 = vmatpush.msra.mxu2 %v581_v31  ;;  %652 = vmatpush.msra.mxu3 %v582_v32  ;;  %5142 = vst [vmem:[#allocation21_spill] sm:$0xff] %v3787_v28  ;;  %v3036_v32 = vld [vmem:[%s5086_s2 + $0x98] sm:$0xff] }
  0xa9   :  { %3024 = vmatmul.msk.f32.vlgmr.msrb.gmra.mxu2 %vm98_vm3, %v3019_v30  ;;  %3029 = vmatmul.msk.f32.vlgmr.msrb.gmra.mxu3 %vm98_vm3, %v3019_v30 }
  0xab   :  { %3011 = vmatmul.msk.f32.gmra.mxu0 %vm98_vm3, %v3006_v33  ;;  %3016 = vmatmul.msk.f32.gmra.mxu1 %vm98_vm3, %v3006_v33 }
  0xac   :  { %v681_v37 = vpop.permute.xlu0 %680  ;;  %v675_v49 = vpop.permute.xlu1 %674 }
  0xad   :  { %v684_v39 = vsel %vm682_vm7, %v677_v36, %v681_v37  ;;  %v686_v40 = vsel %vm682_vm7, %v681_v37, %v677_v36  ;;  %v679_v50 = vpop.permute.xlu2 %678 }
  0xae   :  { %v694_v46 = vmul.f32 %v3701_v43, %v684_v39  ;;  %v695_v47 = vmul.f32 %v3703_v44, %v686_v40  ;;  %v683_v52 = vsel %vm682_vm7, %v675_v49, %v679_v50  ;;  %v685_v53 = vsel %vm682_vm7, %v679_v50, %v675_v49  ;;  %v3050_v39 = vld [vmem:[%s5086_s2 + $0xb8] sm:$0xff]  ;;  %v3061_v40 = vld [vmem:[%s5086_s2 + $0xc0] sm:$0xff]  ;;  %v1008_v49 = vld [vmem:[%s5087_s3 + $0x8] sm:$0xff] }
  0xaf   :  { %v692_v54 = vmul.f32 %v3701_v43, %v683_v52  ;;  %v693_v55 = vmul.f32 %v3703_v44, %v685_v53  ;;  %v3077_v50 = vld [vmem:[%s5086_s2 + $0xf0] sm:$0xff]  ;;  %v3064_v52 = vld [vmem:[%s5086_s2 + $0xd8] sm:$0xff] }
  0xb0   :  { %3065 = vmatpush.msk.msrb.mxu0 %vm111_vm1, %v694_v46  ;;  %3070 = vmatpush.msk.msrb.mxu1 %vm111_vm1, %v695_v47  ;;  %v3062_v46 = vld [vmem:[%s5086_s2 + $0xc8] sm:$0xff]  ;;  %v1010_v53 = vld [vmem:[%s5087_s3 + $0x18] sm:$0xff] }
  0xb1   :  { %3025 = vmatmul.msk.f32.gmra.mxu2 %vm98_vm3, %v3020_v34  ;;  %3030 = vmatmul.msk.f32.gmra.mxu3 %vm98_vm3, %v3020_v34  ;;  %v3076_v47 = vld [vmem:[%s5086_s2 + $0xe8] sm:$0xff] }
  0xb2   :  { %734 = vmatpush.msrb.mxu0 %v692_v54  ;;  %763 = vmatpush.msrb.mxu1 %v693_v55  ;;  %v1009_v54 = vld [vmem:[%s5087_s3 + $0x10] sm:$0xff]  ;;  %v3078_v55 = vld [vmem:[%s5086_s2 + $0xf8] sm:$0xff] }
  0xb3   :  { %3012 = vmatmul.msk.f32.gmra.mxu0 %vm98_vm3, %v3007_v35  ;;  %3017 = vmatmul.msk.f32.gmra.mxu1 %vm98_vm3, %v3007_v35 }
  0xb4   :  { %v788_v51 = vpop.permute.xlu0 %787  ;;  %v792_v60 = vpop.permute.xlu1 %791 }
  0xb5   :  { %v795_v62 = vsel %vm793_vm8, %v788_v51, %v792_v60  ;;  %v797_v63 = vsel %vm793_vm8, %v792_v60, %v788_v51  ;;  %v786_v0 = vpop.permute.xlu2 %785  ;;  %v3386_v51 = vmov 0   ;;  %v3089_v60 = vld [vmem:[%s5086_s2 + $0x100] sm:$0xff] }
  0xb6   :  { %v805_v1 = vmul.f32 %v3741_v4, %v795_v62  ;;  %v806_v10 = vmul.f32 %v3743_v7, %v797_v63  ;;  %3349 = vset.pattern.permute.xlu1 %v3386_v51  ;;  %3348 = vset.pattern.permute.xlu0 %v3386_v51 }
  0xb7   :  { %1018 = vperm.xlu1 %3349, %v1008_v49   ;;  %3347 = vset.pattern.permute.xlu2 %v3386_v51 }
  0xb8   :  { %3079 = vmatpush.msk.msrb.mxu2 %vm111_vm1, %v805_v1  ;;  %3084 = vmatpush.msk.msrb.mxu3 %vm111_vm1, %v806_v10 }
  0xb9   :  { %3026 = vmatmul.msk.f32.gmra.mxu2 %vm98_vm3, %v3021_v45  ;;  %3031 = vmatmul.msk.f32.gmra.mxu3 %vm98_vm3, %v3021_v45  ;;  %v3075_v45 = vld [vmem:[%s5086_s2 + $0xe0] sm:$0xff] }
  0xba   :  { %1028 = vperm.xlu2 %3347, %v1010_v53   ;;  %1023 = vperm.xlu0 %3348, %v1009_v54  }
  0xbb   :  { %3013 = vmatmul.msk.f32.gmra.mxu0 %vm98_vm3, %v3008_v48  ;;  %3018 = vmatmul.msk.f32.gmra.mxu1 %vm98_vm3, %v3008_v48  ;;  %v3063_v48 = vld [vmem:[%s5086_s2 + $0xd0] sm:$0xff] }
  0xbc   :  { %v790_v2 = vpop.permute.xlu0 %789  ;;  %v899_v21 = vpop.permute.xlu1 %898 }
  0xbd   :  { %v794_v3 = vsel %vm793_vm8, %v786_v0, %v790_v2  ;;  %v796_v11 = vsel %vm793_vm8, %v790_v2, %v786_v0  ;;  %v903_v20 = vpop.permute.xlu2 %902  ;;  %v3090_v0 = vld [vmem:[%s5086_s2 + $0x108] sm:$0xff] }
  0xbe   :  { %v803_v12 = vmul.f32 %v3741_v4, %v794_v3  ;;  %v804_v13 = vmul.f32 %v3743_v7, %v796_v11  ;;  %v906_v25 = vsel %vm904_vm9, %v899_v21, %v903_v20  ;;  %v908_v26 = vsel %vm904_vm9, %v903_v20, %v899_v21  ;;  %v3091_v11 = vld [vmem:[%s5086_s2 + $0x110] sm:$0xff] }
  0xbf   :  { %v916_v30 = vmul.f32 %v3785_v27, %v906_v25  ;;  %v917_v31 = vmul.f32 %v3787_v28, %v908_v26 }
  0xc0   :  { %845 = vmatpush.msrb.mxu2 %v803_v12  ;;  %874 = vmatpush.msrb.mxu3 %v804_v13 }
  0xc1   :  { %3027 = vmatmul.msk.f32.gmra.mxu2 %vm98_vm3, %v3022_v56  ;;  %3032 = vmatmul.msk.f32.gmra.mxu3 %vm98_vm3, %v3022_v56 }
  0xc2   :  { %1013 = vperm.xlu2 %3347, %v1007_v61  }
  0xc3   :  { %3038 = vmatmul.msk.f32.vlgmr.msra.gmra.mxu0 %vm98_vm3, %v3033_v59  ;;  %3043 = vmatmul.msk.f32.vlgmr.msra.gmra.mxu1 %vm98_vm3, %v3033_v59 }
  0xc4   :  { %3093 = vmatpush.msk.msra.mxu0 %vm111_vm1, %v916_v30  ;;  %3098 = vmatpush.msk.msra.mxu1 %vm111_vm1, %v917_v31  ;;  %v897_v33 = vpop.permute.xlu0 %896  ;;  %v901_v34 = vpop.permute.xlu1 %900  ;;  %vm2956_vm1 = vcmask 0  }
  0xc5   :  { %v905_v35 = vsel %vm904_vm9, %v897_v33, %v901_v34  ;;  %v907_v36 = vsel %vm904_vm9, %v901_v34, %v897_v33 }
  0xc6   :  { %v914_v37 = vmul.f32 %v3785_v27, %v905_v35  ;;  %v915_v38 = vmul.f32 %v3787_v28, %v907_v36 }
  0xc8   :  { %956 = vmatpush.msra.mxu0 %v914_v37  ;;  %985 = vmatpush.msra.mxu1 %v915_v38 }
  0xc9   :  { %3052 = vmatmul.msk.f32.vlgmr.msra.gmra.mxu2 %vm98_vm3, %v3047_v14  ;;  %3057 = vmatmul.msk.f32.vlgmr.msra.gmra.mxu3 %vm98_vm3, %v3047_v14 }
  0xcb   :  { %3039 = vmatmul.msk.f32.gmra.mxu0 %vm98_vm3, %v3034_v15  ;;  %3044 = vmatmul.msk.f32.gmra.mxu1 %vm98_vm3, %v3034_v15 }
  0xd1   :  { %3053 = vmatmul.msk.f32.gmra.mxu2 %vm98_vm3, %v3048_v16  ;;  %3058 = vmatmul.msk.f32.gmra.mxu3 %vm98_vm3, %v3048_v16  ;;  %v3092_v16 = vld [vmem:[%s5086_s2 + $0x118] sm:$0xff] }
  0xd3   :  { %3040 = vmatmul.msk.f32.gmra.mxu0 %vm98_vm3, %v3035_v17  ;;  %3045 = vmatmul.msk.f32.gmra.mxu1 %vm98_vm3, %v3035_v17 }
  0xd9   :  { %3054 = vmatmul.msk.f32.gmra.mxu2 %vm98_vm3, %v3049_v29  ;;  %3059 = vmatmul.msk.f32.gmra.mxu3 %vm98_vm3, %v3049_v29 }
  0xdb   :  { %3041 = vmatmul.msk.f32.gmra.mxu0 %vm98_vm3, %v3036_v32  ;;  %3046 = vmatmul.msk.f32.gmra.mxu1 %vm98_vm3, %v3036_v32 }
  0xe1   :  { %3055 = vmatmul.msk.f32.gmra.mxu2 %vm98_vm3, %v3050_v39  ;;  %3060 = vmatmul.msk.f32.gmra.mxu3 %vm98_vm3, %v3050_v39 }
  0xe3   :  { %3066 = vmatmul.msk.f32.vlgmr.msrb.gmra.mxu0 %vm98_vm3, %v3061_v40  ;;  %3071 = vmatmul.msk.f32.vlgmr.msrb.gmra.mxu1 %vm98_vm3, %v3061_v40 }
  0xe9   :  { %3080 = vmatmul.msk.f32.vlgmr.msrb.gmra.mxu2 %vm98_vm3, %v3075_v45  ;;  %3085 = vmatmul.msk.f32.vlgmr.msrb.gmra.mxu3 %vm98_vm3, %v3075_v45 }
  0xeb   :  { %3067 = vmatmul.msk.f32.gmra.mxu0 %vm98_vm3, %v3062_v46  ;;  %3072 = vmatmul.msk.f32.gmra.mxu1 %vm98_vm3, %v3062_v46 }
  0xf1   :  { %3081 = vmatmul.msk.f32.gmra.mxu2 %vm98_vm3, %v3076_v47  ;;  %3086 = vmatmul.msk.f32.gmra.mxu3 %vm98_vm3, %v3076_v47 }
  0xf3   :  { %3068 = vmatmul.msk.f32.gmra.mxu0 %vm98_vm3, %v3063_v48  ;;  %3073 = vmatmul.msk.f32.gmra.mxu1 %vm98_vm3, %v3063_v48 }
  0xf9   :  { %3082 = vmatmul.msk.f32.gmra.mxu2 %vm98_vm3, %v3077_v50  ;;  %3087 = vmatmul.msk.f32.gmra.mxu3 %vm98_vm3, %v3077_v50 }
  0xfb   :  { %3069 = vmatmul.msk.f32.gmra.mxu0 %vm98_vm3, %v3064_v52  ;;  %3074 = vmatmul.msk.f32.gmra.mxu1 %vm98_vm3, %v3064_v52 }
 0x100   :  { %v3861_v56 = vpop.f32.mrf.mxu0  ;;  %v3863_v59 = vpop.f32.mrf.mxu1 }
 0x101   :  { %3083 = vmatmul.msk.f32.gmra.mxu2 %vm98_vm3, %v3078_v55  ;;  %3088 = vmatmul.msk.f32.gmra.mxu3 %vm98_vm3, %v3078_v55 }
 0x103   :  { %3094 = vmatmul.msk.f32.vlgmr.msra.gmra.mxu0 %vm98_vm3, %v3089_v60  ;;  %3099 = vmatmul.msk.f32.vlgmr.msra.gmra.mxu1 %vm98_vm3, %v3089_v60 }
 0x108   :  { %v3875_v62 = vpop.f32.mrf.mxu0  ;;  %v3877_v63 = vpop.f32.mrf.mxu1 }
 0x10b   :  { %3095 = vmatmul.msk.f32.gmra.mxu0 %vm98_vm3, %v3090_v0  ;;  %3100 = vmatmul.msk.f32.gmra.mxu1 %vm98_vm3, %v3090_v0 }
 0x10c   :  { %v3884_v2 = vpop.f32.mrf.mxu2  ;;  %v3886_v1 = vpop.f32.mrf.mxu3 }
 0x110   :  { %v3888_v10 = vpop.f32.mrf.mxu0  ;;  %v3890_v3 = vpop.f32.mrf.mxu1 }
 0x113   :  { %3096 = vmatmul.msk.f32.gmra.mxu0 %vm98_vm3, %v3091_v11  ;;  %3101 = vmatmul.msk.f32.gmra.mxu1 %vm98_vm3, %v3091_v11 }
 0x114   :  { %v214_v12 = vpop.f32.mrf.mxu2  ;;  %v3897_v13 = vpop.f32.mrf.mxu3 }
 0x115   :  { %v215_v8 = vadd.f32 %v214_v12, %v3875_v62  ;;  %v244_v62 = vadd.f32 %v3897_v13, %v3877_v63 }
 0x118   :  { %v3899_v14 = vpop.f32.mrf.mxu0  ;;  %v3901_v15 = vpop.f32.mrf.mxu1 }
 0x11b   :  { %3097 = vmatmul.msk.f32.gmra.mxu0 %vm98_vm3, %v3092_v16  ;;  %3102 = vmatmul.msk.f32.gmra.mxu1 %vm98_vm3, %v3092_v16 }
 0x11c   :  { %v217_v17 = vpop.f32.mrf.mxu2  ;;  %v246_v20 = vpop.f32.mrf.mxu3 }
 0x120   :  { %v3908_v21 = vpop.f32.mrf.mxu0  ;;  %v3910_v24 = vpop.f32.mrf.mxu1 }
 0x124   :  { %v3912_v25 = vpop.f32.mrf.mxu2  ;;  %v3914_v26 = vpop.f32.mrf.mxu3 }
 0x128   :  { %v317_v29 = vpop.f32.mrf.mxu0  ;;  %v346_v30 = vpop.f32.mrf.mxu1 }
 0x129   :  { %v357_v42 = vadd.f32 %v317_v29, %v215_v8  ;;  %v3965_v29 = vpop.permute.xlu1 %1018 }
 0x12c   :  { %v3916_v31 = vpop.f32.mrf.mxu2  ;;  %v3918_v32 = vpop.f32.mrf.mxu3 }
 0x130   :  { %v320_v33 = vpop.f32.mrf.mxu0  ;;  %v349_v34 = vpop.f32.mrf.mxu1 }
 0x134   :  { %v428_v35 = vpop.f32.mrf.mxu2  ;;  %v457_v36 = vpop.f32.mrf.mxu3 }
 0x135   :  { %v468_v41 = vadd.f32 %v428_v35, %v357_v42 }
 0x138   :  { %v3920_v37 = vpop.f32.mrf.mxu0  ;;  %v3922_v38 = vpop.f32.mrf.mxu1 }
 0x13c   :  { %v431_v39 = vpop.f32.mrf.mxu2  ;;  %v460_v40 = vpop.f32.mrf.mxu3 }
 0x140   :  { %v3924_v45 = vpop.f32.mrf.mxu0  ;;  %v3926_v46 = vpop.f32.mrf.mxu1 }
 0x141   :  { %5143 = vst [vmem:[#allocation22_spill] sm:$0xff] %v3926_v46 }
 0x144   :  { %v3928_v47 = vpop.f32.mrf.mxu2  ;;  %v3930_v48 = vpop.f32.mrf.mxu3 }
 0x148   :  { %v517_v49 = vpop.f32.mrf.mxu0  ;;  %v546_v50 = vpop.f32.mrf.mxu1 }
 0x14c   :  { %v3932_v51 = vpop.f32.mrf.mxu2  ;;  %v3934_v52 = vpop.f32.mrf.mxu3 }
 0x14d   :  { %5144 = vst [vmem:[#allocation23_spill] sm:$0xff] %v3932_v51 }
 0x14e   :  { %5145 = vst [vmem:[#allocation24_spill] sm:$0xff] %v3934_v52  ;;  %v218_v52 = vadd.f32 %v217_v17, %v3888_v10 }
 0x150   :  { %v520_v53 = vpop.f32.mrf.mxu0  ;;  %v549_v54 = vpop.f32.mrf.mxu1  ;;  %v359_v51 = vadd.f32 %v320_v33, %v218_v52 }
 0x152   :  { %v470_v8 = vadd.f32 %v431_v39, %v359_v51 }
 0x154   :  { %v628_v55 = vpop.f32.mrf.mxu2  ;;  %v657_v60 = vpop.f32.mrf.mxu3 }
 0x158   :  { %v3936_v61 = vpop.f32.mrf.mxu0  ;;  %v3938_v0 = vpop.f32.mrf.mxu1 }
 0x15c   :  { %v631_v5 = vpop.f32.mrf.mxu2  ;;  %v660_v28 = vpop.f32.mrf.mxu3 }
 0x160   :  { %v3940_v11 = vpop.f32.mrf.mxu0  ;;  %v3942_v16 = vpop.f32.mrf.mxu1 }
 0x161   :  { %5146 = vst [vmem:[#allocation25_spill] sm:$0xff] %v3940_v11  ;;  %v557_v11 = vadd.f32 %v517_v49, %v468_v41  ;;  %v559_v41 = vadd.f32 %v520_v53, %v470_v8 }
 0x162   :  { %5147 = vst [vmem:[#allocation26_spill] sm:$0xff] %v3942_v16 }
 0x163   :  { %v670_v13 = vadd.f32 %v631_v5, %v559_v41 }
 0x164   :  { %v3944_v4 = vpop.f32.mrf.mxu2  ;;  %v3946_v23 = vpop.f32.mrf.mxu3 }
 0x168   :  { %v739_v27 = vpop.f32.mrf.mxu0  ;;  %v768_v7 = vpop.f32.mrf.mxu1 }
 0x16c   :  { %v3948_v43 = vpop.f32.mrf.mxu2  ;;  %v3950_v58 = vpop.f32.mrf.mxu3 }
 0x16d   :  { %5148 = vst [vmem:[#allocation27_spill] sm:$0xff] %v3948_v43  ;;  %v247_v43 = vadd.f32 %v246_v20, %v3890_v3  ;;  %v221_v3 = vadd.f32 %v3912_v25, %v3899_v14  ;;  %v212_v14 = vadd.f32 %v3884_v2, %v3861_v56 }
 0x16e   :  { %5149 = vst [vmem:[#allocation28_spill] sm:$0xff] %v3950_v58  ;;  %v668_v58 = vadd.f32 %v628_v55, %v557_v11 }
 0x16f   :  { %v360_v46 = vadd.f32 %v349_v34, %v247_v43 }
 0x170   :  { %v742_v22 = vpop.f32.mrf.mxu0  ;;  %v771_v44 = vpop.f32.mrf.mxu1 }
 0x171   :  { %v471_v42 = vadd.f32 %v460_v40, %v360_v46  ;;  %v781_v33 = vadd.f32 %v742_v22, %v670_v13  ;;  %v241_v22 = vadd.f32 %v3886_v1, %v3863_v59  ;;  %v1029_v1 = vpop.permute.xlu2 %1028 }
 0x173   :  { %v560_v49 = vadd.f32 %v549_v54, %v471_v42 }
 0x174   :  { %v850_v19 = vpop.f32.mrf.mxu2  ;;  %v879_v18 = vpop.f32.mrf.mxu3 }
 0x175   :  { %v671_v17 = vadd.f32 %v660_v28, %v560_v49 }
 0x177   :  { %v782_v34 = vadd.f32 %v771_v44, %v671_v17  ;;  %v355_v44 = vadd.f32 %v3908_v21, %v212_v14  ;;  %v5160_v17 = vld [vmem:[#allocation28_spill] sm:$0xff] }
 0x178   :  { %v3952_v57 = vpop.f32.mrf.mxu0  ;;  %v3954_v9 = vpop.f32.mrf.mxu1 }
 0x179   :  { %5150 = vst [vmem:[#allocation29_spill] sm:$0xff] %v3952_v57  ;;  %v779_v57 = vadd.f32 %v739_v27, %v668_v58  ;;  %v250_v58 = vadd.f32 %v3914_v26, %v3901_v15 }
 0x17b   :  { %v890_v12 = vadd.f32 %v850_v19, %v779_v57  ;;  %v361_v57 = vadd.f32 %v3920_v37, %v221_v3  ;;  %v362_v20 = vadd.f32 %v3922_v38, %v250_v58  ;;  %v5158_v3 = vld [vmem:[#allocation26_spill] sm:$0xff] }
 0x17c   :  { %v853_v43 = vpop.f32.mrf.mxu2  ;;  %v882_v27 = vpop.f32.mrf.mxu3 }
 0x17d   :  { %v472_v15 = vadd.f32 %v3928_v47, %v361_v57  ;;  %v473_v25 = vadd.f32 %v3930_v48, %v362_v20  ;;  %v892_v28 = vadd.f32 %v853_v43, %v781_v33  ;;  %v893_v26 = vadd.f32 %v882_v27, %v782_v34  ;;  %v5159_v43 = vld [vmem:[#allocation27_spill] sm:$0xff] }
 0x17e   :  { %v356_v48 = vadd.f32 %v3910_v24, %v241_v22 }
 0x17f   :  { %v561_v37 = vadd.f32 %v3936_v61, %v472_v15  ;;  %v562_v2 = vadd.f32 %v3938_v0, %v473_v25  ;;  %v1014_v15 = vpop.permute.xlu2 %1013 }
 0x180   :  { %v3957_v6 = vpop.f32.mrf.mxu0  ;;  %v3959_v16 = vpop.f32.mrf.mxu1  ;;  %v467_v54 = vadd.f32 %v3918_v32, %v356_v48  ;;  %v5156_v32 = vld [vmem:[#allocation24_spill] sm:$0xff] }
 0x181   :  { %5151 = vst [vmem:[#allocation30_spill] sm:$0xff] %v3957_v6  ;;  %v672_v51 = vadd.f32 %v3944_v4, %v561_v37  ;;  %v673_v52 = vadd.f32 %v3946_v23, %v562_v2  ;;  %v5154_v23 = vld [vmem:[#allocation22_spill] sm:$0xff] }
 0x182   :  { %5152 = vst [vmem:[#allocation31_spill] sm:$0xff] %v3959_v16  ;;  %v358_v16 = vadd.f32 %v346_v30, %v244_v62 }
 0x183   :  { %v784_v24 = vadd.f32 %v3954_v9, %v673_v52 }
 0x184   :  { %v469_v63 = vadd.f32 %v457_v36, %v358_v16  ;;  %v1024_v36 = vpop.permute.xlu0 %1023  ;;  %v856_v61 = vpop.f32.mrf.mxu2  ;;  %v5155_v16 = vld [vmem:[#allocation23_spill] sm:$0xff] }
 0x185   :  { %v885_v0 = vpop.f32.mrf.mxu3 }
 0x186   :  { %v558_v30 = vadd.f32 %v546_v50, %v469_v63  ;;  %v466_v50 = vadd.f32 %v3916_v31, %v355_v44  ;;  %v895_v42 = vadd.f32 %v885_v0, %v784_v24 }
 0x188   :  { %v961_v35 = vpop.f32.mrf.mxu0  ;;  %v990_v6 = vpop.f32.mrf.mxu1  ;;  %v669_v5 = vadd.f32 %v657_v60, %v558_v30  ;;  %v555_v55 = vadd.f32 %v3924_v45, %v466_v50  ;;  %v5153_v60 = vld [vmem:[#allocation29_spill] sm:$0xff]  ;;  %v5161_v57 = vld [vmem:[#allocation30_spill] sm:$0xff] }
 0x189   :  { %v1001_v10 = vadd.f32 %v961_v35, %v890_v12  ;;  %v5157_v12 = vld [vmem:[#allocation25_spill] sm:$0xff]  ;;  %v5162_v14 = vld [vmem:[#allocation31_spill] sm:$0xff] }
 0x18a   :  { %v780_v40 = vadd.f32 %v768_v7, %v669_v5  ;;  %v783_v7 = vadd.f32 %v5153_v60, %v672_v51  ;;  %v666_v62 = vadd.f32 %v5155_v16, %v555_v55 }
 0x18b   :  { %v1033_v19 = vadd.f32 %v3965_v29, %v1001_v10 }
 0x18c   :  { %v891_v59 = vadd.f32 %v879_v18, %v780_v40  ;;  %v556_v18 = vadd.f32 %v5154_v23, %v467_v54  ;;  %v894_v8 = vadd.f32 %v856_v61, %v783_v7  ;;  %v777_v35 = vadd.f32 %v5157_v12, %v666_v62 }
 0x18d   :  { %v3974_v39 = vmax.f32 %v1033_v19, 0.0 }
 0x18e   :  { %v1002_v11 = vadd.f32 %v990_v6, %v891_v59  ;;  %v667_v45 = vadd.f32 %v5156_v32, %v556_v18  ;;  %v888_v27 = vadd.f32 %v5159_v43, %v777_v35  ;;  %v5164_v59 = vld [vmem:[#allocation8_spill] sm:$0xff] }
 0x18f   :  { %1089 = vrot.lane.b32.xlu2 %v3974_v39, %s3378_s25 }
 0x190   :  { %v964_v38 = vpop.f32.mrf.mxu0  ;;  %v993_v56 = vpop.f32.mrf.mxu1  ;;  %v1034_v41 = vadd.f32 %v3965_v29, %v1002_v11  ;;  %v778_v58 = vadd.f32 %v5158_v3, %v667_v45  ;;  %v999_v20 = vadd.f32 %v5161_v57, %v888_v27  ;;  %v5167_v57 = vld [vmem:[#allocation11_spill] sm:$0xff] }
 0x191   :  { %v1003_v46 = vadd.f32 %v964_v38, %v892_v28  ;;  %v1004_v47 = vadd.f32 %v993_v56, %v893_v26 }
 0x192   :  { %v889_v19 = vadd.f32 %v5160_v17, %v778_v58  ;;  %v4012_v30 = vmax.f32 %v1034_v41, 0.0  ;;  %v1031_v25 = vadd.f32 %v1014_v15, %v999_v20  ;;  %v5166_v17 = vld [vmem:[#allocation10_spill] sm:$0xff] }
 0x193   :  { %v1035_v21 = vadd.f32 %v1024_v36, %v1003_v46  ;;  %v1036_v53 = vadd.f32 %v1024_v36, %v1004_v47  ;;  %v5163_v46 = vld [vmem:[#allocation5_spill] sm:$0xff] }
 0x194   :  { %v1000_v29 = vadd.f32 %v5162_v14, %v889_v19  ;;  %v4025_v28 = vmax.f32 %v1031_v25, 0.0  ;;  %v3106_v14 = vld [vmem:[%s5088_s4 + $0x58] sm:$0xff] }
 0x195   :  { %v3995_v31 = vmax.f32 %v1035_v21, 0.0  ;;  %v3997_v4 = vmax.f32 %v1036_v53, 0.0  ;;  %v5165_v21 = vld [vmem:[#allocation9_spill] sm:$0xff] }
 0x196   :  { %v1032_v5 = vadd.f32 %v1014_v15, %v1000_v29 }
 0x197   :  { %1099 = vrot.lane.b32.xlu1 %v3997_v4, %s3378_s25  ;;  %1091 = vrot.lane.b32.xlu0 %v3995_v31, %s3378_s25 }
 0x198   :  { %v967_v9 = vpop.f32.mrf.mxu0  ;;  %v996_v6 = vpop.f32.mrf.mxu1  ;;  %v4027_v26 = vmax.f32 %v1032_v5, 0.0 }
 0x199   :  { %v1005_v49 = vadd.f32 %v967_v9, %v894_v8  ;;  %v1006_v10 = vadd.f32 %v996_v6, %v895_v42  ;;  %v3103_v42 = vld [vmem:[%s5088_s4 + $0x40] sm:$0xff]  ;;  %v3104_v6 = vld [vmem:[%s5088_s4 + $0x48] sm:$0xff] }
 0x19b   :  { %v1037_v63 = vadd.f32 %v1029_v1, %v1005_v49  ;;  %v1038_v13 = vadd.f32 %v1029_v1, %v1006_v10  ;;  %v3105_v49 = vld [vmem:[%s5088_s4 + $0x50] sm:$0xff] }
 0x19d   :  { %v4014_v33 = vmax.f32 %v1037_v63, 0.0  ;;  %v4016_v34 = vmax.f32 %v1038_v13, 0.0 }
 0x19f   :  { %1093 = vrot.lane.b32.xlu1 %v4014_v33, %s3378_s25  ;;  %1097 = vrot.lane.b32.xlu0 %v4012_v30, %s3378_s25 }
 0x1a0   :  { %1101 = vrot.lane.b32.xlu2 %v4016_v34, %s3378_s25 }
 0x1a7   :  { %1353 = vrot.lane.b32.xlu0 %v3997_v4, %s3380_s7  ;;  %1087 = vrot.lane.b32.xlu1 %v4025_v28, %s3378_s25 }
 0x1a8   :  { %1095 = vrot.lane.b32.xlu2 %v4027_v26, %s3378_s25 }
 0x1af   :  { %1343 = vrot.lane.b32.xlu0 %v3974_v39, %s3380_s7  ;;  %1351 = vrot.lane.b32.xlu1 %v4012_v30, %s3380_s7 }
 0x1b0   :  { %1345 = vrot.lane.b32.xlu2 %v3995_v31, %s3380_s7 }
 0x1b7   :  { %1059 = vrot.lane.b32.xlu0 %v3997_v4, %s3379_s26  ;;  %1341 = vrot.lane.b32.xlu1 %v4025_v28, %s3380_s7 }
 0x1b8   :  { %1051 = vrot.lane.b32.xlu2 %v3995_v31, %s3379_s26 }
 0x1bf   :  { %1347 = vrot.lane.b32.xlu0 %v4014_v33, %s3380_s7  ;;  %1355 = vrot.lane.b32.xlu1 %v4016_v34, %s3380_s7 }
 0x1c0   :  { %1349 = vrot.lane.b32.xlu2 %v4027_v26, %s3380_s7 }
 0x1c7   :  { %1049 = vrot.lane.b32.xlu0 %v3974_v39, %s3379_s26  ;;  %1053 = vrot.lane.b32.xlu1 %v4014_v33, %s3379_s26 }
 0x1c8   :  { %1061 = vrot.lane.b32.xlu2 %v4016_v34, %s3379_s26 }
 0x1cf   :  { %1055 = vrot.lane.b32.xlu0 %v4027_v26, %s3379_s26  ;;  %1057 = vrot.lane.b32.xlu1 %v4012_v30, %s3379_s26 }
 0x1d0   :  { %1047 = vrot.lane.b32.xlu2 %v4025_v28, %s3379_s26 }
 0x1d7   :  { %1508 = vrot.lane.b32.xlu0 %v3995_v31, %s3381_s0  ;;  %1516 = vrot.lane.b32.xlu1 %v3997_v4, %s3381_s0 }
 0x1d8   :  { %1506 = vrot.lane.b32.xlu2 %v3974_v39, %s3381_s0 }
 0x1df   :  { %1514 = vrot.lane.b32.xlu0 %v4012_v30, %s3381_s0  ;;  %1510 = vrot.lane.b32.xlu1 %v4014_v33, %s3381_s0 }
 0x1e0   :  { %1518 = vrot.lane.b32.xlu2 %v4016_v34, %s3381_s0 }
 0x1e7   :  { %1973 = vrot.lane.b32.xlu0 %v3997_v4, %s3383_s9  ;;  %1504 = vrot.lane.b32.xlu1 %v4025_v28, %s3381_s0 }
 0x1e8   :  { %1512 = vrot.lane.b32.xlu2 %v4027_v26, %s3381_s0 }
 0x1e9   :  { %v1090_v36 = vpop.permute.xlu2 %1089 }
 0x1ef   :  { %1963 = vrot.lane.b32.xlu0 %v3974_v39, %s3383_s9  ;;  %1971 = vrot.lane.b32.xlu1 %v4012_v30, %s3383_s9 }
 0x1f0   :  { %1965 = vrot.lane.b32.xlu2 %v3995_v31, %s3383_s9 }
 0x1f7   :  { %1810 = vrot.lane.b32.xlu0 %v3997_v4, %s3382_s8  ;;  %1961 = vrot.lane.b32.xlu1 %v4025_v28, %s3383_s9 }
 0x1f8   :  { %1802 = vrot.lane.b32.xlu2 %v3995_v31, %s3382_s8 }
 0x1fa   :  { %v1102_v22 = vpop.permute.xlu2 %1101 }
 0x1ff   :  { %1967 = vrot.lane.b32.xlu0 %v4014_v33, %s3383_s9  ;;  %1975 = vrot.lane.b32.xlu1 %v4016_v34, %s3383_s9 }
 0x200   :  { %1969 = vrot.lane.b32.xlu2 %v4027_v26, %s3383_s9 }
 0x202   :  { %v1096_v44 = vpop.permute.xlu2 %1095 }
 0x207   :  { %1800 = vrot.lane.b32.xlu0 %v3974_v39, %s3382_s8  ;;  %1804 = vrot.lane.b32.xlu1 %v4014_v33, %s3382_s8 }
 0x208   :  { %1812 = vrot.lane.b32.xlu2 %v4016_v34, %s3382_s8 }
 0x209   :  { %v1100_v37 = vpop.permute.xlu1 %1099  ;;  %v1092_v38 = vpop.permute.xlu0 %1091 }
 0x20a   :  { %v4107_v56 = vpop.permute.xlu2 %1345  ;;  %v1109_v47 = vsel %vm79_vm2, %v1100_v37, %v1092_v38  ;;  %v1105_v52 = vsel %vm79_vm2, %v1092_v38, %v1100_v37 }
 0x20b   :  { %v1115_v55 = vmul.f32 %v1109_v47, %v5164_v59  ;;  %v1116_v7 = vmul.f32 %v1105_v52, %v5165_v21 }
 0x20f   :  { %1806 = vrot.lane.b32.xlu0 %v4027_v26, %s3382_s8  ;;  %1808 = vrot.lane.b32.xlu1 %v4012_v30, %s3382_s8 }
 0x210   :  { %1798 = vrot.lane.b32.xlu2 %v4025_v28, %s3382_s8 }
 0x211   :  { %v1094_v2 = vpop.permute.xlu1 %1093  ;;  %v1098_v40 = vpop.permute.xlu0 %1097 }
 0x212   :  { %v1106_v48 = vsel %vm79_vm2, %v1094_v2, %v1102_v22  ;;  %v1110_v50 = vsel %vm79_vm2, %v1102_v22, %v1094_v2  ;;  %v4121_v51 = vpop.permute.xlu2 %1051  ;;  %v1108_v54 = vsel %vm79_vm2, %v1098_v40, %v1090_v36  ;;  %v1104_v60 = vsel %vm79_vm2, %v1090_v36, %v1098_v40 }
 0x213   :  { %v1117_v1 = vmul.f32 %v1110_v50, %v5164_v59  ;;  %v1118_v53 = vmul.f32 %v1106_v48, %v5165_v21  ;;  %v1113_v61 = vmul.f32 %v1108_v54, %v5164_v59  ;;  %v1114_v0 = vmul.f32 %v1104_v60, %v5165_v21  ;;  %v5168_v50 = vld [vmem:[#allocation6_spill] sm:$0xff] }
 0x214   :  { %v2452_v60 = vld [vmem:[%s5089_s5 + $0x10] sm:$0xff] }
 0x215   :  { %1165 = vmatpush.msra.mxu2 %v1117_v1  ;;  %1206 = vmatpush.msra.mxu3 %v1118_v53 }
 0x217   :  { %2291 = vrot.lane.b32.xlu0 %v3995_v31, %s3385_s11  ;;  %1166 = vmatpush.msra.mxu2 %v1115_v55 }
 0x218   :  { %1207 = vmatpush.msra.mxu3 %v1116_v7  ;;  %2297 = vrot.lane.b32.xlu2 %v4012_v30, %s3385_s11 }
 0x219   :  { %2299 = vrot.lane.b32.xlu1 %v3997_v4, %s3385_s11  ;;  %v1354_v24 = vpop.permute.xlu0 %1353  ;;  %1167 = vmatpush.msra.mxu2 %v1113_v61  ;;  %v1088_v11 = vpop.permute.xlu1 %1087 }
 0x21a   :  { %1208 = vmatpush.msra.mxu3 %v1114_v0  ;;  %v1350_v23 = vpop.permute.xlu2 %1349  ;;  %v1103_v18 = vsel %vm79_vm2, %v1088_v11, %v1096_v44  ;;  %v1107_v16 = vsel %vm79_vm2, %v1096_v44, %v1088_v11  ;;  %v1363_v58 = vsel %vm260_vm4, %v1354_v24, %v4107_v56  ;;  %v1359_v13 = vsel %vm260_vm4, %v4107_v56, %v1354_v24 }
 0x21b   :  { %v1111_v62 = vmul.f32 %v1107_v16, %v5164_v59  ;;  %v1112_v8 = vmul.f32 %v1103_v18, %v5165_v21  ;;  %v1369_v15 = vmul.f32 %v1363_v58, %v5166_v17  ;;  %v1370_v5 = vmul.f32 %v1359_v13, %v5167_v57  ;;  %v5169_v59 = vld [vmem:[#allocation7_spill] sm:$0xff]  ;;  %v3107_v21 = vld [vmem:[%s5088_s4 + $0x60] sm:$0xff] }
 0x21c   :  { %v5170_v13 = vld [vmem:[#allocation12_spill] sm:$0xff] }
 0x21d   :  { %1168 = vmatpush.msra.mxu2 %v1111_v62  ;;  %1209 = vmatpush.msra.mxu3 %v1112_v8  ;;  %v2450_v62 = vld [vmem:[%s5089_s5] sm:$0xff]  ;;  %v2451_v8 = vld [vmem:[%s5089_s5 + $0x8] sm:$0xff] }
 0x21e   :  { %3111 = vmatmul.msk.f32.vlgmr.msra.gmra.mxu2 %vm1128_vm10, %v3103_v42  ;;  %3119 = vmatmul.msk.f32.vlgmr.msra.gmra.mxu3 %vm1128_vm10, %v3103_v42 }
 0x21f   :  { %2128 = vrot.lane.b32.xlu0 %v3995_v31, %s3384_s10 }
 0x220   :  { %2287 = vrot.lane.b32.xlu2 %v4025_v28, %s3385_s11 }
 0x221   :  { %2289 = vrot.lane.b32.xlu1 %v3974_v39, %s3385_s11  ;;  %v1344_v32 = vpop.permute.xlu0 %1343  ;;  %v1352_v45 = vpop.permute.xlu1 %1351 }
 0x222   :  { %v1062_v9 = vpop.permute.xlu2 %1061  ;;  %v1362_v29 = vsel %vm260_vm4, %v1352_v45, %v1344_v32  ;;  %v1358_v25 = vsel %vm260_vm4, %v1344_v32, %v1352_v45  ;;  %v3109_v45 = vld [vmem:[%s5088_s4 + $0x70] sm:$0xff] }
 0x223   :  { %v1367_v22 = vmul.f32 %v1362_v29, %v5166_v17  ;;  %v1368_v37 = vmul.f32 %v1358_v25, %v5167_v57 }
 0x226   :  { %3112 = vmatmul.msk.f32.gmra.mxu2 %vm1128_vm10, %v3104_v6  ;;  %3120 = vmatmul.msk.f32.gmra.mxu3 %vm1128_vm10, %v3104_v6  ;;  %v2455_v6 = vld [vmem:[%s5089_s5 + $0x28] sm:$0xff] }
 0x227   :  { %2295 = vrot.lane.b32.xlu0 %v4027_v26, %s3385_s11 }
 0x228   :  { %2301 = vrot.lane.b32.xlu2 %v4016_v34, %s3385_s11 }
 0x229   :  { %2136 = vrot.lane.b32.xlu1 %v3997_v4, %s3384_s10  ;;  %v1060_v12 = vpop.permute.xlu0 %1059  ;;  %v1342_v35 = vpop.permute.xlu1 %1341 }
 0x22a   :  { %v4169_v41 = vpop.permute.xlu2 %1047  ;;  %v1361_v36 = vsel %vm260_vm4, %v1350_v23, %v1342_v35  ;;  %v1357_v44 = vsel %vm260_vm4, %v1342_v35, %v1350_v23  ;;  %v1065_v54 = vsel %vm53_vm0, %v4121_v51, %v1060_v12  ;;  %v1069_v55 = vsel %vm53_vm0, %v1060_v12, %v4121_v51  ;;  %v3108_v23 = vld [vmem:[%s5088_s4 + $0x68] sm:$0xff]  ;;  %v2456_v12 = vld [vmem:[%s5089_s5 + $0x30] sm:$0xff] }
 0x22b   :  { %v1365_v38 = vmul.f32 %v1361_v36, %v5166_v17  ;;  %v1366_v40 = vmul.f32 %v1357_v44, %v5167_v57  ;;  %v1075_v51 = vmul.f32 %v1069_v55, %v5168_v50  ;;  %v1080_v35 = vld [vmem:[%s5088_s4 + $0x8] sm:$0xff]  ;;  %v3145_v55 = vld [vmem:[%s5088_s4 + $0x90] sm:$0xff] }
 0x22e   :  { %3113 = vmatmul.msk.f32.gmra.mxu2 %vm1128_vm10, %v3105_v49  ;;  %3121 = vmatmul.msk.f32.gmra.mxu3 %vm1128_vm10, %v3105_v49 }
 0x22f   :  { %2138 = vrot.lane.b32.xlu0 %v4016_v34, %s3384_s10 }
 0x230   :  { %2130 = vrot.lane.b32.xlu2 %v4014_v33, %s3384_s10 }
 0x231   :  { %2293 = vrot.lane.b32.xlu1 %v4014_v33, %s3385_s11  ;;  %v1348_v10 = vpop.permute.xlu0 %1347  ;;  %v1356_v3 = vpop.permute.xlu1 %1355 }
 0x232   :  { %v4185_v43 = vpop.permute.xlu2 %1506  ;;  %v1360_v27 = vsel %vm260_vm4, %v1348_v10, %v1356_v3  ;;  %v1364_v63 = vsel %vm260_vm4, %v1356_v3, %v1348_v10 }
 0x233   :  { %v1371_v19 = vmul.f32 %v1364_v63, %v5166_v17  ;;  %v1372_v20 = vmul.f32 %v1360_v27, %v5167_v57 }
 0x235   :  { %1418 = vmatpush.msrb.mxu2 %v1371_v19  ;;  %1459 = vmatpush.msrb.mxu3 %v1372_v20  ;;  %v5171_v19 = vld [vmem:[#allocation13_spill] sm:$0xff]  ;;  %v3110_v20 = vld [vmem:[%s5088_s4 + $0x78] sm:$0xff] }
 0x236   :  { %3114 = vmatmul.msk.f32.gmra.mxu2 %vm1128_vm10, %v3106_v14  ;;  %3122 = vmatmul.msk.f32.gmra.mxu3 %vm1128_vm10, %v3106_v14 }
 0x237   :  { %2124 = vrot.lane.b32.xlu0 %v4025_v28, %s3384_s10  ;;  %1419 = vmatpush.msrb.mxu2 %v1369_v15 }
 0x238   :  { %2134 = vrot.lane.b32.xlu2 %v4012_v30, %s3384_s10  ;;  %1460 = vmatpush.msrb.mxu3 %v1370_v5  ;;  %v1081_v5 = vld [vmem:[%s5088_s4 + $0x10] sm:$0xff] }
 0x239   :  { %2126 = vrot.lane.b32.xlu1 %v3974_v39, %s3384_s10  ;;  %v1050_v56 = vpop.permute.xlu0 %1049  ;;  %1420 = vmatpush.msrb.mxu2 %v1367_v22  ;;  %v1054_v2 = vpop.permute.xlu1 %1053 }
 0x23a   :  { %1461 = vmatpush.msrb.mxu3 %v1368_v37  ;;  %v1066_v47 = vsel %vm53_vm0, %v1054_v2, %v1062_v9  ;;  %v1070_v48 = vsel %vm53_vm0, %v1062_v9, %v1054_v2  ;;  %v4230_v53 = vpop.permute.xlu2 %1518  ;;  %v2454_v9 = vld [vmem:[%s5089_s5 + $0x20] sm:$0xff] }
 0x23b   :  { %v1077_v52 = vmul.f32 %v1070_v48, %v5168_v50  ;;  %v1078_v1 = vmul.f32 %v1066_v47, %v5169_v59  ;;  %1421 = vmatpush.msrb.mxu2 %v1365_v38  ;;  %v3143_v47 = vld [vmem:[%s5088_s4 + $0x80] sm:$0xff]  ;;  %v1082_v48 = vld [vmem:[%s5088_s4 + $0x18] sm:$0xff] }
 0x23c   :  { %1462 = vmatpush.msrb.mxu3 %v1366_v40 }
 0x23d   :  { %1712 = vmatpush.msra.mxu2 %v4014_v33  ;;  %1271 = vmatpush.msrb.mxu0 %v1077_v52  ;;  %v2453_v33 = vld [vmem:[%s5089_s5 + $0x18] sm:$0xff] }
 0x23e   :  { %1753 = vmatpush.msra.mxu3 %v4016_v34  ;;  %1312 = vmatpush.msrb.mxu1 %v1078_v1  ;;  %v1076_v34 = vmul.f32 %v1065_v54, %v5169_v59  ;;  %v3144_v1 = vld [vmem:[%s5088_s4 + $0x88] sm:$0xff] }
 0x23f   :  { %3115 = vmatmul.msk.f32.gmra.mxu2 %vm1128_vm10, %v3107_v21  ;;  %3123 = vmatmul.msk.f32.gmra.mxu3 %vm1128_vm10, %v3107_v21  ;;  %v1083_v21 = vld [vmem:[%s5088_s4 + $0x20] sm:$0xff] }
 0x240   :  { %1713 = vmatpush.msra.mxu2 %v3995_v31  ;;  %1754 = vmatpush.msra.mxu3 %v3997_v4 }
 0x241   :  { %2470 = vperm.xlu0 %3348, %v2452_v60   ;;  %2475 = vperm.xlu2 %3347, %v2453_v33   ;;  %v1056_v7 = vpop.permute.xlu0 %1055  ;;  %v1058_v61 = vpop.permute.xlu1 %1057  ;;  %v1084_v33 = vld [vmem:[%s5088_s4 + $0x28] sm:$0xff] }
 0x242   :  { %2132 = vrot.lane.b32.xlu1 %v4027_v26, %s3384_s10  ;;  %1272 = vmatpush.msrb.mxu0 %v1075_v51  ;;  %v1064_v0 = vsel %vm53_vm0, %v1050_v56, %v1058_v61  ;;  %v1067_v31 = vsel %vm53_vm0, %v1056_v7, %v4169_v41  ;;  %v1068_v4 = vsel %vm53_vm0, %v1058_v61, %v1050_v56  ;;  %v1513_v16 = vpop.permute.xlu2 %1512 }
 0x243   :  { %1313 = vmatpush.msrb.mxu1 %v1076_v34  ;;  %1714 = vmatpush.msra.mxu2 %v3974_v39  ;;  %v1073_v24 = vmul.f32 %v1068_v4, %v5168_v50  ;;  %v1074_v11 = vmul.f32 %v1064_v0, %v5169_v59  ;;  %v1063_v39 = vsel %vm53_vm0, %v4169_v41, %v1056_v7  ;;  %v5172_v4 = vld [vmem:[#allocation16_spill] sm:$0xff] }
 0x244   :  { %1755 = vmatpush.msra.mxu3 %v4012_v30  ;;  %v2457_v30 = vld [vmem:[%s5089_s5 + $0x38] sm:$0xff]  ;;  %v1071_v18 = vmul.f32 %v1067_v31, %v5168_v50 }
 0x245   :  { %1715 = vmatpush.msra.mxu2 %v4025_v28  ;;  %1273 = vmatpush.msrb.mxu0 %v1073_v24  ;;  %v1079_v28 = vld [vmem:[%s5088_s4] sm:$0xff] }
 0x246   :  { %1756 = vmatpush.msra.mxu3 %v4027_v26  ;;  %1314 = vmatpush.msrb.mxu1 %v1074_v11  ;;  %v1072_v26 = vmul.f32 %v1063_v39, %v5169_v59  ;;  %v5173_v11 = vld [vmem:[#allocation17_spill] sm:$0xff]  ;;  %v3146_v39 = vld [vmem:[%s5088_s4 + $0x98] sm:$0xff] }
 0x247   :  { %3116 = vmatmul.msk.f32.gmra.mxu2 %vm1128_vm10, %v3108_v23  ;;  %3124 = vmatmul.msk.f32.gmra.mxu3 %vm1128_vm10, %v3108_v23 }
 0x248   :  { %1274 = vmatpush.msrb.mxu0 %v1071_v18  ;;  %1315 = vmatpush.msrb.mxu1 %v1072_v26 }
 0x249   :  { %2495 = vperm.xlu0 %3348, %v2457_v30   ;;  %2460 = vperm.xlu2 %3347, %v2450_v62   ;;  %v1509_v42 = vpop.permute.xlu0 %1508  ;;  %v1517_v32 = vpop.permute.xlu1 %1516 }
 0x24a   :  { %2465 = vperm.xlu1 %3349, %v2451_v8   ;;  %3127 = vmatmul.msk.f32.vlgmr.msrb.gmra.mxu0 %vm1128_vm10, %v1079_v28  ;;  %v4308_v41 = vpop.permute.xlu2 %1965  ;;  %v1522_v27 = vsel %vm371_vm5, %v1509_v42, %v1517_v32  ;;  %v1526_v63 = vsel %vm371_vm5, %v1517_v32, %v1509_v42 }
 0x24b   :  { %3135 = vmatmul.msk.f32.vlgmr.msrb.gmra.mxu1 %vm1128_vm10, %v1079_v28  ;;  %v1532_v29 = vmul.f32 %v1526_v63, %v5170_v13  ;;  %v1533_v15 = vmul.f32 %v1522_v27, %v5171_v19  ;;  %v1085_v28 = vld [vmem:[%s5088_s4 + $0x30] sm:$0xff] }
 0x24c   :  { %v5175_v63 = vld [vmem:[#allocation15_spill] sm:$0xff] }
 0x24f   :  { %3117 = vmatmul.msk.f32.gmra.mxu2 %vm1128_vm10, %v3109_v45  ;;  %3125 = vmatmul.msk.f32.gmra.mxu3 %vm1128_vm10, %v3109_v45 }
 0x251   :  { %2480 = vperm.xlu0 %3348, %v2454_v9   ;;  %2485 = vperm.xlu2 %3347, %v2455_v6   ;;  %v1515_v49 = vpop.permute.xlu0 %1514  ;;  %v1511_v10 = vpop.permute.xlu1 %1510 }
 0x252   :  { %2490 = vperm.xlu1 %3349, %v2456_v12   ;;  %3128 = vmatmul.msk.f32.gmra.mxu0 %vm1128_vm10, %v1080_v35  ;;  %v1523_v3 = vsel %vm371_vm5, %v1511_v10, %v4230_v53  ;;  %v1527_v58 = vsel %vm371_vm5, %v4230_v53, %v1511_v10  ;;  %v1521_v14 = vsel %vm371_vm5, %v4185_v43, %v1515_v49  ;;  %v1803_v38 = vpop.permute.xlu2 %1802 }
 0x253   :  { %3136 = vmatmul.msk.f32.gmra.mxu1 %vm1128_vm10, %v1080_v35  ;;  %v1534_v17 = vmul.f32 %v1527_v58, %v5170_v13  ;;  %v1535_v57 = vmul.f32 %v1523_v3, %v5171_v19  ;;  %v1525_v25 = vsel %vm371_vm5, %v1515_v49, %v4185_v43  ;;  %v1531_v36 = vmul.f32 %v1521_v14, %v5171_v19  ;;  %v5174_v58 = vld [vmem:[#allocation14_spill] sm:$0xff] }
 0x254   :  { %v1530_v22 = vmul.f32 %v1525_v25, %v5170_v13 }
 0x255   :  { %1581 = vmatpush.msra.mxu0 %v1534_v17  ;;  %1622 = vmatpush.msra.mxu1 %v1535_v57  ;;  %v3147_v17 = vld [vmem:[%s5088_s4 + $0xa0] sm:$0xff] }
 0x257   :  { %3118 = vmatmul.msk.f32.gmra.mxu2 %vm1128_vm10, %v3110_v20  ;;  %3126 = vmatmul.msk.f32.gmra.mxu3 %vm1128_vm10, %v3110_v20  ;;  %v1086_v20 = vld [vmem:[%s5088_s4 + $0x38] sm:$0xff] }
 0x258   :  { %1582 = vmatpush.msra.mxu0 %v1532_v29  ;;  %1623 = vmatpush.msra.mxu1 %v1533_v15 }
 0x259   :  { %v1974_v44 = vpop.permute.xlu0 %1973  ;;  %v1505_v37 = vpop.permute.xlu1 %1504 }
 0x25a   :  { %3129 = vmatmul.msk.f32.gmra.mxu0 %vm1128_vm10, %v1081_v5  ;;  %1624 = vmatpush.msra.mxu1 %v1531_v36  ;;  %v1520_v43 = vsel %vm371_vm5, %v1505_v37, %v1513_v16  ;;  %v1524_v56 = vsel %vm371_vm5, %v1513_v16, %v1505_v37  ;;  %v1970_v59 = vpop.permute.xlu2 %1969  ;;  %v1979_v0 = vsel %vm682_vm7, %v4308_v41, %v1974_v44 }
 0x25b   :  { %3137 = vmatmul.msk.f32.gmra.mxu1 %vm1128_vm10, %v1081_v5  ;;  %1583 = vmatpush.msra.mxu0 %v1530_v22  ;;  %v1528_v2 = vmul.f32 %v1524_v56, %v5170_v13  ;;  %v1529_v40 = vmul.f32 %v1520_v43, %v5171_v19  ;;  %v1983_v31 = vsel %vm682_vm7, %v1974_v44, %v4308_v41 }
 0x25c   :  { %v1989_v18 = vmul.f32 %v1979_v0, %v5172_v4  ;;  %v1990_v16 = vmul.f32 %v1983_v31, %v5173_v11 }
 0x25d   :  { %1584 = vmatpush.msra.mxu0 %v1528_v2  ;;  %1625 = vmatpush.msra.mxu1 %v1529_v40  ;;  %v3167_v2 = vld [vmem:[%s5088_s4 + $0xc0] sm:$0xff] }
 0x25f   :  { %3151 = vmatmul.msk.f32.vlgmr.msrb.gmra.mxu2 %vm1128_vm10, %v3143_v47  ;;  %3159 = vmatmul.msk.f32.vlgmr.msrb.gmra.mxu3 %vm1128_vm10, %v3143_v47 }
 0x261   :  { %v1964_v50 = vpop.permute.xlu0 %1963  ;;  %v1972_v52 = vpop.permute.xlu1 %1971 }
 0x262   :  { %3130 = vmatmul.msk.f32.gmra.mxu0 %vm1128_vm10, %v1082_v48  ;;  %v1813_v60 = vpop.permute.xlu2 %1812  ;;  %v1978_v30 = vsel %vm682_vm7, %v1964_v50, %v1972_v52  ;;  %v1982_v62 = vsel %vm682_vm7, %v1972_v52, %v1964_v50  ;;  %v3149_v50 = vld [vmem:[%s5088_s4 + $0xb0] sm:$0xff]  ;;  %v3168_v52 = vld [vmem:[%s5088_s4 + $0xc8] sm:$0xff] }
 0x263   :  { %3138 = vmatmul.msk.f32.gmra.mxu1 %vm1128_vm10, %v1082_v48  ;;  %v1987_v26 = vmul.f32 %v1978_v30, %v5172_v4  ;;  %v1988_v45 = vmul.f32 %v1982_v62, %v5173_v11 }
 0x267   :  { %3152 = vmatmul.msk.f32.gmra.mxu2 %vm1128_vm10, %v3144_v1  ;;  %3160 = vmatmul.msk.f32.gmra.mxu3 %vm1128_vm10, %v3144_v1 }
 0x269   :  { %v1811_v53 = vpop.permute.xlu0 %1810  ;;  %v1962_v54 = vpop.permute.xlu1 %1961 }
 0x26a   :  { %3131 = vmatmul.msk.f32.gmra.mxu0 %vm1128_vm10, %v1083_v21  ;;  %v1977_v8 = vsel %vm682_vm7, %v1962_v54, %v1970_v59  ;;  %v1799_v42 = vpop.permute.xlu2 %1798  ;;  %v1981_v32 = vsel %vm682_vm7, %v1970_v59, %v1962_v54  ;;  %v1816_v9 = vsel %vm571_vm6, %v1803_v38, %v1811_v53  ;;  %v1820_v6 = vsel %vm571_vm6, %v1811_v53, %v1803_v38  ;;  %v3148_v38 = vld [vmem:[%s5088_s4 + $0xa8] sm:$0xff]  ;;  %v3169_v54 = vld [vmem:[%s5088_s4 + $0xd0] sm:$0xff] }
 0x26b   :  { %3139 = vmatmul.msk.f32.gmra.mxu1 %vm1128_vm10, %v1083_v21  ;;  %v1985_v41 = vmul.f32 %v1977_v8, %v5172_v4  ;;  %v1986_v3 = vmul.f32 %v1981_v32, %v5173_v11  ;;  %v1826_v19 = vmul.f32 %v1816_v9, %v5174_v58  ;;  %v1827_v57 = vmul.f32 %v1820_v6, %v5175_v63  ;;  %v3150_v21 = vld [vmem:[%s5088_s4 + $0xb8] sm:$0xff]  ;;  %v3192_v6 = vld [vmem:[%s5088_s4 + $0x108] sm:$0xff] }
 0x26f   :  { %3153 = vmatmul.msk.f32.gmra.mxu2 %vm1128_vm10, %v3145_v55  ;;  %3161 = vmatmul.msk.f32.gmra.mxu3 %vm1128_vm10, %v3145_v55 }
 0x271   :  { %v1968_v51 = vpop.permute.xlu0 %1967  ;;  %v1976_v34 = vpop.permute.xlu1 %1975 }
 0x272   :  { %3132 = vmatmul.msk.f32.gmra.mxu0 %vm1128_vm10, %v1084_v33  ;;  %v1980_v7 = vsel %vm682_vm7, %v1968_v51, %v1976_v34  ;;  %v1984_v61 = vsel %vm682_vm7, %v1976_v34, %v1968_v51  ;;  %v4436_v15 = vpop.permute.xlu2 %2297  ;;  %v3170_v51 = vld [vmem:[%s5088_s4 + $0xd8] sm:$0xff] }
 0x273   :  { %3140 = vmatmul.msk.f32.gmra.mxu1 %vm1128_vm10, %v1084_v33  ;;  %v1991_v24 = vmul.f32 %v1980_v7, %v5172_v4  ;;  %v1992_v23 = vmul.f32 %v1984_v61, %v5173_v11  ;;  %v3191_v33 = vld [vmem:[%s5088_s4 + $0x100] sm:$0xff]  ;;  %v5176_v11 = vld [vmem:[#allocation18_spill] sm:$0xff] }
 0x275   :  { %2038 = vmatpush.msrb.mxu2 %v1991_v24  ;;  %2079 = vmatpush.msrb.mxu3 %v1992_v23 }
 0x277   :  { %3154 = vmatmul.msk.f32.gmra.mxu2 %vm1128_vm10, %v3146_v39  ;;  %3162 = vmatmul.msk.f32.gmra.mxu3 %vm1128_vm10, %v3146_v39  ;;  %v5177_v39 = vld [vmem:[#allocation19_spill] sm:$0xff] }
 0x278   :  { %2039 = vmatpush.msrb.mxu2 %v1989_v18  ;;  %2080 = vmatpush.msrb.mxu3 %v1990_v16 }
 0x279   :  { %v1801_v12 = vpop.permute.xlu0 %1800  ;;  %v1805_v35 = vpop.permute.xlu1 %1804 }
 0x27a   :  { %3133 = vmatmul.msk.f32.gmra.mxu0 %vm1128_vm10, %v1085_v28  ;;  %2040 = vmatpush.msrb.mxu2 %v1987_v26  ;;  %v1817_v49 = vsel %vm571_vm6, %v1805_v35, %v1813_v60  ;;  %v1821_v10 = vsel %vm571_vm6, %v1813_v60, %v1805_v35  ;;  %v2288_v48 = vpop.permute.xlu2 %2287 }
 0x27b   :  { %3141 = vmatmul.msk.f32.gmra.mxu1 %vm1128_vm10, %v1085_v28  ;;  %2081 = vmatpush.msrb.mxu3 %v1988_v45  ;;  %v1828_v27 = vmul.f32 %v1817_v49, %v5174_v58  ;;  %v1829_v13 = vmul.f32 %v1821_v10, %v5175_v63  ;;  %v5179_v45 = vld [vmem:[#allocation21_spill] sm:$0xff] }
 0x27c   :  { %2041 = vmatpush.msrb.mxu2 %v1985_v41 }
 0x27d   :  { %2082 = vmatpush.msrb.mxu3 %v1986_v3  ;;  %1875 = vmatpush.msrb.mxu0 %v1828_v27  ;;  %v3171_v27 = vld [vmem:[%s5088_s4 + $0xe0] sm:$0xff] }
 0x27e   :  { %1916 = vmatpush.msrb.mxu1 %v1829_v13 }
 0x27f   :  { %3155 = vmatmul.msk.f32.gmra.mxu2 %vm1128_vm10, %v3147_v17  ;;  %3163 = vmatmul.msk.f32.gmra.mxu3 %vm1128_vm10, %v3147_v17 }
 0x280   :  { %1876 = vmatpush.msrb.mxu0 %v1826_v19  ;;  %1917 = vmatpush.msrb.mxu1 %v1827_v57 }
 0x281   :  { %v1807_v14 = vpop.permute.xlu0 %1806  ;;  %v1809_v29 = vpop.permute.xlu1 %1808 }
 0x282   :  { %3134 = vmatmul.msk.f32.gmra.mxu0 %vm1128_vm10, %v1086_v20  ;;  %v1815_v25 = vsel %vm571_vm6, %v1801_v12, %v1809_v29  ;;  %v1819_v5 = vsel %vm571_vm6, %v1809_v29, %v1801_v12  ;;  %v1814_v36 = vsel %vm571_vm6, %v1799_v42, %v1807_v14  ;;  %v1818_v22 = vsel %vm571_vm6, %v1807_v14, %v1799_v42  ;;  %v2302_v53 = vpop.permute.xlu2 %2301  ;;  %v5178_v42 = vld [vmem:[#allocation20_spill] sm:$0xff] }
 0x283   :  { %3142 = vmatmul.msk.f32.gmra.mxu1 %vm1128_vm10, %v1086_v20  ;;  %v1824_v44 = vmul.f32 %v1815_v25, %v5174_v58  ;;  %v1825_v37 = vmul.f32 %v1819_v5, %v5175_v63  ;;  %v1822_v43 = vmul.f32 %v1814_v36, %v5174_v58  ;;  %v1823_v56 = vmul.f32 %v1818_v22, %v5175_v63 }
 0x285   :  { %1877 = vmatpush.msrb.mxu0 %v1824_v44  ;;  %1918 = vmatpush.msrb.mxu1 %v1825_v37  ;;  %v3193_v44 = vld [vmem:[%s5088_s4 + $0x110] sm:$0xff]  ;;  %v3172_v37 = vld [vmem:[%s5088_s4 + $0xe8] sm:$0xff] }
 0x287   :  { %3156 = vmatmul.msk.f32.gmra.mxu2 %vm1128_vm10, %v3148_v38  ;;  %3164 = vmatmul.msk.f32.gmra.mxu3 %vm1128_vm10, %v3148_v38 }
 0x288   :  { %1878 = vmatpush.msrb.mxu0 %v1822_v43  ;;  %1919 = vmatpush.msrb.mxu1 %v1823_v56 }
 0x289   :  { %v2292_v40 = vpop.permute.xlu0 %2291 }
 0x28a   :  { %3175 = vmatmul.msk.f32.vlgmr.msra.gmra.mxu0 %vm1128_vm10, %v3167_v2  ;;  %v2131_v34 = vpop.permute.xlu2 %2130 }
 0x28b   :  { %3183 = vmatmul.msk.f32.vlgmr.msra.gmra.mxu1 %vm1128_vm10, %v3167_v2  ;;  %v2300_v47 = vpop.permute.xlu1 %2299 }
 0x28c   :  { %v2305_v24 = vsel %vm904_vm9, %v2292_v40, %v2300_v47  ;;  %v2309_v26 = vsel %vm904_vm9, %v2300_v47, %v2292_v40 }
 0x28d   :  { %v2315_v10 = vmul.f32 %v2305_v24, %v5178_v42  ;;  %v2316_v3 = vmul.f32 %v2309_v26, %v5179_v45  ;;  %v3197_v24 = vld [vmem:[%s5088_s4 + $0x130] sm:$0xff] }
 0x28f   :  { %3157 = vmatmul.msk.f32.gmra.mxu2 %vm1128_vm10, %v3149_v50  ;;  %3165 = vmatmul.msk.f32.gmra.mxu3 %vm1128_vm10, %v3149_v50 }
 0x291   :  { %v2129_v59 = vpop.permute.xlu0 %2128 }
 0x292   :  { %3176 = vmatmul.msk.f32.gmra.mxu0 %vm1128_vm10, %v3168_v52  ;;  %v2135_v20 = vpop.permute.xlu2 %2134 }
 0x293   :  { %3184 = vmatmul.msk.f32.gmra.mxu1 %vm1128_vm10, %v3168_v52  ;;  %v2290_v1 = vpop.permute.xlu1 %2289  ;;  %v3194_v52 = vld [vmem:[%s5088_s4 + $0x118] sm:$0xff] }
 0x294   :  { %v2304_v12 = vsel %vm904_vm9, %v2290_v1, %v4436_v15  ;;  %v2308_v35 = vsel %vm904_vm9, %v4436_v15, %v2290_v1 }
 0x295   :  { %v2313_v17 = vmul.f32 %v2304_v12, %v5178_v42  ;;  %v2314_v19 = vmul.f32 %v2308_v35, %v5179_v45 }
 0x297   :  { %3158 = vmatmul.msk.f32.gmra.mxu2 %vm1128_vm10, %v3150_v21  ;;  %3166 = vmatmul.msk.f32.gmra.mxu3 %vm1128_vm10, %v3150_v21 }
 0x299   :  { %v2296_v55 = vpop.permute.xlu0 %2295 }
 0x29a   :  { %3177 = vmatmul.msk.f32.gmra.mxu0 %vm1128_vm10, %v3169_v54  ;;  %v2303_v58 = vsel %vm904_vm9, %v2288_v48, %v2296_v55  ;;  %v2307_v63 = vsel %vm904_vm9, %v2296_v55, %v2288_v48 }
 0x29b   :  { %3185 = vmatmul.msk.f32.gmra.mxu1 %vm1128_vm10, %v3169_v54  ;;  %v2137_v60 = vpop.permute.xlu1 %2136  ;;  %v2311_v14 = vmul.f32 %v2303_v58, %v5178_v42  ;;  %v2312_v15 = vmul.f32 %v2307_v63, %v5179_v45  ;;  %v3174_v54 = vld [vmem:[%s5088_s4 + $0xf8] sm:$0xff]  ;;  %v3240_v58 = vld [vmem:[%s5088_s4 + $0x188] sm:$0xff] }
 0x29c   :  { %v2142_v16 = vsel %vm793_vm8, %v2129_v59, %v2137_v60  ;;  %v2146_v62 = vsel %vm793_vm8, %v2137_v60, %v2129_v59  ;;  %v3173_v59 = vld [vmem:[%s5088_s4 + $0xf0] sm:$0xff] }
 0x29d   :  { %v2152_v41 = vmul.f32 %v2142_v16, %v5176_v11  ;;  %v2153_v49 = vmul.f32 %v2146_v62, %v5177_v39  ;;  %v3198_v16 = vld [vmem:[%s5088_s4 + $0x138] sm:$0xff] }
 0x29f   :  { %3199 = vmatmul.msk.f32.vlgmr.msra.gmra.mxu2 %vm1128_vm10, %v3191_v33  ;;  %3207 = vmatmul.msk.f32.vlgmr.msra.gmra.mxu3 %vm1128_vm10, %v3191_v33  ;;  %v3196_v33 = vld [vmem:[%s5088_s4 + $0x128] sm:$0xff] }
 0x2a1   :  { %v2139_v7 = vpop.permute.xlu0 %2138  ;;  %v4490_v61 = vpop.f32.mrf.mxu2 }
 0x2a2   :  { %3178 = vmatmul.msk.f32.gmra.mxu0 %vm1128_vm10, %v3170_v51  ;;  %v2143_v0 = vsel %vm793_vm8, %v2131_v34, %v2139_v7  ;;  %v2147_v31 = vsel %vm793_vm8, %v2139_v7, %v2131_v34  ;;  %v4497_v4 = vpop.f32.mrf.mxu3  ;;  %v3215_v7 = vld [vmem:[%s5088_s4 + $0x140] sm:$0xff] }
 0x2a3   :  { %3186 = vmatmul.msk.f32.gmra.mxu1 %vm1128_vm10, %v3170_v51  ;;  %v2154_v23 = vmul.f32 %v2143_v0, %v5176_v11  ;;  %v2155_v30 = vmul.f32 %v2147_v31, %v5177_v39  ;;  %v2294_v18 = vpop.permute.xlu1 %2293 }
 0x2a4   :  { %v2306_v8 = vsel %vm904_vm9, %v2294_v18, %v2302_v53  ;;  %v2310_v28 = vsel %vm904_vm9, %v2302_v53, %v2294_v18  ;;  %v3195_v53 = vld [vmem:[%s5088_s4 + $0x120] sm:$0xff] }
 0x2a5   :  { %v2317_v32 = vmul.f32 %v2306_v8, %v5178_v42  ;;  %v2318_v9 = vmul.f32 %v2310_v28, %v5179_v45  ;;  %2201 = vmatpush.msra.mxu0 %v2154_v23  ;;  %2242 = vmatpush.msra.mxu1 %v2155_v30  ;;  %v3217_v28 = vld [vmem:[%s5088_s4 + $0x150] sm:$0xff] }
 0x2a7   :  { %2364 = vmatpush.msra.mxu2 %v2317_v32  ;;  %2405 = vmatpush.msra.mxu3 %v2318_v9  ;;  %v3239_v32 = vld [vmem:[%s5088_s4 + $0x180] sm:$0xff] }
 0x2a8   :  { %3200 = vmatmul.msk.f32.gmra.mxu2 %vm1128_vm10, %v3192_v6  ;;  %3208 = vmatmul.msk.f32.gmra.mxu3 %vm1128_vm10, %v3192_v6  ;;  %v3218_v6 = vld [vmem:[%s5088_s4 + $0x158] sm:$0xff] }
 0x2a9   :  { %2202 = vmatpush.msra.mxu0 %v2152_v41  ;;  %2243 = vmatpush.msra.mxu1 %v2153_v49  ;;  %v4538_v13 = vpop.f32.mrf.mxu2  ;;  %v2125_v56 = vpop.permute.xlu0 %2124 }
 0x2aa   :  { %2365 = vmatpush.msra.mxu2 %v2315_v10  ;;  %2406 = vmatpush.msra.mxu3 %v2316_v3  ;;  %v4542_v57 = vpop.f32.mrf.mxu3 }
 0x2ab   :  { %3179 = vmatmul.msk.f32.gmra.mxu0 %vm1128_vm10, %v3171_v27  ;;  %3187 = vmatmul.msk.f32.gmra.mxu1 %vm1128_vm10, %v3171_v27  ;;  %v2127_v29 = vpop.permute.xlu1 %2126 }
 0x2ac   :  { %2366 = vmatpush.msra.mxu2 %v2313_v17  ;;  %2407 = vmatpush.msra.mxu3 %v2314_v19  ;;  %v2141_v25 = vsel %vm793_vm8, %v2127_v29, %v2135_v20  ;;  %v2145_v5 = vsel %vm793_vm8, %v2135_v20, %v2127_v29 }
 0x2ad   :  { %v2150_v36 = vmul.f32 %v2141_v25, %v5176_v11  ;;  %v2151_v22 = vmul.f32 %v2145_v5, %v5177_v39 }
 0x2ae   :  { %2367 = vmatpush.msra.mxu2 %v2311_v14  ;;  %2408 = vmatpush.msra.mxu3 %v2312_v15  ;;  %v3241_v15 = vld [vmem:[%s5088_s4 + $0x190] sm:$0xff] }
 0x2af   :  { %2203 = vmatpush.msra.mxu0 %v2150_v36  ;;  %2244 = vmatpush.msra.mxu1 %v2151_v22 }
 0x2b0   :  { %3201 = vmatmul.msk.f32.gmra.mxu2 %vm1128_vm10, %v3193_v44  ;;  %3209 = vmatmul.msk.f32.gmra.mxu3 %vm1128_vm10, %v3193_v44 }
 0x2b1   :  { %v4562_v38 = vpop.f32.mrf.mxu2 }
 0x2b2   :  { %v4564_v43 = vpop.f32.mrf.mxu3 }
 0x2b3   :  { %3180 = vmatmul.msk.f32.gmra.mxu0 %vm1128_vm10, %v3172_v37  ;;  %3188 = vmatmul.msk.f32.gmra.mxu1 %vm1128_vm10, %v3172_v37 }
 0x2b4   :  { %v2133_v2 = vpop.permute.xlu1 %2132 }
 0x2b5   :  { %v2140_v40 = vsel %vm793_vm8, %v2125_v56, %v2133_v2  ;;  %v2144_v47 = vsel %vm793_vm8, %v2133_v2, %v2125_v56  ;;  %v3242_v2 = vld [vmem:[%s5088_s4 + $0x198] sm:$0xff] }
 0x2b6   :  { %v2148_v48 = vmul.f32 %v2140_v40, %v5176_v11  ;;  %v2149_v50 = vmul.f32 %v2144_v47, %v5177_v39  ;;  %v3216_v39 = vld [vmem:[%s5088_s4 + $0x148] sm:$0xff] }
 0x2b8   :  { %2204 = vmatpush.msra.mxu0 %v2148_v48  ;;  %2245 = vmatpush.msra.mxu1 %v2149_v50 }
 0x2b9   :  { %3202 = vmatmul.msk.f32.gmra.mxu2 %vm1128_vm10, %v3194_v52  ;;  %3210 = vmatmul.msk.f32.gmra.mxu3 %vm1128_vm10, %v3194_v52  ;;  %v4582_v1 = vpop.f32.mrf.mxu2 }
 0x2ba   :  { %v4584_v21 = vpop.f32.mrf.mxu3 }
 0x2bb   :  { %3181 = vmatmul.msk.f32.gmra.mxu0 %vm1128_vm10, %v3173_v59  ;;  %3189 = vmatmul.msk.f32.gmra.mxu1 %vm1128_vm10, %v3173_v59 }
 0x2c1   :  { %3203 = vmatmul.msk.f32.gmra.mxu2 %vm1128_vm10, %v3195_v53  ;;  %3211 = vmatmul.msk.f32.gmra.mxu3 %vm1128_vm10, %v3195_v53 }
 0x2c2   :  { %v4596_v55 = vpop.f32.mrf.mxu2  ;;  %v4598_v60 = vpop.f32.mrf.mxu3 }
 0x2c3   :  { %3182 = vmatmul.msk.f32.gmra.mxu0 %vm1128_vm10, %v3174_v54  ;;  %3190 = vmatmul.msk.f32.gmra.mxu1 %vm1128_vm10, %v3174_v54  ;;  %v3243_v54 = vld [vmem:[%s5088_s4 + $0x1a0] sm:$0xff] }
 0x2c7   :  { %v1276_v51 = vpop.f32.mrf.mxu0 }
 0x2c8   :  { %v1317_v34 = vpop.f32.mrf.mxu1  ;;  %v1277_v12 = vadd.f32 %v1276_v51, %v4490_v61  ;;  %v3219_v61 = vld [vmem:[%s5088_s4 + $0x160] sm:$0xff] }
 0x2c9   :  { %3204 = vmatmul.msk.f32.gmra.mxu2 %vm1128_vm10, %v3196_v33  ;;  %3212 = vmatmul.msk.f32.gmra.mxu3 %vm1128_vm10, %v3196_v33  ;;  %v1318_v35 = vadd.f32 %v1317_v34, %v4497_v4 }
 0x2ca   :  { %v4610_v0 = vpop.f32.mrf.mxu2  ;;  %v4612_v31 = vpop.f32.mrf.mxu3 }
 0x2cb   :  { %3223 = vmatmul.msk.f32.vlgmr.msrb.gmra.mxu0 %vm1128_vm10, %v3215_v7  ;;  %3231 = vmatmul.msk.f32.vlgmr.msrb.gmra.mxu1 %vm1128_vm10, %v3215_v7 }
 0x2cf   :  { %v1279_v11 = vpop.f32.mrf.mxu0 }
 0x2d0   :  { %v1320_v23 = vpop.f32.mrf.mxu1  ;;  %v1280_v4 = vadd.f32 %v1279_v11, %v4538_v13  ;;  %v3220_v13 = vld [vmem:[%s5088_s4 + $0x168] sm:$0xff] }
 0x2d1   :  { %3205 = vmatmul.msk.f32.gmra.mxu2 %vm1128_vm10, %v3197_v24  ;;  %3213 = vmatmul.msk.f32.gmra.mxu3 %vm1128_vm10, %v3197_v24  ;;  %v1321_v17 = vadd.f32 %v1320_v23, %v4542_v57 }
 0x2d2   :  { %v4624_v30 = vpop.f32.mrf.mxu2  ;;  %v4626_v18 = vpop.f32.mrf.mxu3 }
 0x2d3   :  { %3224 = vmatmul.msk.f32.gmra.mxu0 %vm1128_vm10, %v3216_v39  ;;  %3232 = vmatmul.msk.f32.gmra.mxu1 %vm1128_vm10, %v3216_v39  ;;  %v3244_v39 = vld [vmem:[%s5088_s4 + $0x1a8] sm:$0xff] }
 0x2d7   :  { %v1282_v62 = vpop.f32.mrf.mxu0 }
 0x2d8   :  { %v1323_v8 = vpop.f32.mrf.mxu1  ;;  %v1283_v57 = vadd.f32 %v1282_v62, %v4562_v38  ;;  %v3221_v38 = vld [vmem:[%s5088_s4 + $0x170] sm:$0xff] }
 0x2d9   :  { %3206 = vmatmul.msk.f32.gmra.mxu2 %vm1128_vm10, %v3198_v16  ;;  %3214 = vmatmul.msk.f32.gmra.mxu3 %vm1128_vm10, %v3198_v16  ;;  %v1324_v36 = vadd.f32 %v1323_v8, %v4564_v43 }
 0x2da   :  { %v4638_v26 = vpop.f32.mrf.mxu2  ;;  %v4640_v42 = vpop.f32.mrf.mxu3 }
 0x2db   :  { %3225 = vmatmul.msk.f32.gmra.mxu0 %vm1128_vm10, %v3217_v28  ;;  %3233 = vmatmul.msk.f32.gmra.mxu1 %vm1128_vm10, %v3217_v28 }
 0x2df   :  { %v1285_v45 = vpop.f32.mrf.mxu0 }
 0x2e0   :  { %v1326_v9 = vpop.f32.mrf.mxu1  ;;  %v1286_v43 = vadd.f32 %v1285_v45, %v4582_v1  ;;  %v3222_v1 = vld [vmem:[%s5088_s4 + $0x178] sm:$0xff] }
 0x2e1   :  { %3247 = vmatmul.msk.f32.vlgmr.msrb.gmra.mxu2 %vm1128_vm10, %v3239_v32  ;;  %3255 = vmatmul.msk.f32.vlgmr.msrb.gmra.mxu3 %vm1128_vm10, %v3239_v32  ;;  %v1327_v48 = vadd.f32 %v1326_v9, %v4584_v21 }
 0x2e2   :  { %v1423_v41 = vpop.f32.mrf.mxu2  ;;  %v1464_v49 = vpop.f32.mrf.mxu3 }
 0x2e3   :  { %3226 = vmatmul.msk.f32.gmra.mxu0 %vm1128_vm10, %v3218_v6  ;;  %3234 = vmatmul.msk.f32.gmra.mxu1 %vm1128_vm10, %v3218_v6  ;;  %v4656_v10 = vadd.f32 %v1423_v41, %v1277_v12  ;;  %v4658_v3 = vadd.f32 %v1464_v49, %v1318_v35  ;;  %v3245_v6 = vld [vmem:[%s5088_s4 + $0x1b0] sm:$0xff] }
 0x2e7   :  { %v1288_v27 = vpop.f32.mrf.mxu0 }
 0x2e8   :  { %v1329_v63 = vpop.f32.mrf.mxu1  ;;  %v1289_v21 = vadd.f32 %v1288_v27, %v4596_v55  ;;  %v3263_v55 = vld [vmem:[%s5088_s4 + $0x1c0] sm:$0xff] }
 0x2e9   :  { %3248 = vmatmul.msk.f32.gmra.mxu2 %vm1128_vm10, %v3240_v58  ;;  %3256 = vmatmul.msk.f32.gmra.mxu3 %vm1128_vm10, %v3240_v58  ;;  %v1330_v34 = vadd.f32 %v1329_v63, %v4598_v60 }
 0x2ea   :  { %v1426_v19 = vpop.f32.mrf.mxu2  ;;  %v1467_v20 = vpop.f32.mrf.mxu3 }
 0x2eb   :  { %3227 = vmatmul.msk.f32.gmra.mxu0 %vm1128_vm10, %v3219_v61  ;;  %3235 = vmatmul.msk.f32.gmra.mxu1 %vm1128_vm10, %v3219_v61  ;;  %v4672_v14 = vadd.f32 %v1426_v19, %v1280_v4  ;;  %v4674_v29 = vadd.f32 %v1467_v20, %v1321_v17  ;;  %v3246_v61 = vld [vmem:[%s5088_s4 + $0x1b8] sm:$0xff] }
 0x2ef   :  { %v1291_v25 = vpop.f32.mrf.mxu0 }
 0x2f0   :  { %v1332_v5 = vpop.f32.mrf.mxu1  ;;  %v1292_v60 = vadd.f32 %v1291_v25, %v4610_v0  ;;  %v3264_v0 = vld [vmem:[%s5088_s4 + $0x1c8] sm:$0xff] }
 0x2f1   :  { %3249 = vmatmul.msk.f32.gmra.mxu2 %vm1128_vm10, %v3241_v15  ;;  %3257 = vmatmul.msk.f32.gmra.mxu3 %vm1128_vm10, %v3241_v15  ;;  %v1333_v8 = vadd.f32 %v1332_v5, %v4612_v31 }
 0x2f2   :  { %v1429_v22 = vpop.f32.mrf.mxu2  ;;  %v1470_v44 = vpop.f32.mrf.mxu3 }
 0x2f3   :  { %3228 = vmatmul.msk.f32.gmra.mxu0 %vm1128_vm10, %v3220_v13  ;;  %3236 = vmatmul.msk.f32.gmra.mxu1 %vm1128_vm10, %v3220_v13  ;;  %v4688_v37 = vadd.f32 %v1429_v22, %v1283_v57  ;;  %v4690_v56 = vadd.f32 %v1470_v44, %v1324_v36  ;;  %v3287_v13 = vld [vmem:[%s5088_s4 + $0x200] sm:$0xff]  ;;  %v3288_v44 = vld [vmem:[%s5088_s4 + $0x208] sm:$0xff] }
 0x2f7   :  { %v1294_v40 = vpop.f32.mrf.mxu0 }
 0x2f8   :  { %v1335_v47 = vpop.f32.mrf.mxu1  ;;  %v1295_v31 = vadd.f32 %v1294_v40, %v4624_v30  ;;  %v3265_v30 = vld [vmem:[%s5088_s4 + $0x1d0] sm:$0xff] }
 0x2f9   :  { %3250 = vmatmul.msk.f32.gmra.mxu2 %vm1128_vm10, %v3242_v2  ;;  %3258 = vmatmul.msk.f32.gmra.mxu3 %vm1128_vm10, %v3242_v2  ;;  %v1336_v41 = vadd.f32 %v1335_v47, %v4626_v18  ;;  %v3267_v47 = vld [vmem:[%s5088_s4 + $0x1e0] sm:$0xff] }
 0x2fa   :  { %v1432_v50 = vpop.f32.mrf.mxu2  ;;  %v1473_v52 = vpop.f32.mrf.mxu3 }
 0x2fb   :  { %3229 = vmatmul.msk.f32.gmra.mxu0 %vm1128_vm10, %v3221_v38  ;;  %3237 = vmatmul.msk.f32.gmra.mxu1 %vm1128_vm10, %v3221_v38  ;;  %v4704_v59 = vadd.f32 %v1432_v50, %v1286_v43  ;;  %v4706_v53 = vadd.f32 %v1473_v52, %v1327_v48  ;;  %v3289_v48 = vld [vmem:[%s5088_s4 + $0x210] sm:$0xff] }
 0x2ff   :  { %v1297_v33 = vpop.f32.mrf.mxu0 }
 0x300   :  { %v1338_v51 = vpop.f32.mrf.mxu1  ;;  %v1298_v18 = vadd.f32 %v1297_v33, %v4638_v26  ;;  %v3266_v26 = vld [vmem:[%s5088_s4 + $0x1d8] sm:$0xff] }
 0x301   :  { %3251 = vmatmul.msk.f32.gmra.mxu2 %vm1128_vm10, %v3243_v54  ;;  %3259 = vmatmul.msk.f32.gmra.mxu3 %vm1128_vm10, %v3243_v54  ;;  %v1339_v19 = vadd.f32 %v1338_v51, %v4640_v42  ;;  %v3268_v54 = vld [vmem:[%s5088_s4 + $0x1e8] sm:$0xff] }
 0x302   :  { %v1435_v7 = vpop.f32.mrf.mxu2  ;;  %v1476_v24 = vpop.f32.mrf.mxu3 }
 0x303   :  { %3230 = vmatmul.msk.f32.gmra.mxu0 %vm1128_vm10, %v3222_v1  ;;  %3238 = vmatmul.msk.f32.gmra.mxu1 %vm1128_vm10, %v3222_v1  ;;  %v4720_v11 = vadd.f32 %v1435_v7, %v1289_v21  ;;  %v4722_v23 = vadd.f32 %v1476_v24, %v1330_v34  ;;  %v3290_v1 = vld [vmem:[%s5088_s4 + $0x218] sm:$0xff]  ;;  %v3269_v7 = vld [vmem:[%s5088_s4 + $0x1f0] sm:$0xff] }
 0x307   :  { %v4727_v16 = vpop.f32.mrf.mxu0 }
 0x308   :  { %v4729_v62 = vpop.f32.mrf.mxu1 }
 0x309   :  { %3252 = vmatmul.msk.f32.gmra.mxu2 %vm1128_vm10, %v3244_v39  ;;  %3260 = vmatmul.msk.f32.gmra.mxu3 %vm1128_vm10, %v3244_v39 }
 0x30a   :  { %v1438_v28 = vpop.f32.mrf.mxu2  ;;  %v1479_v32 = vpop.f32.mrf.mxu3 }
 0x30b   :  { %3271 = vmatmul.msk.f32.vlgmr.msra.gmra.mxu0 %vm1128_vm10, %v3263_v55  ;;  %3279 = vmatmul.msk.f32.vlgmr.msra.gmra.mxu1 %vm1128_vm10, %v3263_v55  ;;  %v4740_v45 = vadd.f32 %v1438_v28, %v1292_v60  ;;  %v4742_v9 = vadd.f32 %v1479_v32, %v1333_v8  ;;  %v3291_v55 = vld [vmem:[%s5088_s4 + $0x220] sm:$0xff]  ;;  %v3270_v28 = vld [vmem:[%s5088_s4 + $0x1f8] sm:$0xff] }
 0x30f   :  { %v4747_v12 = vpop.f32.mrf.mxu0 }
 0x310   :  { %v4749_v35 = vpop.f32.mrf.mxu1 }
 0x311   :  { %3253 = vmatmul.msk.f32.gmra.mxu2 %vm1128_vm10, %v3245_v6  ;;  %3261 = vmatmul.msk.f32.gmra.mxu3 %vm1128_vm10, %v3245_v6 }
 0x312   :  { %v1441_v49 = vpop.f32.mrf.mxu2  ;;  %v1482_v58 = vpop.f32.mrf.mxu3 }
 0x313   :  { %3272 = vmatmul.msk.f32.gmra.mxu0 %vm1128_vm10, %v3264_v0  ;;  %3280 = vmatmul.msk.f32.gmra.mxu1 %vm1128_vm10, %v3264_v0  ;;  %v4760_v27 = vadd.f32 %v1441_v49, %v1295_v31  ;;  %v4762_v63 = vadd.f32 %v1482_v58, %v1336_v41  ;;  %v3292_v0 = vld [vmem:[%s5088_s4 + $0x228] sm:$0xff] }
 0x317   :  { %v4767_v4 = vpop.f32.mrf.mxu0 }
 0x318   :  { %v4769_v17 = vpop.f32.mrf.mxu1 }
 0x319   :  { %3254 = vmatmul.msk.f32.gmra.mxu2 %vm1128_vm10, %v3246_v61  ;;  %3262 = vmatmul.msk.f32.gmra.mxu3 %vm1128_vm10, %v3246_v61  ;;  %v3293_v61 = vld [vmem:[%s5088_s4 + $0x230] sm:$0xff] }
 0x31a   :  { %v1444_v20 = vpop.f32.mrf.mxu2  ;;  %v1485_v15 = vpop.f32.mrf.mxu3 }
 0x31b   :  { %3273 = vmatmul.msk.f32.gmra.mxu0 %vm1128_vm10, %v3265_v30  ;;  %3281 = vmatmul.msk.f32.gmra.mxu1 %vm1128_vm10, %v3265_v30  ;;  %v4780_v25 = vadd.f32 %v1444_v20, %v1298_v18  ;;  %v4782_v5 = vadd.f32 %v1485_v15, %v1339_v19 }
 0x31f   :  { %v4787_v57 = vpop.f32.mrf.mxu0 }
 0x320   :  { %v4789_v36 = vpop.f32.mrf.mxu1 }
 0x321   :  { %3295 = vmatmul.msk.f32.vlgmr.msra.gmra.mxu2 %vm1128_vm10, %v3287_v13  ;;  %3303 = vmatmul.msk.f32.vlgmr.msra.gmra.mxu3 %vm1128_vm10, %v3287_v13 }
 0x322   :  { %v4796_v42 = vpop.f32.mrf.mxu2  ;;  %v4798_v22 = vpop.f32.mrf.mxu3 }
 0x323   :  { %3274 = vmatmul.msk.f32.gmra.mxu0 %vm1128_vm10, %v3266_v26  ;;  %3282 = vmatmul.msk.f32.gmra.mxu1 %vm1128_vm10, %v3266_v26 }
 0x328   :  { %v4805_v2 = vpop.f32.mrf.mxu0  ;;  %v4807_v40 = vpop.f32.mrf.mxu1 }
 0x329   :  { %3296 = vmatmul.msk.f32.gmra.mxu2 %vm1128_vm10, %v3288_v44  ;;  %3304 = vmatmul.msk.f32.gmra.mxu3 %vm1128_vm10, %v3288_v44 }
 0x32b   :  { %3275 = vmatmul.msk.f32.gmra.mxu0 %vm1128_vm10, %v3267_v47  ;;  %3283 = vmatmul.msk.f32.gmra.mxu1 %vm1128_vm10, %v3267_v47  ;;  %v4816_v38 = vpop.f32.mrf.mxu2  ;;  %v4818_v43 = vpop.f32.mrf.mxu3  ;;  %v1655_v47 = vadd.f32 %v4767_v4, %v4688_v37 }
 0x330   :  { %v4823_v50 = vpop.f32.mrf.mxu0  ;;  %v4825_v52 = vpop.f32.mrf.mxu1 }
 0x331   :  { %3297 = vmatmul.msk.f32.gmra.mxu2 %vm1128_vm10, %v3289_v48  ;;  %3305 = vmatmul.msk.f32.gmra.mxu3 %vm1128_vm10, %v3289_v48  ;;  %v1656_v48 = vadd.f32 %v4769_v17, %v4690_v56 }
 0x333   :  { %3276 = vmatmul.msk.f32.gmra.mxu0 %vm1128_vm10, %v3268_v54  ;;  %3284 = vmatmul.msk.f32.gmra.mxu1 %vm1128_vm10, %v3268_v54  ;;  %v1723_v33 = vpop.f32.mrf.mxu2  ;;  %v1764_v51 = vpop.f32.mrf.mxu3  ;;  %v3294_v54 = vld [vmem:[%s5088_s4 + $0x238] sm:$0xff]  ;;  %s3389_s4 = smov [#allocation2]  }
 0x334   :  { %s2963_s27 = sshll.u32 %s3389_s4, 4  ;;  %s2964_s27 = int_to_ptr.vmem [resolvable:$true] %s2963_s27 }
 0x338   :  { %v1604_v21 = vpop.f32.mrf.mxu0  ;;  %v1645_v34 = vpop.f32.mrf.mxu1 }
 0x339   :  { %3298 = vmatmul.msk.f32.gmra.mxu2 %vm1128_vm10, %v3290_v1  ;;  %3306 = vmatmul.msk.f32.gmra.mxu3 %vm1128_vm10, %v3290_v1  ;;  %v1663_v19 = vadd.f32 %v1604_v21, %v4760_v27  ;;  %v1664_v20 = vadd.f32 %v1645_v34, %v4762_v63  ;;  %v1786_v1 = vadd.f32 %v1723_v33, %v1655_v47 }
 0x33a   :  { %v1787_v27 = vadd.f32 %v1764_v51, %v1656_v48  ;;  %v1651_v33 = vadd.f32 %v4727_v16, %v4656_v10  ;;  %v1652_v51 = vadd.f32 %v4729_v62, %v4658_v3  ;;  %v1659_v10 = vadd.f32 %v4805_v2, %v4720_v11 }
 0x33b   :  { %3277 = vmatmul.msk.f32.gmra.mxu0 %vm1128_vm10, %v3269_v7  ;;  %3285 = vmatmul.msk.f32.gmra.mxu1 %vm1128_vm10, %v3269_v7  ;;  %v1660_v3 = vadd.f32 %v4807_v40, %v4722_v23  ;;  %v1653_v16 = vadd.f32 %v4747_v12, %v4672_v14  ;;  %v1654_v62 = vadd.f32 %v4749_v35, %v4674_v29 }
 0x33c   :  { %v4844_v24 = vpop.f32.mrf.mxu2  ;;  %v4846_v39 = vpop.f32.mrf.mxu3  ;;  %v1661_v29 = vadd.f32 %v4823_v50, %v4740_v45  ;;  %v1662_v12 = vadd.f32 %v4825_v52, %v4742_v9 }
 0x340   :  { %v1607_v60 = vpop.f32.mrf.mxu0  ;;  %v1648_v8 = vpop.f32.mrf.mxu1 }
 0x341   :  { %3299 = vmatmul.msk.f32.gmra.mxu2 %vm1128_vm10, %v3291_v55  ;;  %3307 = vmatmul.msk.f32.gmra.mxu3 %vm1128_vm10, %v3291_v55  ;;  %v1665_v55 = vadd.f32 %v1607_v60, %v4780_v25  ;;  %v1666_v37 = vadd.f32 %v1648_v8, %v4782_v5 }
 0x343   :  { %3278 = vmatmul.msk.f32.gmra.mxu0 %vm1128_vm10, %v3270_v28  ;;  %3286 = vmatmul.msk.f32.gmra.mxu1 %vm1128_vm10, %v3270_v28 }
 0x344   :  { %v1729_v32 = vpop.f32.mrf.mxu2  ;;  %v1770_v6 = vpop.f32.mrf.mxu3 }
 0x348   :  { %v1880_v31 = vpop.f32.mrf.mxu0  ;;  %v1921_v41 = vpop.f32.mrf.mxu1 }
 0x349   :  { %3300 = vmatmul.msk.f32.gmra.mxu2 %vm1128_vm10, %v3292_v0  ;;  %3308 = vmatmul.msk.f32.gmra.mxu3 %vm1128_vm10, %v3292_v0  ;;  %v1782_v0 = vadd.f32 %v4796_v42, %v1651_v33  ;;  %v1790_v42 = vadd.f32 %v1729_v32, %v1659_v10 }
 0x34b   :  { %v1945_v5 = vadd.f32 %v1880_v31, %v1782_v0  ;;  %v1784_v31 = vadd.f32 %v4816_v38, %v1653_v16 }
 0x34c   :  { %v1732_v49 = vpop.f32.mrf.mxu2  ;;  %v1773_v58 = vpop.f32.mrf.mxu3 }
 0x34d   :  { %v1792_v35 = vadd.f32 %v1732_v49, %v1661_v29  ;;  %v1793_v38 = vadd.f32 %v1773_v58, %v1662_v12 }
 0x350   :  { %v1883_v30 = vpop.f32.mrf.mxu0  ;;  %v1924_v18 = vpop.f32.mrf.mxu1 }
 0x351   :  { %3301 = vmatmul.msk.f32.gmra.mxu2 %vm1128_vm10, %v3293_v61  ;;  %3309 = vmatmul.msk.f32.gmra.mxu3 %vm1128_vm10, %v3293_v61  ;;  %v1783_v61 = vadd.f32 %v4798_v22, %v1652_v51  ;;  %v1791_v22 = vadd.f32 %v1770_v6, %v1660_v3  ;;  %v1947_v11 = vadd.f32 %v1883_v30, %v1784_v31 }
 0x353   :  { %v1946_v60 = vadd.f32 %v1921_v41, %v1783_v61  ;;  %v1785_v41 = vadd.f32 %v4818_v43, %v1654_v62 }
 0x354   :  { %v1735_v15 = vpop.f32.mrf.mxu2  ;;  %v1776_v13 = vpop.f32.mrf.mxu3 }
 0x355   :  { %v4870_v26 = vadd.f32 %v1735_v15, %v1663_v19  ;;  %v4872_v44 = vadd.f32 %v1776_v13, %v1664_v20  ;;  %v1948_v2 = vadd.f32 %v1924_v18, %v1785_v41 }
 0x358   :  { %v1886_v21 = vpop.f32.mrf.mxu0  ;;  %v1927_v63 = vpop.f32.mrf.mxu1 }
 0x359   :  { %3302 = vmatmul.msk.f32.gmra.mxu2 %vm1128_vm10, %v3294_v54  ;;  %3310 = vmatmul.msk.f32.gmra.mxu3 %vm1128_vm10, %v3294_v54  ;;  %v1949_v34 = vadd.f32 %v1886_v21, %v1786_v1  ;;  %v1950_v7 = vadd.f32 %v1927_v63, %v1787_v27 }
 0x35c   :  { %v1738_v4 = vpop.f32.mrf.mxu2  ;;  %v1779_v56 = vpop.f32.mrf.mxu3 }
 0x35d   :  { %v4885_v17 = vadd.f32 %v1738_v4, %v1665_v55  ;;  %v4887_v28 = vadd.f32 %v1779_v56, %v1666_v37 }
 0x360   :  { %v4895_v19 = vpop.f32.mrf.mxu0  ;;  %v4897_v25 = vpop.f32.mrf.mxu1 }
 0x364   :  { %v2043_v8 = vpop.f32.mrf.mxu2  ;;  %v2084_v20 = vpop.f32.mrf.mxu3 }
 0x365   :  { %v4899_v15 = vadd.f32 %v2043_v8, %v1945_v5  ;;  %v4901_v13 = vadd.f32 %v2084_v20, %v1946_v60 }
 0x368   :  { %v1892_v47 = vpop.f32.mrf.mxu0  ;;  %v1933_v48 = vpop.f32.mrf.mxu1 }
 0x369   :  { %v1953_v54 = vadd.f32 %v1892_v47, %v1790_v42  ;;  %v1954_v1 = vadd.f32 %v1933_v48, %v1791_v22 }
 0x36c   :  { %v2046_v27 = vpop.f32.mrf.mxu2  ;;  %v2087_v23 = vpop.f32.mrf.mxu3 }
 0x36d   :  { %v4913_v40 = vadd.f32 %v2046_v27, %v1947_v11  ;;  %v4915_v14 = vadd.f32 %v2087_v23, %v1948_v2  ;;  %v1657_v2 = vadd.f32 %v4787_v57, %v4704_v59  ;;  %v1658_v27 = vadd.f32 %v4789_v36, %v4706_v53 }
 0x36f   :  { %v1788_v12 = vadd.f32 %v4844_v24, %v1657_v2 }
 0x370   :  { %v1895_v43 = vpop.f32.mrf.mxu0  ;;  %v1936_v32 = vpop.f32.mrf.mxu1 }
 0x371   :  { %v1955_v6 = vadd.f32 %v1895_v43, %v1792_v35  ;;  %v1956_v21 = vadd.f32 %v1936_v32, %v1793_v38  ;;  %v1789_v35 = vadd.f32 %v4846_v39, %v1658_v27  ;;  %v1951_v38 = vadd.f32 %v4895_v19, %v1788_v12  ;;  %v2476_v32 = vpop.permute.xlu2 %2475 }
 0x373   :  { %v1952_v43 = vadd.f32 %v4897_v25, %v1789_v35 }
 0x374   :  { %v2049_v30 = vpop.f32.mrf.mxu2  ;;  %v2090_v18 = vpop.f32.mrf.mxu3 }
 0x375   :  { %v2112_v63 = vadd.f32 %v2049_v30, %v1949_v34  ;;  %v2113_v55 = vadd.f32 %v2090_v18, %v1950_v7 }
 0x378   :  { %v1898_v37 = vpop.f32.mrf.mxu0  ;;  %v1939_v4 = vpop.f32.mrf.mxu1 }
 0x379   :  { %v1957_v56 = vadd.f32 %v1898_v37, %v4870_v26  ;;  %v1958_v33 = vadd.f32 %v1939_v4, %v4872_v44 }
 0x37c   :  { %v2052_v45 = vpop.f32.mrf.mxu2  ;;  %v2093_v50 = vpop.f32.mrf.mxu3 }
 0x380   :  { %v4927_v58 = vpop.f32.mrf.mxu0  ;;  %v4929_v0 = vpop.f32.mrf.mxu1 }
 0x384   :  { %v2055_v51 = vpop.f32.mrf.mxu2  ;;  %v2096_v9 = vpop.f32.mrf.mxu3 }
 0x385   :  { %v4923_v52 = vadd.f32 %v2055_v51, %v1953_v54  ;;  %v4925_v49 = vadd.f32 %v2096_v9, %v1954_v1 }
 0x388   :  { %v2206_v26 = vpop.f32.mrf.mxu0  ;;  %v2247_v44 = vpop.f32.mrf.mxu1 }
 0x389   :  { %v2271_v19 = vadd.f32 %v2206_v26, %v4899_v15  ;;  %v2272_v25 = vadd.f32 %v2247_v44, %v4901_v13  ;;  %v2466_v13 = vpop.permute.xlu1 %2465 }
 0x38c   :  { %v2058_v34 = vpop.f32.mrf.mxu2  ;;  %v2099_v7 = vpop.f32.mrf.mxu3 }
 0x38d   :  { %v4931_v61 = vadd.f32 %v2058_v34, %v1955_v6  ;;  %v4933_v5 = vadd.f32 %v2099_v7, %v1956_v21  ;;  %v2114_v6 = vadd.f32 %v2052_v45, %v1951_v38  ;;  %v2115_v21 = vadd.f32 %v2093_v50, %v1952_v43 }
 0x38e   :  { %v3387_v43 = vmov 0.0  }
 0x390   :  { %v2209_v3 = vpop.f32.mrf.mxu0  ;;  %v2250_v16 = vpop.f32.mrf.mxu1 }
 0x391   :  { %v2273_v53 = vadd.f32 %v2209_v3, %v4913_v40  ;;  %v2274_v57 = vadd.f32 %v2250_v16, %v4915_v14  ;;  %v2471_v40 = vpop.permute.xlu0 %2470 }
 0x394   :  { %v2061_v60 = vpop.f32.mrf.mxu2  ;;  %v2102_v8 = vpop.f32.mrf.mxu3 }
 0x395   :  { %v4935_v20 = vadd.f32 %v2061_v60, %v1957_v56  ;;  %v4937_v10 = vadd.f32 %v2102_v8, %v1958_v33 }
 0x398   :  { %v2212_v41 = vpop.f32.mrf.mxu0  ;;  %v2253_v47 = vpop.f32.mrf.mxu1 }
 0x399   :  { %v2275_v30 = vadd.f32 %v2212_v41, %v2112_v63  ;;  %v2276_v18 = vadd.f32 %v2253_v47, %v2113_v55  ;;  %v5180_v63 = vlaneseq }
 0x39b   :  { %v4960_v55 = vshrl.u32 %v5180_v63, 7 }
 0x39c   :  { %v4939_v62 = vpop.f32.mrf.mxu2  ;;  %v4941_v42 = vpop.f32.mrf.mxu3 }
 0x39d   :  { %v2533_v26 = vmul.u32 2, %v4960_v55 }
 0x39f   :  { %vm2535_vm11 = vcmp.eq.s32.totalorder %v5163_v46, %v2533_v26 }
 0x3a0   :  { %v2215_v1 = vpop.f32.mrf.mxu0  ;;  %v2256_v11 = vpop.f32.mrf.mxu1 }
 0x3a1   :  { %v2277_v36 = vadd.f32 %v2215_v1, %v2114_v6  ;;  %v2278_v24 = vadd.f32 %v2256_v11, %v2115_v21 }
 0x3a4   :  { %v2369_v22 = vpop.f32.mrf.mxu2  ;;  %v2410_v31 = vpop.f32.mrf.mxu3 }
 0x3a5   :  { %v2434_v34 = vadd.f32 %v2369_v22, %v2271_v19  ;;  %v2435_v14 = vadd.f32 %v2410_v31, %v2272_v25  ;;  %v2461_v31 = vpop.permute.xlu2 %2460  ;;  %v1960_v19 = vadd.f32 %v4929_v0, %v4887_v28 }
 0x3a7   :  { %v4977_v41 = vadd.f32 %v2461_v31, %v2434_v34  ;;  %v4979_v47 = vadd.f32 %v2461_v31, %v2435_v14  ;;  %v2123_v63 = vadd.f32 %v4941_v42, %v1960_v19  ;;  %v2491_v31 = vpop.permute.xlu1 %2490 }
 0x3a8   :  { %v4951_v37 = vpop.f32.mrf.mxu0  ;;  %v4953_v59 = vpop.f32.mrf.mxu1 }
 0x3a9   :  { %v2514_v35 = vmax.f32 %v4977_v41, 0.0  ;;  %v2515_v38 = vmax.f32 %v4979_v47, 0.0  ;;  %v2279_v28 = vadd.f32 %v4951_v37, %v4923_v52  ;;  %v2280_v0 = vadd.f32 %v4953_v59, %v4925_v49 }
 0x3ac   :  { %v2372_v48 = vpop.f32.mrf.mxu2  ;;  %v2413_v54 = vpop.f32.mrf.mxu3 }
 0x3ad   :  { %v2436_v45 = vadd.f32 %v2372_v48, %v2273_v53  ;;  %v2437_v50 = vadd.f32 %v2413_v54, %v2274_v57 }
 0x3af   :  { %v4971_v44 = vadd.f32 %v2466_v13, %v2436_v45  ;;  %v4973_v3 = vadd.f32 %v2466_v13, %v2437_v50 }
 0x3b0   :  { %v2221_v48 = vpop.f32.mrf.mxu0  ;;  %v2262_v54 = vpop.f32.mrf.mxu1 }
 0x3b1   :  { %v2517_v12 = vmax.f32 %v4973_v3, 0.0 }
 0x3b4   :  { %v2375_v23 = vpop.f32.mrf.mxu2  ;;  %v2416_v29 = vpop.f32.mrf.mxu3 }
 0x3b5   :  { %v2438_v39 = vadd.f32 %v2375_v23, %v2275_v30  ;;  %v2439_v4 = vadd.f32 %v2416_v29, %v2276_v18  ;;  %v4991_v23 = vadd.s32 8, %v4960_v55  ;;  %v2516_v29 = vmax.f32 %v4971_v44, 0.0 }
 0x3b7   :  { %v4962_v7 = vadd.f32 %v2471_v40, %v2438_v39  ;;  %v4964_v60 = vadd.f32 %v2471_v40, %v2439_v4  ;;  %v2534_v6 = vmul.u32 2, %v4991_v23  ;;  %v2496_v39 = vpop.permute.xlu0 %2495  ;;  %v1959_v4 = vadd.f32 %v4927_v58, %v4885_v17 }
 0x3b8   :  { %v2224_v18 = vpop.f32.mrf.mxu0  ;;  %v2265_v53 = vpop.f32.mrf.mxu1 }
 0x3b9   :  { %v2518_v1 = vmax.f32 %v4962_v7, 0.0  ;;  %v2519_v11 = vmax.f32 %v4964_v60, 0.0  ;;  %vm2536_vm12 = vcmp.eq.s32.totalorder %v5163_v46, %v2534_v6  ;;  %v2283_v45 = vadd.f32 %v2224_v18, %v4935_v20 }
 0x3ba   :  { %v5021_v57 = vsel %vm2536_vm12, 1.0, %v3387_v43  ;;  %v2284_v50 = vadd.f32 %v2265_v53, %v4937_v10 }
 0x3bc   :  { %v2378_v56 = vpop.f32.mrf.mxu2  ;;  %v2419_v33 = vpop.f32.mrf.mxu3 }
 0x3bd   :  { %v2440_v51 = vadd.f32 %v2378_v56, %v2277_v36  ;;  %v2441_v9 = vadd.f32 %v2419_v33, %v2278_v24  ;;  %v2122_v33 = vadd.f32 %v4939_v62, %v1959_v4 }
 0x3bf   :  { %v4966_v8 = vadd.f32 %v2476_v32, %v2440_v51  ;;  %v4968_v15 = vadd.f32 %v2476_v32, %v2441_v9  ;;  %v5006_v32 = vsel %vm2535_vm11, 1.0, %v3387_v43  ;;  %v2281_v51 = vadd.f32 %v2221_v48, %v4931_v61 }
 0x3c0   :  { %v2227_v25 = vpop.f32.mrf.mxu0  ;;  %v2268_v56 = vpop.f32.mrf.mxu1  ;;  %v2282_v9 = vadd.f32 %v2262_v54, %v4933_v5 }
 0x3c1   :  { %v2520_v16 = vmax.f32 %v4966_v8, 0.0  ;;  %v2521_v22 = vmax.f32 %v4968_v15, 0.0  ;;  %v2285_v40 = vadd.f32 %v2227_v25, %v2122_v33  ;;  %v2286_v34 = vadd.f32 %v2268_v56, %v2123_v63 }
 0x3c3   :  { %2559 = vmatpush.msrb.mxu0 %v2520_v16  ;;  %2582 = vmatpush.msrb.mxu1 %v2521_v22 }
 0x3c4   :  { %v2381_v2 = vpop.f32.mrf.mxu2  ;;  %v2422_v27 = vpop.f32.mrf.mxu3 }
 0x3c5   :  { %2560 = vmatpush.msrb.mxu0 %v2518_v1  ;;  %2583 = vmatpush.msrb.mxu1 %v2519_v11  ;;  %v2442_v61 = vadd.f32 %v2381_v2, %v2279_v28  ;;  %v2443_v48 = vadd.f32 %v2422_v27, %v2280_v0  ;;  %v2639_v2 = vadd.s32 1, %v2533_v26  ;;  %v2640_v26 = vadd.s32 1, %v2534_v6 }
 0x3c7   :  { %2561 = vmatpush.msrb.mxu0 %v2516_v29  ;;  %2584 = vmatpush.msrb.mxu1 %v2517_v12  ;;  %vm2641_vm13 = vcmp.eq.s32.totalorder %v5163_v46, %v2639_v2  ;;  %vm2642_vm14 = vcmp.eq.s32.totalorder %v5163_v46, %v2640_v26 }
 0x3c8   :  { %v3321_v55 = vsel %vm2641_vm13, 1.0, %v3387_v43  ;;  %v3322_v7 = vsel %vm2642_vm14, 1.0, %v3387_v43 }
 0x3c9   :  { %2562 = vmatpush.msrb.mxu0 %v2514_v35  ;;  %2585 = vmatpush.msrb.mxu1 %v2515_v38 }
 0x3ca   :  { %3313 = vmatmul.msk.f32.vlgmr.msrb.gmra.mxu0 %vm1128_vm10, %v5006_v32  ;;  %3315 = vmatmul.msk.f32.vlgmr.msrb.gmra.mxu1 %vm1128_vm10, %v5006_v32 }
 0x3cc   :  { %v2384_v21 = vpop.f32.mrf.mxu2  ;;  %v2425_v30 = vpop.f32.mrf.mxu3 }
 0x3cd   :  { %v2444_v14 = vadd.f32 %v2384_v21, %v2281_v51  ;;  %v2445_v20 = vadd.f32 %v2425_v30, %v2282_v9 }
 0x3d2   :  { %3314 = vmatmul.msk.f32.gmra.mxu0 %vm1128_vm10, %v5021_v57  ;;  %3316 = vmatmul.msk.f32.gmra.mxu1 %vm1128_vm10, %v5021_v57 }
 0x3d4   :  { %v2387_v36 = vpop.f32.mrf.mxu2  ;;  %v2428_v24 = vpop.f32.mrf.mxu3 }
 0x3d5   :  { %v2446_v17 = vadd.f32 %v2387_v36, %v2283_v45  ;;  %v2447_v58 = vadd.f32 %v2428_v24, %v2284_v50  ;;  %v2486_v36 = vpop.permute.xlu2 %2485  ;;  %v2481_v24 = vpop.permute.xlu0 %2480 }
 0x3d6   :  { %v2508_v4 = vadd.f32 %v2486_v36, %v2444_v14  ;;  %v2509_v52 = vadd.f32 %v2486_v36, %v2445_v20  ;;  %v2506_v49 = vadd.f32 %v2481_v24, %v2442_v61  ;;  %v2507_v59 = vadd.f32 %v2481_v24, %v2443_v48 }
 0x3d7   :  { %v2510_v5 = vadd.f32 %v2491_v31, %v2446_v17  ;;  %v2511_v54 = vadd.f32 %v2491_v31, %v2447_v58 }
 0x3d8   :  { %v2524_v27 = vmax.f32 %v2508_v4, 0.0  ;;  %v2525_v30 = vmax.f32 %v2509_v52, 0.0  ;;  %v2523_v56 = vmax.f32 %v2507_v59, 0.0 }
 0x3d9   :  { %v2526_v25 = vmax.f32 %v2510_v5, 0.0  ;;  %v2527_v21 = vmax.f32 %v2511_v54, 0.0 }
 0x3dc   :  { %v2390_v62 = vpop.f32.mrf.mxu2  ;;  %v2431_v42 = vpop.f32.mrf.mxu3 }
 0x3dd   :  { %v2448_v13 = vadd.f32 %v2390_v62, %v2285_v40  ;;  %v2449_v10 = vadd.f32 %v2431_v42, %v2286_v34 }
 0x3df   :  { %v2512_v18 = vadd.f32 %v2496_v39, %v2448_v13  ;;  %v2513_v53 = vadd.f32 %v2496_v39, %v2449_v10  ;;  %v2522_v39 = vmax.f32 %v2506_v49, 0.0 }
 0x3e1   :  { %v2528_v37 = vmax.f32 %v2512_v18, 0.0  ;;  %v2529_v19 = vmax.f32 %v2513_v53, 0.0 }
 0x3e3   :  { %2605 = vmatpush.msra.mxu0 %v2528_v37  ;;  %2628 = vmatpush.msra.mxu1 %v2529_v19 }
 0x3e4   :  { %2711 = vmatpush.msrb.mxu2 %v2528_v37  ;;  %2734 = vmatpush.msrb.mxu3 %v2529_v19  ;;  %v3388_v19 = vmov 256.0  }
 0x3e5   :  { %2606 = vmatpush.msra.mxu0 %v2526_v25  ;;  %2629 = vmatpush.msra.mxu1 %v2527_v21  ;;  %3350 = vrcp.f32 %v3388_v19 }
 0x3e6   :  { %2712 = vmatpush.msrb.mxu2 %v2526_v25  ;;  %2735 = vmatpush.msrb.mxu3 %v2527_v21 }
 0x3e7   :  { %2607 = vmatpush.msra.mxu0 %v2524_v27  ;;  %2630 = vmatpush.msra.mxu1 %v2525_v30 }
 0x3e8   :  { %2713 = vmatpush.msrb.mxu2 %v2524_v27  ;;  %2736 = vmatpush.msrb.mxu3 %v2525_v30 }
 0x3e9   :  { %2608 = vmatpush.msra.mxu0 %v2522_v39  ;;  %2631 = vmatpush.msra.mxu1 %v2523_v56 }
 0x3ea   :  { %2714 = vmatpush.msrb.mxu2 %v2522_v39  ;;  %2737 = vmatpush.msrb.mxu3 %v2523_v56 }
 0x3eb   :  { %3317 = vmatmul.msk.f32.vlgmr.msra.gmra.mxu0 %vm1128_vm10, %v5006_v32  ;;  %3319 = vmatmul.msk.f32.vlgmr.msra.gmra.mxu1 %vm1128_vm10, %v5006_v32  ;;  %v3351_v49 = vpop.eup %3350 }
 0x3ec   :  { %2665 = vmatpush.msrb.mxu0 %v2520_v16  ;;  %2688 = vmatpush.msrb.mxu1 %v2521_v22  ;;  %v2947_v59 = vmul.f32 256.0, %v3351_v49  ;;  %vm2951_vm0 = vweird.f32 %v3351_v49 }
 0x3ed   :  { %3327 = vmatmul.msk.f32.vlgmr.msrb.gmra.mxu2 %vm1128_vm10, %v3321_v55  ;;  %3329 = vmatmul.msk.f32.vlgmr.msrb.gmra.mxu3 %vm1128_vm10, %v3321_v55 }
 0x3ee   :  { %2666 = vmatpush.msrb.mxu0 %v2518_v1  ;;  %2689 = vmatpush.msrb.mxu1 %v2519_v11  ;;  %v2948_v25 = vsub.f32 1.0, %v2947_v59 }
 0x3f0   :  { %2667 = vmatpush.msrb.mxu0 %v2516_v29  ;;  %2690 = vmatpush.msrb.mxu1 %v2517_v12  ;;  %v2949_v30 = vmul.f32 %v3351_v49, %v2948_v25 }
 0x3f2   :  { %2668 = vmatpush.msrb.mxu0 %v2514_v35  ;;  %2691 = vmatpush.msrb.mxu1 %v2515_v38 }
 0x3f3   :  { %3318 = vmatmul.msk.f32.gmra.mxu0 %vm1128_vm10, %v5021_v57  ;;  %3320 = vmatmul.msk.f32.gmra.mxu1 %vm1128_vm10, %v5021_v57 }
 0x3f5   :  { %3328 = vmatmul.msk.f32.gmra.mxu2 %vm1128_vm10, %v3322_v7  ;;  %3330 = vmatmul.msk.f32.gmra.mxu3 %vm1128_vm10, %v3322_v7 }
 0x3fb   :  { %3323 = vmatmul.msk.f32.vlgmr.msrb.gmra.mxu0 %vm1128_vm10, %v3321_v55  ;;  %3325 = vmatmul.msk.f32.vlgmr.msrb.gmra.mxu1 %vm1128_vm10, %v3321_v55  ;;  %v2950_v55 = vadd.f32 %v3351_v49, %v2949_v30 }
 0x403   :  { %3324 = vmatmul.msk.f32.gmra.mxu0 %vm1128_vm10, %v3322_v7  ;;  %3326 = vmatmul.msk.f32.gmra.mxu1 %vm1128_vm10, %v3322_v7 }
 0x447   :  { %v2564_v46 = vpop.f32.mrf.mxu0  ;;  %v2587_v60 = vpop.f32.mrf.mxu1 }
 0x44f   :  { %v2567_v8 = vpop.f32.mrf.mxu0  ;;  %v2590_v15 = vpop.f32.mrf.mxu1 }
 0x450   :  { %2805 = vmatpush.xpose.msra.mxu2 %v2567_v8  ;;  %2828 = vmatpush.xpose.msra.mxu3 %v2590_v15 }
 0x454   :  { %2806 = vmatpush.xpose.msra.mxu2 %v2564_v46  ;;  %2829 = vmatpush.xpose.msra.mxu3 %v2587_v60 }
 0x457   :  { %2807 = vmatmul.f32.vlgmr.msra.gmra.mxu2 %v2564_v46  ;;  %2830 = vmatmul.f32.vlgmr.msra.gmra.mxu3 %v2587_v60  ;;  %v2952_v46 = vsel %vm2951_vm0, %v3351_v49, %v2950_v55 }
 0x45f   :  { %2810 = vmatmul.f32.gmra.mxu2 %v2567_v8  ;;  %2833 = vmatmul.f32.gmra.mxu3 %v2590_v15 }
 0x468   :  { %v2610_v44 = vpop.f32.mrf.mxu0  ;;  %v2633_v3 = vpop.f32.mrf.mxu1 }
 0x470   :  { %v2613_v16 = vpop.f32.mrf.mxu0  ;;  %v2636_v22 = vpop.f32.mrf.mxu1 }
 0x471   :  { %2897 = vmatpush.xpose.msrb.mxu2 %v2613_v16  ;;  %2920 = vmatpush.xpose.msrb.mxu3 %v2636_v22  ;;  %v2716_v1 = vpop.f32.mrf.mxu2  ;;  %v2739_v11 = vpop.f32.mrf.mxu3 }
 0x475   :  { %2898 = vmatpush.xpose.msrb.mxu2 %v2610_v44  ;;  %2921 = vmatpush.xpose.msrb.mxu3 %v2633_v3 }
 0x478   :  { %v2670_v41 = vpop.f32.mrf.mxu0  ;;  %v2693_v47 = vpop.f32.mrf.mxu1  ;;  %2899 = vmatmul.f32.vlgmr.msrb.gmra.mxu2 %v2610_v44  ;;  %2922 = vmatmul.f32.vlgmr.msrb.gmra.mxu3 %v2633_v3 }
 0x479   :  { %v2719_v12 = vpop.f32.mrf.mxu2  ;;  %v2742_v35 = vpop.f32.mrf.mxu3 }
 0x480   :  { %v2673_v23 = vpop.f32.mrf.mxu0  ;;  %v2696_v29 = vpop.f32.mrf.mxu1  ;;  %2902 = vmatmul.f32.gmra.mxu2 %v2613_v16  ;;  %2925 = vmatmul.f32.gmra.mxu3 %v2636_v22 }
 0x481   :  { %2759 = vmatpush.xpose.msra.mxu0 %v2673_v23  ;;  %2782 = vmatpush.xpose.msra.mxu1 %v2696_v29 }
 0x485   :  { %2760 = vmatpush.xpose.msra.mxu0 %v2670_v41  ;;  %2783 = vmatpush.xpose.msra.mxu1 %v2693_v47 }
 0x488   :  { %2761 = vmatmul.f32.vlgmr.msra.gmra.mxu0 %v2670_v41  ;;  %2784 = vmatmul.f32.vlgmr.msra.gmra.mxu1 %v2693_v47 }
 0x489   :  { %2851 = vmatpush.xpose.msrb.mxu0 %v2719_v12  ;;  %2874 = vmatpush.xpose.msrb.mxu1 %v2742_v35 }
 0x48d   :  { %2852 = vmatpush.xpose.msrb.mxu0 %v2716_v1  ;;  %2875 = vmatpush.xpose.msrb.mxu1 %v2739_v11 }
 0x490   :  { %2764 = vmatmul.f32.gmra.mxu0 %v2673_v23  ;;  %2787 = vmatmul.f32.gmra.mxu1 %v2696_v29 }
 0x498   :  { %2853 = vmatmul.f32.vlgmr.msrb.gmra.mxu0 %v2716_v1  ;;  %2876 = vmatmul.f32.vlgmr.msrb.gmra.mxu1 %v2739_v11 }
 0x4a0   :  { %2856 = vmatmul.f32.gmra.mxu0 %v2719_v12  ;;  %2879 = vmatmul.f32.gmra.mxu1 %v2742_v35 }
 0x4da   :  { %v2808_v38 = vpop.f32.mrf.mxu2  ;;  %v2831_v43 = vpop.f32.mrf.mxu3 }
 0x4e2   :  { %v2811_v57 = vpop.f32.mrf.mxu2  ;;  %v2834_v45 = vpop.f32.mrf.mxu3 }
 0x4fb   :  { %v2900_v50 = vpop.f32.mrf.mxu2  ;;  %v2923_v17 = vpop.f32.mrf.mxu3 }
 0x503   :  { %v2903_v31 = vpop.f32.mrf.mxu2  ;;  %v2926_v5 = vpop.f32.mrf.mxu3 }
 0x505   :  { %v2762_v32 = vpop.f32.mrf.mxu0  ;;  %v2785_v6 = vpop.f32.mrf.mxu1 }
 0x506   :  { %v2786_v40 = vadd.f32 %v2785_v6, %v2762_v32 }
 0x508   :  { %v2809_v28 = vadd.f32 %v2808_v38, %v2786_v40 }
 0x50a   :  { %v2832_v20 = vadd.f32 %v2831_v43, %v2809_v28 }
 0x50d   :  { %v2765_v33 = vpop.f32.mrf.mxu0  ;;  %v2788_v63 = vpop.f32.mrf.mxu1 }
 0x50e   :  { %v2789_v0 = vadd.f32 %v2788_v63, %v2765_v33 }
 0x510   :  { %v2812_v13 = vadd.f32 %v2811_v57, %v2789_v0 }
 0x512   :  { %v2835_v54 = vadd.f32 %v2834_v45, %v2812_v13 }
 0x515   :  { %v2854_v51 = vpop.f32.mrf.mxu0  ;;  %v2877_v9 = vpop.f32.mrf.mxu1 }
 0x516   :  { %v2878_v34 = vadd.f32 %v2877_v9, %v2854_v51 }
 0x518   :  { %v2901_v58 = vadd.f32 %v2900_v50, %v2878_v34 }
 0x51a   :  { %v2924_v62 = vadd.f32 %v2923_v17, %v2901_v58 }
 0x51c   :  { %v2929_v48 = vsub.f32 %v2832_v20, %v2924_v62 }
 0x51d   :  { %v2857_v42 = vpop.f32.mrf.mxu0  ;;  %v2880_v14 = vpop.f32.mrf.mxu1 }
 0x51e   :  { %v2881_v10 = vadd.f32 %v2880_v14, %v2857_v42  ;;  %v2931_v36 = vmul.f32 %v2929_v48, %v2929_v48 }
 0x520   :  { %v2904_v61 = vadd.f32 %v2903_v31, %v2881_v10  ;;  %v2934_v4 = vsel %vm2933_vm15, %v2931_v36, 0.0 }
 0x522   :  { %v2927_v18 = vadd.f32 %v2926_v5, %v2904_v61 }
 0x524   :  { %v2930_v53 = vsub.f32 %v2835_v54, %v2927_v18 }
 0x526   :  { %v2932_v24 = vmul.f32 %v2930_v53, %v2930_v53 }
 0x528   :  { %v2935_v52 = vsel %vm2933_vm15, %v2932_v24, 0.0 }
 0x529   :  { %v2936_v37 = vadd.f32 %v2935_v52, %v2934_v4 }
 0x52b   :  { %2937 = vadd.xlane.f32.xlu1 %v2936_v37 }
 0x59e   :  { %v2938_v21 = vpop.xlane.xlu1 %2937 }
 0x59f   :  { %v2939_v2 = vrot.slane %v2938_v21, 4 }
 0x5a1   :  { %v2940_v27 = vadd.f32 %v2939_v2, %v2938_v21 }
 0x5a3   :  { %v2941_v39 = vrot.slane %v2940_v27, 2 }
 0x5a5   :  { %v2942_v56 = vadd.f32 %v2941_v39, %v2940_v27 }
 0x5a7   :  { %v2943_v26 = vrot.slane %v2942_v56, 1 }
 0x5a9   :  { %v2944_v7 = vadd.f32 %v2943_v26, %v2942_v56 }
 0x5ab   :  { %3331 = vpush %v2944_v7 }
 0x5ac   :  { %3333 = vpush %v2952_v46 }
 0x5dc   :  { %s3332_s28 = spop %3331 }
 0x5dd   :  { %s3334_s13 = spop %3333 }
 0x5de   :  { %s2954_s14 = smul.f32 %s3334_s13, %s3332_s28 }
 0x5e0   :  { %v2955_v60 = vstv %s2954_s14 }
 0x5e1   :  { %2957 = vst.msk [vmem:[#allocation2] sm:$0x1] %vm2956_vm1, %v2955_v60 }
 0x5e2   :  { %2968 = dma.vmem_to_hbm [thread:$0]  %s2964_s27, 16, %s2966_s12, [#allocation3]  }
 0x5e3   :  { %3376 = dma.done.wait [#allocation3], 16  }
 0x5e4   :  { %3377 = vsyncadd [#allocation3], 4294967280 }
 0x5e5   :  { %2973 = vsyncpa [#allocation3], 1 }

</bundles_post_ra>
